<compile_context>
chip_gen: v7x
topology: tpu7x:2x2x1
jax: 0.10.0
libtpu: 0.0.40
codegen_flags: <defaults>
</compile_context>

<pallas_src>
import functools

import jax
import jax.numpy as jnp
from jax.experimental import pallas as pl
from jax.experimental.pallas import tpu as pltpu

BN_EPS = 1e-5
LANE = 128


def _round_up(v, m):
    return (v + m - 1) // m * m


def _double_conv_kernel(
    # inputs
    x_ref,      # (1, XROWS, CP)    bf16 flattened, zero-padded input sample
    w1_ref,     # (ks*ks, CP, COP)  bf16 stage-1 weights, one (CP, COP) tile per tap
    p1_ref,     # (3, COP)          f32  stage-1 [bias; gamma; beta]
    w2_ref,     # (ks*ks, COP, COP) bf16 stage-2 weights (un-folded)
    b2_ref,     # (1, COP)          f32  stage-2 conv bias
    # outputs
    o_ref,      # (1, M2, COP)      f32  stage-2 conv+ReLU output, PRE-BN2
    s2_ref,     # (2, COP)          f32  [sum; sumsq] of valid stage-2 pixels
    # scratch (persists across the whole grid)
    y1_ref,     # (N, Y1ROWS, COP)  bf16 stage-1 activations, PRE-BN1
    s1_ref,     # (2, COP)          f32  [sum; sumsq] for BN-1
    w2f_ref,    # (ks*ks, COP, COP) bf16 stage-2 weights with BN-1 folded in
    b2f_ref,    # (1, COP)          f32  stage-2 bias with BN-1 folded in
    *, ks, W, M1, M2, WO1, WO2, y1rows, cnt1, cop,
):
    phase = pl.program_id(0)
    n = pl.program_id(1)

    def conv_relu(load_rows, load_w, bias, m_rows):
        # Implicit im2col: ks*ks shifted contiguous bf16 row-slabs, one MXU matmul
        # each, f32 accumulation.
        # TODO(synk): pack taps along K (K = ks*ks*C) for v6e/v7x 256-wide MXU.
        acc = jnp.zeros((m_rows, cop), jnp.float32)
        for dy in range(ks):
            for dx in range(ks):
                off = dy * W + dx
                acc = acc + jnp.dot(load_rows(off, m_rows), load_w(dy * ks + dx),
                                    preferred_element_type=jnp.float32)
        return jnp.maximum(acc + bias, 0.0)

    def valid_row_mask(m_rows, wo):
        # Flat row r is a real output pixel iff (r % W) < wo.  In-kernel iota, no
        # lane-sparse (M, 1) mask arrays DMA'd from HBM.
        r = jax.lax.broadcasted_iota(jnp.int32, (m_rows, 1), 0)
        return (r % W) < wo

    def accumulate_stats(s_ref, y, mask):
        ym = jnp.where(mask, y, 0.0)               # drop wrap-garbage rows
        s_ref[0:1, :] += jnp.sum(ym, axis=0, keepdims=True)
        s_ref[1:2, :] += jnp.sum(ym * ym, axis=0, keepdims=True)

    # ---- phase 0: stage-1 conv + ReLU for sample n, accumulate BN-1 stats ----
    @pl.when(phase == 0)
    def _():
        @pl.when(n == 0)
        def _():
            s1_ref[...] = jnp.zeros_like(s1_ref)

        y1 = conv_relu(lambda off, m: x_ref[0, off:off + m, :],
                       lambda t: w1_ref[t], p1_ref[0:1, :], M1)
        y1_ref[n, 0:M1, :] = y1.astype(y1_ref.dtype)
        if y1rows > M1:
            # Keep the overrun rows read by stage-2's shifted slabs finite (zero);
            # aligned tail -> unmasked full-sublane store.
            y1_ref[n, M1:, :] = jnp.zeros((y1rows - M1, cop), y1_ref.dtype)
        accumulate_stats(s1_ref, y1, valid_row_mask(M1, WO1))

    # ---- phase 1: fold BN-1 into w2/b2 (once), conv2 + ReLU, write pre-BN2 ----
    # ---- output, accumulate BN-2 stats (BN-2 affine applied in XLA epilogue) ----
    @pl.when(phase == 1)
    def _():
        @pl.when(n == 0)
        def _():
            s2_ref[...] = jnp.zeros_like(s2_ref)
            # One-pass biased variance; BN-1 reduced to per-channel (scale, shift)
            # and folded into the stage-2 weights/bias: no per-sample VPU pass
            # over y1, and the zero overrun-row invariant is preserved.
            inv = 1.0 / cnt1
            mean = s1_ref[0:1, :] * inv
            var = jnp.maximum(s1_ref[1:2, :] * inv - mean * mean, 0.0)
            scale1 = p1_ref[1:2, :] * jax.lax.rsqrt(var + BN_EPS)   # (1, cop)
            shift1 = p1_ref[2:3, :] - mean * scale1                 # (1, cop)
            # diag(scale1) built with iota+where (lane-layout friendly, avoids a
            # lane->sublane transpose); w2f[t] = diag(scale1) @ w2[t].
            rows = jax.lax.broadcasted_iota(jnp.int32, (cop, cop), 0)
            cols = jax.lax.broadcasted_iota(jnp.int32, (cop, cop), 1)
            diag = jnp.where(rows == cols,
                             jnp.broadcast_to(scale1, (cop, cop)), 0.0)
            bias = b2_ref[...]
            for t in range(ks * ks):
                w2t = w2_ref[t].astype(jnp.float32)
                w2f_ref[t] = jnp.dot(
                    diag, w2t, preferred_element_type=jnp.float32
                ).astype(w2f_ref.dtype)
                bias = bias + jnp.dot(shift1, w2t,
                                      preferred_element_type=jnp.float32)
            b2f_ref[...] = bias

        y2 = conv_relu(lambda off, m: y1_ref[n, off:off + m, :],
                       lambda t: w2f_ref[t], b2f_ref[...], M2)
        o_ref[0] = y2
        accumulate_stats(s2_ref, y2, valid_row_mask(M2, WO2))


def _pad_weights(w, cin_p, cout_p):
    """Zero-pad HWIO conv weights to lane-dense channel counts, cast to bf16."""
    kh, kw, cin, cout = w.shape
    wp = jnp.zeros((kh * kw, cin_p, cout_p), jnp.float32)
    wp = wp.at[:, :cin, :cout].set(
        w.reshape(kh * kw, cin, cout).astype(jnp.float32))
    return wp.astype(jnp.bfloat16)


def _vmem_limit_bytes(required):
    """Generation-aware VMEM limit derived from actual buffer sizes."""
    phys = 64 * 1024 * 1024          # assume the tightest generation (v7x) if unknown
    try:
        phys = int(pltpu.get_tpu_info().vmem_capacity_bytes)
    except Exception:
        pass
    cap = phys * 3 // 4              # leave double-buffer / compiler headroom
    want = int(required * 5 // 4) + (4 << 20)
    return max(32 << 20, min(want, cap))


def double_conv(x_nchw, params, ks=3, max_pool=None):
    """Forward of DoubleConv(in_channels, out_channels, ks, max_pool), training-mode BN."""
    x = jnp.asarray(x_nchw, jnp.float32)
    N, Cin, H, W = x.shape
    Cout = params["w1"].shape[-1]
    HO1, WO1 = H - ks + 1, W - ks + 1
    HO2, WO2 = HO1 - ks + 1, WO1 - ks + 1
    assert HO2 > 0 and WO2 > 0, "input spatially too small for two valid convs"

    CP = _round_up(Cin, LANE)          # lane-dense input channels
    COP = _round_up(Cout, LANE)        # lane-dense output channels
    M1, M2 = HO1 * W, HO2 * W          # flat rows per sample (stage 1 / stage 2)
    XROWS = H * W + ks - 1             # + overrun rows for the shifted slabs
    Y1ROWS = _round_up(M1 + ks - 1, 16)  # bf16-sublane-aligned tail stores
    cnt1 = float(N * HO1 * WO1)        # BN-1 population size per channel
    cnt2 = float(N * HO2 * WO2)

    # ---- glue: channels-last, flatten spatial, zero-pad rows & channels, bf16 ----
    # TODO(synk): for tiny Cin, skip padding to 128 lanes (pack ks*ks taps into the
    # matmul K dim) and fuse this relayout into the kernel's input DMA.
    x_flat = jnp.zeros((N, XROWS, CP), jnp.bfloat16)
    x_flat = x_flat.at[:, :H * W, :Cin].set(
        jnp.transpose(x, (0, 2, 3, 1)).reshape(N, H * W, Cin).astype(jnp.bfloat16))

    w1p = _pad_weights(params["w1"], CP, COP)
    w2p = _pad_weights(params["w2"], COP, COP)
    p1 = jnp.zeros((3, COP), jnp.float32)
    p1 = p1.at[0, :Cout].set(params["b1"].astype(jnp.float32))
    p1 = p1.at[1, :Cout].set(params["g1"].astype(jnp.float32))
    p1 = p1.at[2, :Cout].set(params["beta1"].astype(jnp.float32))
    b2p = jnp.zeros((1, COP), jnp.float32).at[0, :Cout].set(
        params["b2"].astype(jnp.float32))

    kernel = functools.partial(
        _double_conv_kernel, ks=ks, W=W, M1=M1, M2=M2, WO1=WO1, WO2=WO2,
        y1rows=Y1ROWS, cnt1=cnt1, cop=COP)

    # VMEM budget: double-buffered blocks + persistent scratch.
    blk_bytes = 2 * (XROWS * CP * 2 + ks * ks * CP * COP * 2 + 3 * COP * 4
                     + ks * ks * COP * COP * 2 + COP * 4
                     + M2 * COP * 4 + 2 * COP * 4)
    scratch_bytes = (N * Y1ROWS * COP * 2 + 2 * COP * 4
                     + ks * ks * COP * COP * 2 + COP * 4)
    vmem_limit = _vmem_limit_bytes(blk_bytes + scratch_bytes)

    # grid = (phase, batch).  Global BN statistics serialize both axes -> "arbitrary".
    # TODO(synk): row-tile the spatial axis (ks-1 halo) so VMEM scratch is O(tile)
    # instead of O(N*H*W), and shard the batch axis across v7x's two TensorCores
    # with a cross-core stats reduction.
    out_flat, s2 = pl.pallas_call(
        kernel,
        grid=(2, N),
        in_specs=[
            # x is only read in phase 0; in phase 1 park the block index on the
            # last-fetched sample so it is never re-DMA'd.
            pl.BlockSpec((1, XROWS, CP),
                         lambda p, n: (jnp.where(p == 0, n, N - 1), 0, 0)),
            pl.BlockSpec((ks * ks, CP, COP), lambda p, n: (0, 0, 0)),
            pl.BlockSpec((3, COP), lambda p, n: (0, 0)),
            pl.BlockSpec((ks * ks, COP, COP), lambda p, n: (0, 0, 0)),
            pl.BlockSpec((1, COP), lambda p, n: (0, 0)),
        ],
        out_specs=[
            # Written only in phase 1; keep the block index constant before that
            # so every output block is visited in one contiguous run.
            pl.BlockSpec((1, M2, COP),
                         lambda p, n: (jnp.where(p == 0, 0, n), 0, 0)),
            pl.BlockSpec((2, COP), lambda p, n: (0, 0)),
        ],
        out_shape=(
            jax.ShapeDtypeStruct((N, M2, COP), jnp.float32),
            jax.ShapeDtypeStruct((2, COP), jnp.float32),
        ),
        scratch_shapes=[
            pltpu.VMEM((N, Y1ROWS, COP), jnp.bfloat16),     # stage-1 pre-BN acts
            pltpu.VMEM((2, COP), jnp.float32),              # BN-1 [sum; sumsq]
            pltpu.VMEM((ks * ks, COP, COP), jnp.bfloat16),  # BN1-folded w2
            pltpu.VMEM((1, COP), jnp.float32),              # BN1-folded b2
        ],
        compiler_params=pltpu.CompilerParams(
            dimension_semantics=("arbitrary", "arbitrary"),
            vmem_limit_bytes=vmem_limit,
        ),
    )(x_flat, w1p, p1, w2p, b2p)

    # ---- epilogue (plain XLA): BN-2 affine fused into the crop/transpose ----
    mean2 = s2[0, :Cout] / cnt2
    var2 = jnp.maximum(s2[1, :Cout] / cnt2 - mean2 * mean2, 0.0)
    scale2 = params["g2"].astype(jnp.float32) * jax.lax.rsqrt(var2 + BN_EPS)
    shift2 = params["beta2"].astype(jnp.float32) - mean2 * scale2
    y = out_flat.reshape(N, HO2, W, COP)[:, :, :WO2, :Cout]
    y = y * scale2 + shift2
    y = jnp.transpose(y, (0, 3, 1, 2))

    if max_pool:
        # TODO(synk): MaxPool2d(max_pool) is plain-XLA glue, not fused into the kernel.
        y = jax.lax.reduce_window(
            y, -jnp.inf, jax.lax.max,
            window_dimensions=(1, 1, max_pool, max_pool),
            window_strides=(1, 1, max_pool, max_pool),
            padding="VALID")
    return y


# ---------------- pure-JAX f32 reference (for correctness check) ----------------
def _reference_double_conv(x_nchw, params, ks=3):
    def single(x, w, b, g, beta):
        y = jax.lax.conv_general_dilated(
            x, w, window_strides=(1, 1), padding="VALID",
            dimension_numbers=("NCHW", "HWIO", "NCHW"))
        y = y + b.reshape(1, -1, 1, 1)
        y = jnp.maximum(y, 0.0)
        mean = jnp.mean(y, axis=(0, 2, 3), keepdims=True)
        var = jnp.mean((y - mean) ** 2, axis=(0, 2, 3), keepdims=True)
        y_hat = (y - mean) * jax.lax.rsqrt(var + BN_EPS)
        return y_hat * g.reshape(1, -1, 1, 1) + beta.reshape(1, -1, 1, 1)

    y = single(x_nchw, params["w1"], params["b1"], params["g1"], params["beta1"])
    y = single(y, params["w2"], params["b2"], params["g2"], params["beta2"])
    return y


if __name__ == "__main__":
    key = jax.random.PRNGKey(0)
    kx, k1, k2, k3, k4 = jax.random.split(key, 5)

    N, Cin, H, W = 2, 4, 16, 16
    Cout = 8
    ks = 3

    x = jax.random.normal(kx, (N, Cin, H, W), dtype=jnp.float32)

    # Deterministic synthetic parameters (shapes per nn.Conv2d / nn.BatchNorm2d).
    params = dict(
        w1=0.1 * jax.random.normal(k1, (ks, ks, Cin, Cout), dtype=jnp.float32),
        b1=0.1 * jax.random.normal(k2, (Cout,), dtype=jnp.float32),
        g1=jnp.ones((Cout,), jnp.float32),
        beta1=jnp.zeros((Cout,), jnp.float32),
        w2=0.1 * jax.random.normal(k3, (ks, ks, Cout, Cout), dtype=jnp.float32),
        b2=0.1 * jax.random.normal(k4, (Cout,), dtype=jnp.float32),
        g2=jnp.ones((Cout,), jnp.float32),
        beta2=jnp.zeros((Cout,), jnp.float32),
    )

    fwd = jax.jit(functools.partial(double_conv, ks=ks, max_pool=None))
    out = jax.block_until_ready(fwd(x, params))

    expected_shape = (N, Cout, H - 2 * (ks - 1), W - 2 * (ks - 1))  # (2, 8, 12, 12)
    assert out.shape == expected_shape, (out.shape, expected_shape)

    ref = _reference_double_conv(x, params, ks=ks)
    err = jnp.abs(out - ref)
    max_err = float(jnp.max(err))
    mean_err = float(jnp.mean(err))
    # bf16 MXU path vs. an f32 reference: the two BatchNorms rescale activations to
    # unit variance, so the ~2^-9 relative matmul rounding shows up as a few 1e-2
    # of absolute error; real algorithmic bugs produce O(1) errors.
    assert max_err < 1.5e-1, f"max abs error {max_err}"
    assert mean_err < 3e-2, f"mean abs error {mean_err}"

    print("KERNEL_OK")
</pallas_src>

<mosaic_0001>
module attributes {stable_mosaic.version = 11 : i64} {
  func.func @_double_conv_kernel(%arg0: i32, %arg1: i32, %arg2: memref<1x258x128xbf16, #tpu.memory_space<vmem>>, %arg3: memref<9x128x128xbf16, #tpu.memory_space<vmem>>, %arg4: memref<3x128xf32, #tpu.memory_space<vmem>>, %arg5: memref<9x128x128xbf16, #tpu.memory_space<vmem>>, %arg6: memref<1x128xf32, #tpu.memory_space<vmem>>, %arg7: memref<1x192x128xf32, #tpu.memory_space<vmem>>, %arg8: memref<2x128xf32, #tpu.memory_space<vmem>>, %arg9: memref<2x240x128xbf16, #tpu.memory_space<vmem>>, %arg10: memref<2x128xf32, #tpu.memory_space<vmem>>, %arg11: memref<9x128x128xbf16, #tpu.memory_space<vmem>>, %arg12: memref<1x128xf32, #tpu.memory_space<vmem>>) attributes {dimension_semantics = [#tpu.dimension_semantics<arbitrary>, #tpu.dimension_semantics<arbitrary>], iteration_bounds = array<i64: 2, 2>, scalar_prefetch = 0 : i64, scratch_operands = 4 : i64, tpu.core_type = #tpu.core_type<tc>, window_params = [{transform_indices = @transform_0, window_bounds = array<i64: 1, 258, 128>}, {pipeline_mode = #tpu.pipeline_mode<synchronous>, transform_indices = @transform_1, window_bounds = array<i64: 9, 128, 128>}, {pipeline_mode = #tpu.pipeline_mode<synchronous>, transform_indices = @transform_2, window_bounds = array<i64: 3, 128>}, {pipeline_mode = #tpu.pipeline_mode<synchronous>, transform_indices = @transform_3, window_bounds = array<i64: 9, 128, 128>}, {pipeline_mode = #tpu.pipeline_mode<synchronous>, transform_indices = @transform_4, window_bounds = array<i64: 1, 128>}, {transform_indices = @transform_5, window_bounds = array<i64: 1, 192, 128>}, {pipeline_mode = #tpu.pipeline_mode<synchronous>, transform_indices = @transform_6, window_bounds = array<i64: 2, 128>}]} {
    %c0_i32 = arith.constant 0 : i32
    %0 = arith.cmpi eq, %arg0, %c0_i32 : i32
    %1 = arith.extui %0 : i1 to i32
    %c0_i32_0 = arith.constant 0 : i32
    %2 = arith.cmpi ne, %1, %c0_i32_0 : i32
    scf.if %2 {
      %c0_i32_2 = arith.constant 0 : i32
      %6 = arith.cmpi eq, %arg1, %c0_i32_2 : i32
      %7 = arith.extui %6 : i1 to i32
      %c0_i32_3 = arith.constant 0 : i32
      %8 = arith.cmpi ne, %7, %c0_i32_3 : i32
      scf.if %8 {
        %cst_75 = arith.constant 0.000000e+00 : f32
        %113 = vector.broadcast %cst_75 : f32 to vector<2x128xf32>
        %c0_76 = arith.constant 0 : index
        %c0_77 = arith.constant 0 : index
        %114 = vector.load %arg10[%c0_76, %c0_77] : memref<2x128xf32, #tpu.memory_space<vmem>>, vector<2x128xf32>
        tpu.vector_store %arg10[%c0_76, %c0_77], %113 {strides = array<i32>} : memref<2x128xf32, #tpu.memory_space<vmem>>, vector<2x128xf32>,
      } else {
      }
      %c0 = arith.constant 0 : index
      %c0_4 = arith.constant 0 : index
      %9 = vector.load %arg4[%c0, %c0_4] : memref<3x128xf32, #tpu.memory_space<vmem>>, vector<1x128xf32>
      %cst = arith.constant 0.000000e+00 : f32
      %10 = vector.broadcast %cst : f32 to vector<224x128xf32>
      %c0_5 = arith.constant 0 : index
      %c0_6 = arith.constant 0 : index
      %c0_7 = arith.constant 0 : index
      %11 = vector.load %arg2[%c0_5, %c0_6, %c0_7] : memref<1x258x128xbf16, #tpu.memory_space<vmem>>, vector<1x224x128xbf16>
      %12 = vector.shape_cast %11 : vector<1x224x128xbf16> to vector<224x128xbf16>
      %c0_8 = arith.constant 0 : index
      %c0_9 = arith.constant 0 : index
      %c0_10 = arith.constant 0 : index
      %13 = vector.load %arg3[%c0_8, %c0_9, %c0_10] : memref<9x128x128xbf16, #tpu.memory_space<vmem>>, vector<1x128x128xbf16>
      %14 = vector.shape_cast %13 : vector<1x128x128xbf16> to vector<128x128xbf16>
      %cst_11 = arith.constant dense<0.000000e+00> : vector<224x128xf32>
      %15 = tpu.matmul %12, %14, %cst_11 {dimension_numbers = #tpu.dot_dimension_numbers<[1], [0], [0], [1], [0, 0, 1, 1], [], []>} : vector<224x128xbf16>, vector<128x128xbf16>, vector<224x128xf32> -> vector<224x128xf32>
      %16 = arith.addf %10, %15 : vector<224x128xf32>
      %c0_12 = arith.constant 0 : index
      %c1 = arith.constant 1 : index
      %c0_13 = arith.constant 0 : index
      %17 = vector.load %arg2[%c0_12, %c1, %c0_13] : memref<1x258x128xbf16, #tpu.memory_space<vmem>>, vector<1x224x128xbf16>
      %18 = vector.shape_cast %17 : vector<1x224x128xbf16> to vector<224x128xbf16>
      %c1_14 = arith.constant 1 : index
      %c0_15 = arith.constant 0 : index
      %c0_16 = arith.constant 0 : index
      %19 = vector.load %arg3[%c1_14, %c0_15, %c0_16] : memref<9x128x128xbf16, #tpu.memory_space<vmem>>, vector<1x128x128xbf16>
      %20 = vector.shape_cast %19 : vector<1x128x128xbf16> to vector<128x128xbf16>
      %cst_17 = arith.constant dense<0.000000e+00> : vector<224x128xf32>
      %21 = tpu.matmul %18, %20, %cst_17 {dimension_numbers = #tpu.dot_dimension_numbers<[1], [0], [0], [1], [0, 0, 1, 1], [], []>} : vector<224x128xbf16>, vector<128x128xbf16>, vector<224x128xf32> -> vector<224x128xf32>
      %22 = arith.addf %16, %21 : vector<224x128xf32>
      %c0_18 = arith.constant 0 : index
      %c2 = arith.constant 2 : index
      %c0_19 = arith.constant 0 : index
      %23 = vector.load %arg2[%c0_18, %c2, %c0_19] : memref<1x258x128xbf16, #tpu.memory_space<vmem>>, vector<1x224x128xbf16>
      %24 = vector.shape_cast %23 : vector<1x224x128xbf16> to vector<224x128xbf16>
      %c2_20 = arith.constant 2 : index
      %c0_21 = arith.constant 0 : index
      %c0_22 = arith.constant 0 : index
      %25 = vector.load %arg3[%c2_20, %c0_21, %c0_22] : memref<9x128x128xbf16, #tpu.memory_space<vmem>>, vector<1x128x128xbf16>
      %26 = vector.shape_cast %25 : vector<1x128x128xbf16> to vector<128x128xbf16>
      %cst_23 = arith.constant dense<0.000000e+00> : vector<224x128xf32>
      %27 = tpu.matmul %24, %26, %cst_23 {dimension_numbers = #tpu.dot_dimension_numbers<[1], [0], [0], [1], [0, 0, 1, 1], [], []>} : vector<224x128xbf16>, vector<128x128xbf16>, vector<224x128xf32> -> vector<224x128xf32>
      %28 = arith.addf %22, %27 : vector<224x128xf32>
      %c0_24 = arith.constant 0 : index
      %c16 = arith.constant 16 : index
      %c0_25 = arith.constant 0 : index
      %29 = vector.load %arg2[%c0_24, %c16, %c0_25] : memref<1x258x128xbf16, #tpu.memory_space<vmem>>, vector<1x224x128xbf16>
      %30 = vector.shape_cast %29 : vector<1x224x128xbf16> to vector<224x128xbf16>
      %c3 = arith.constant 3 : index
      %c0_26 = arith.constant 0 : index
      %c0_27 = arith.constant 0 : index
      %31 = vector.load %arg3[%c3, %c0_26, %c0_27] : memref<9x128x128xbf16, #tpu.memory_space<vmem>>, vector<1x128x128xbf16>
      %32 = vector.shape_cast %31 : vector<1x128x128xbf16> to vector<128x128xbf16>
      %cst_28 = arith.constant dense<0.000000e+00> : vector<224x128xf32>
      %33 = tpu.matmul %30, %32, %cst_28 {dimension_numbers = #tpu.dot_dimension_numbers<[1], [0], [0], [1], [0, 0, 1, 1], [], []>} : vector<224x128xbf16>, vector<128x128xbf16>, vector<224x128xf32> -> vector<224x128xf32>
      %34 = arith.addf %28, %33 : vector<224x128xf32>
      %c0_29 = arith.constant 0 : index
      %c17 = arith.constant 17 : index
      %c0_30 = arith.constant 0 : index
      %35 = vector.load %arg2[%c0_29, %c17, %c0_30] : memref<1x258x128xbf16, #tpu.memory_space<vmem>>, vector<1x224x128xbf16>
      %36 = vector.shape_cast %35 : vector<1x224x128xbf16> to vector<224x128xbf16>
      %c4 = arith.constant 4 : index
      %c0_31 = arith.constant 0 : index
      %c0_32 = arith.constant 0 : index
      %37 = vector.load %arg3[%c4, %c0_31, %c0_32] : memref<9x128x128xbf16, #tpu.memory_space<vmem>>, vector<1x128x128xbf16>
      %38 = vector.shape_cast %37 : vector<1x128x128xbf16> to vector<128x128xbf16>
      %cst_33 = arith.constant dense<0.000000e+00> : vector<224x128xf32>
      %39 = tpu.matmul %36, %38, %cst_33 {dimension_numbers = #tpu.dot_dimension_numbers<[1], [0], [0], [1], [0, 0, 1, 1], [], []>} : vector<224x128xbf16>, vector<128x128xbf16>, vector<224x128xf32> -> vector<224x128xf32>
      %40 = arith.addf %34, %39 : vector<224x128xf32>
      %c0_34 = arith.constant 0 : index
      %c18 = arith.constant 18 : index
      %c0_35 = arith.constant 0 : index
      %41 = vector.load %arg2[%c0_34, %c18, %c0_35] : memref<1x258x128xbf16, #tpu.memory_space<vmem>>, vector<1x224x128xbf16>
      %42 = vector.shape_cast %41 : vector<1x224x128xbf16> to vector<224x128xbf16>
      %c5 = arith.constant 5 : index
      %c0_36 = arith.constant 0 : index
      %c0_37 = arith.constant 0 : index
      %43 = vector.load %arg3[%c5, %c0_36, %c0_37] : memref<9x128x128xbf16, #tpu.memory_space<vmem>>, vector<1x128x128xbf16>
      %44 = vector.shape_cast %43 : vector<1x128x128xbf16> to vector<128x128xbf16>
      %cst_38 = arith.constant dense<0.000000e+00> : vector<224x128xf32>
      %45 = tpu.matmul %42, %44, %cst_38 {dimension_numbers = #tpu.dot_dimension_numbers<[1], [0], [0], [1], [0, 0, 1, 1], [], []>} : vector<224x128xbf16>, vector<128x128xbf16>, vector<224x128xf32> -> vector<224x128xf32>
      %46 = arith.addf %40, %45 : vector<224x128xf32>
      %c0_39 = arith.constant 0 : index
      %c32 = arith.constant 32 : index
      %c0_40 = arith.constant 0 : index
      %47 = vector.load %arg2[%c0_39, %c32, %c0_40] : memref<1x258x128xbf16, #tpu.memory_space<vmem>>, vector<1x224x128xbf16>
      %48 = vector.shape_cast %47 : vector<1x224x128xbf16> to vector<224x128xbf16>
      %c6 = arith.constant 6 : index
      %c0_41 = arith.constant 0 : index
      %c0_42 = arith.constant 0 : index
      %49 = vector.load %arg3[%c6, %c0_41, %c0_42] : memref<9x128x128xbf16, #tpu.memory_space<vmem>>, vector<1x128x128xbf16>
      %50 = vector.shape_cast %49 : vector<1x128x128xbf16> to vector<128x128xbf16>
      %cst_43 = arith.constant dense<0.000000e+00> : vector<224x128xf32>
      %51 = tpu.matmul %48, %50, %cst_43 {dimension_numbers = #tpu.dot_dimension_numbers<[1], [0], [0], [1], [0, 0, 1, 1], [], []>} : vector<224x128xbf16>, vector<128x128xbf16>, vector<224x128xf32> -> vector<224x128xf32>
      %52 = arith.addf %46, %51 : vector<224x128xf32>
      %c0_44 = arith.constant 0 : index
      %c33 = arith.constant 33 : index
      %c0_45 = arith.constant 0 : index
      %53 = vector.load %arg2[%c0_44, %c33, %c0_45] : memref<1x258x128xbf16, #tpu.memory_space<vmem>>, vector<1x224x128xbf16>
      %54 = vector.shape_cast %53 : vector<1x224x128xbf16> to vector<224x128xbf16>
      %c7 = arith.constant 7 : index
      %c0_46 = arith.constant 0 : index
      %c0_47 = arith.constant 0 : index
      %55 = vector.load %arg3[%c7, %c0_46, %c0_47] : memref<9x128x128xbf16, #tpu.memory_space<vmem>>, vector<1x128x128xbf16>
      %56 = vector.shape_cast %55 : vector<1x128x128xbf16> to vector<128x128xbf16>
      %cst_48 = arith.constant dense<0.000000e+00> : vector<224x128xf32>
      %57 = tpu.matmul %54, %56, %cst_48 {dimension_numbers = #tpu.dot_dimension_numbers<[1], [0], [0], [1], [0, 0, 1, 1], [], []>} : vector<224x128xbf16>, vector<128x128xbf16>, vector<224x128xf32> -> vector<224x128xf32>
      %58 = arith.addf %52, %57 : vector<224x128xf32>
      %c0_49 = arith.constant 0 : index
      %c34 = arith.constant 34 : index
      %c0_50 = arith.constant 0 : index
      %59 = vector.load %arg2[%c0_49, %c34, %c0_50] : memref<1x258x128xbf16, #tpu.memory_space<vmem>>, vector<1x224x128xbf16>
      %60 = vector.shape_cast %59 : vector<1x224x128xbf16> to vector<224x128xbf16>
      %c8 = arith.constant 8 : index
      %c0_51 = arith.constant 0 : index
      %c0_52 = arith.constant 0 : index
      %61 = vector.load %arg3[%c8, %c0_51, %c0_52] : memref<9x128x128xbf16, #tpu.memory_space<vmem>>, vector<1x128x128xbf16>
      %62 = vector.shape_cast %61 : vector<1x128x128xbf16> to vector<128x128xbf16>
      %cst_53 = arith.constant dense<0.000000e+00> : vector<224x128xf32>
      %63 = tpu.matmul %60, %62, %cst_53 {dimension_numbers = #tpu.dot_dimension_numbers<[1], [0], [0], [1], [0, 0, 1, 1], [], []>} : vector<224x128xbf16>, vector<128x128xbf16>, vector<224x128xf32> -> vector<224x128xf32>
      %64 = arith.addf %58, %63 : vector<224x128xf32>
      %65 = vector.broadcast %9 : vector<1x128xf32> to vector<224x128xf32>
      %66 = arith.addf %64, %65 : vector<224x128xf32>
      %cst_54 = arith.constant 0.000000e+00 : f32
      %67 = vector.broadcast %cst_54 : f32 to vector<224x128xf32>
      %68 = arith.maximumf %66, %67 : vector<224x128xf32>
      %69 = arith.truncf %68 : vector<224x128xf32> to vector<224x128xbf16>
      %70 = arith.index_cast %arg1 : i32 to index
      %c0_55 = arith.constant 0 : index
      %c0_56 = arith.constant 0 : index
      %71 = vector.load %arg9[%70, %c0_55, %c0_56] : memref<2x240x128xbf16, #tpu.memory_space<vmem>>, vector<1x224x128xbf16>
      %72 = vector.shape_cast %71 : vector<1x224x128xbf16> to vector<224x128xbf16>
      %73 = vector.shape_cast %69 : vector<224x128xbf16> to vector<1x224x128xbf16>
      tpu.vector_store %arg9[%70, %c0_55, %c0_56], %73 {strides = array<i32>} : memref<2x240x128xbf16, #tpu.memory_space<vmem>>, vector<1x224x128xbf16>,
      %cst_57 = arith.constant 0.000000e+00 : bf16
      %74 = vector.broadcast %cst_57 : bf16 to vector<16x128xbf16>
      %75 = arith.index_cast %arg1 : i32 to index
      %c224 = arith.constant 224 : index
      %c0_58 = arith.constant 0 : index
      %76 = vector.load %arg9[%75, %c224, %c0_58] : memref<2x240x128xbf16, #tpu.memory_space<vmem>>, vector<1x16x128xbf16>
      %77 = vector.shape_cast %76 : vector<1x16x128xbf16> to vector<16x128xbf16>
      %78 = vector.shape_cast %74 : vector<16x128xbf16> to vector<1x16x128xbf16>
      tpu.vector_store %arg9[%75, %c224, %c0_58], %78 {strides = array<i32>} : memref<2x240x128xbf16, #tpu.memory_space<vmem>>, vector<1x16x128xbf16>,
      %79 = tpu.iota {dimensions = array<i32: 0>} : vector<224x1xi32>
      %c16_i32 = arith.constant 16 : i32
      %c0_i32_59 = arith.constant 0 : i32
      %80 = arith.cmpi eq, %c16_i32, %c0_i32_59 : i32
      %c1_i32_60 = arith.constant 1 : i32
      %81 = arith.select %80, %c1_i32_60, %c16_i32 : i32
      %82 = vector.broadcast %81 : i32 to vector<224x1xi32>
      %83 = arith.remsi %79, %82 : vector<224x1xi32>
      %c0_i32_61 = arith.constant 0 : i32
      %84 = vector.broadcast %c0_i32_61 : i32 to vector<224x1xi32>
      %85 = arith.cmpi ne, %83, %84 : vector<224x1xi32>
      %c0_i32_62 = arith.constant 0 : i32
      %86 = vector.broadcast %c0_i32_62 : i32 to vector<224x1xi32>
      %87 = arith.cmpi slt, %83, %86 : vector<224x1xi32>
      %c0_i32_63 = arith.constant 0 : i32
      %88 = arith.cmpi slt, %81, %c0_i32_63 : i32
      %89 = vector.broadcast %88 : i1 to vector<224x1xi1>
      %90 = vector.broadcast %89 : vector<224x1xi1> to vector<224x1xi1>
      %91 = arith.xori %87, %90 : vector<224x1xi1>
      %92 = arith.andi %91, %85 : vector<224x1xi1>
      %93 = vector.broadcast %81 : i32 to vector<224x1xi32>
      %94 = arith.addi %83, %93 : vector<224x1xi32>
      %95 = arith.select %92, %94, %83 : vector<224x1xi1>, vector<224x1xi32>
      %c14_i32 = arith.constant 14 : i32
      %96 = vector.broadcast %c14_i32 : i32 to vector<224x1xi32>
      %97 = arith.cmpi slt, %95, %96 : vector<224x1xi32>
      %cst_64 = arith.constant 0.000000e+00 : f32
      %98 = vector.shape_cast %97 : vector<224x1xi1> to vector<224x1xi1>
      %99 = vector.broadcast %98 : vector<224x1xi1> to vector<224x128xi1>
      %100 = vector.broadcast %cst_64 : f32 to vector<224x128xf32>
      %101 = arith.select %99, %68, %100 : vector<224x128xi1>, vector<224x128xf32>
      %c0_65 = arith.constant 0 : index
      %c0_66 = arith.constant 0 : index
      %102 = vector.load %arg10[%c0_65, %c0_66] : memref<2x128xf32, #tpu.memory_space<vmem>>, vector<1x128xf32>
      %cst_67 = arith.constant dense<0.000000e+00> : vector<128xf32>
      %103 = vector.multi_reduction <add>, %101, %cst_67 [0] : vector<224x128xf32> to vector<128xf32>
      %104 = vector.shape_cast %103 : vector<128xf32> to vector<1x128xf32>
      %105 = arith.addf %102, %104 : vector<1x128xf32>
      %c0_68 = arith.constant 0 : index
      %c0_69 = arith.constant 0 : index
      %106 = vector.load %arg10[%c0_68, %c0_69] : memref<2x128xf32, #tpu.memory_space<vmem>>, vector<1x128xf32>
      tpu.vector_store %arg10[%c0_68, %c0_69], %105 {strides = array<i32>} : memref<2x128xf32, #tpu.memory_space<vmem>>, vector<1x128xf32>,
      %c1_70 = arith.constant 1 : index
      %c0_71 = arith.constant 0 : index
      %107 = vector.load %arg10[%c1_70, %c0_71] : memref<2x128xf32, #tpu.memory_space<vmem>>, vector<1x128xf32>
      %108 = arith.mulf %101, %101 : vector<224x128xf32>
      %cst_72 = arith.constant dense<0.000000e+00> : vector<128xf32>
      %109 = vector.multi_reduction <add>, %108, %cst_72 [0] : vector<224x128xf32> to vector<128xf32>
      %110 = vector.shape_cast %109 : vector<128xf32> to vector<1x128xf32>
      %111 = arith.addf %107, %110 : vector<1x128xf32>
      %c1_73 = arith.constant 1 : index
      %c0_74 = arith.constant 0 : index
      %112 = vector.load %arg10[%c1_73, %c0_74] : memref<2x128xf32, #tpu.memory_space<vmem>>, vector<1x128xf32>
      tpu.vector_store %arg10[%c1_73, %c0_74], %111 {strides = array<i32>} : memref<2x128xf32, #tpu.memory_space<vmem>>, vector<1x128xf32>,
    } else {
    }
    %c1_i32 = arith.constant 1 : i32
    %3 = arith.cmpi eq, %arg0, %c1_i32 : i32
    %4 = arith.extui %3 : i1 to i32
    %c0_i32_1 = arith.constant 0 : i32
    %5 = arith.cmpi ne, %4, %c0_i32_1 : i32
    scf.if %5 {
      %c0_i32_2 = arith.constant 0 : i32
      %6 = arith.cmpi eq, %arg1, %c0_i32_2 : i32
      %7 = arith.extui %6 : i1 to i32
      %c0_i32_3 = arith.constant 0 : i32
      %8 = arith.cmpi ne, %7, %c0_i32_3 : i32
      scf.if %8 {
        %cst_65 = arith.constant 0.000000e+00 : f32
        %115 = vector.broadcast %cst_65 : f32 to vector<2x128xf32>
        %c0_66 = arith.constant 0 : index
        %c0_67 = arith.constant 0 : index
        %116 = vector.load %arg8[%c0_66, %c0_67] : memref<2x128xf32, #tpu.memory_space<vmem>>, vector<2x128xf32>
        tpu.vector_store %arg8[%c0_66, %c0_67], %115 {strides = array<i32>} : memref<2x128xf32, #tpu.memory_space<vmem>>, vector<2x128xf32>,
        %c0_68 = arith.constant 0 : index
        %c0_69 = arith.constant 0 : index
        %117 = vector.load %arg10[%c0_68, %c0_69] : memref<2x128xf32, #tpu.memory_space<vmem>>, vector<1x128xf32>
        %cst_70 = arith.constant 0.00255102036 : f32
        %118 = vector.broadcast %cst_70 : f32 to vector<1x128xf32>
        %119 = arith.mulf %117, %118 : vector<1x128xf32>
        %c1_71 = arith.constant 1 : index
        %c0_72 = arith.constant 0 : index
        %120 = vector.load %arg10[%c1_71, %c0_72] : memref<2x128xf32, #tpu.memory_space<vmem>>, vector<1x128xf32>
        %cst_73 = arith.constant 0.00255102036 : f32
        %121 = vector.broadcast %cst_73 : f32 to vector<1x128xf32>
        %122 = arith.mulf %120, %121 : vector<1x128xf32>
        %123 = arith.mulf %119, %119 : vector<1x128xf32>
        %124 = arith.subf %122, %123 : vector<1x128xf32>
        %cst_74 = arith.constant 0.000000e+00 : f32
        %125 = vector.broadcast %cst_74 : f32 to vector<1x128xf32>
        %126 = arith.maximumf %124, %125 : vector<1x128xf32>
        %c1_75 = arith.constant 1 : index
        %c0_76 = arith.constant 0 : index
        %127 = vector.load %arg4[%c1_75, %c0_76] : memref<3x128xf32, #tpu.memory_space<vmem>>, vector<1x128xf32>
        %cst_77 = arith.constant 9.99999974E-6 : f32
        %128 = vector.broadcast %cst_77 : f32 to vector<1x128xf32>
        %129 = arith.addf %126, %128 : vector<1x128xf32>
        %130 = math.rsqrt %129 : vector<1x128xf32>
        %131 = arith.mulf %127, %130 : vector<1x128xf32>
        %c2_78 = arith.constant 2 : index
        %c0_79 = arith.constant 0 : index
        %132 = vector.load %arg4[%c2_78, %c0_79] : memref<3x128xf32, #tpu.memory_space<vmem>>, vector<1x128xf32>
        %133 = arith.mulf %119, %131 : vector<1x128xf32>
        %134 = arith.subf %132, %133 : vector<1x128xf32>
        %135 = tpu.iota {dimensions = array<i32: 0>} : vector<128x128xi32>
        %136 = tpu.iota {dimensions = array<i32: 1>} : vector<128x128xi32>
        %137 = arith.cmpi eq, %135, %136 : vector<128x128xi32>
        %138 = vector.shape_cast %131 : vector<1x128xf32> to vector<1x128xf32>
        %139 = vector.broadcast %138 : vector<1x128xf32> to vector<128x128xf32>
        %cst_80 = arith.constant 0.000000e+00 : f32
        %140 = vector.broadcast %cst_80 : f32 to vector<128x128xf32>
        %141 = arith.select %137, %139, %140 : vector<128x128xi1>, vector<128x128xf32>
        %c0_81 = arith.constant 0 : index
        %c0_82 = arith.constant 0 : index
        %142 = vector.load %arg6[%c0_81, %c0_82] : memref<1x128xf32, #tpu.memory_space<vmem>>, vector<1x128xf32>
        %c0_83 = arith.constant 0 : index
        %c0_84 = arith.constant 0 : index
        %c0_85 = arith.constant 0 : index
        %143 = vector.load %arg5[%c0_83, %c0_84, %c0_85] : memref<9x128x128xbf16, #tpu.memory_space<vmem>>, vector<1x128x128xbf16>
        %144 = vector.shape_cast %143 : vector<1x128x128xbf16> to vector<128x128xbf16>
        %145 = arith.extf %144 : vector<128x128xbf16> to vector<128x128xf32>
        %cst_86 = arith.constant dense<0.000000e+00> : vector<128x128xf32>
        %146 = tpu.matmul %141, %145, %cst_86 {dimension_numbers = #tpu.dot_dimension_numbers<[1], [0], [0], [1], [0, 0, 1, 1], [], []>} : vector<128x128xf32>, vector<128x128xf32>, vector<128x128xf32> -> vector<128x128xf32>
        %147 = arith.truncf %146 : vector<128x128xf32> to vector<128x128xbf16>
        %c0_87 = arith.constant 0 : index
        %c0_88 = arith.constant 0 : index
        %c0_89 = arith.constant 0 : index
        %148 = vector.load %arg11[%c0_87, %c0_88, %c0_89] : memref<9x128x128xbf16, #tpu.memory_space<vmem>>, vector<1x128x128xbf16>
        %149 = vector.shape_cast %148 : vector<1x128x128xbf16> to vector<128x128xbf16>
        %150 = vector.shape_cast %147 : vector<128x128xbf16> to vector<1x128x128xbf16>
        tpu.vector_store %arg11[%c0_87, %c0_88, %c0_89], %150 {strides = array<i32>} : memref<9x128x128xbf16, #tpu.memory_space<vmem>>, vector<1x128x128xbf16>,
        %cst_90 = arith.constant dense<0.000000e+00> : vector<1x128xf32>
        %151 = tpu.matmul %134, %145, %cst_90 {dimension_numbers = #tpu.dot_dimension_numbers<[1], [0], [0], [1], [0, 0, 1, 1], [], []>} : vector<1x128xf32>, vector<128x128xf32>, vector<1x128xf32> -> vector<1x128xf32>
        %152 = arith.addf %142, %151 : vector<1x128xf32>
        %c1_91 = arith.constant 1 : index
        %c0_92 = arith.constant 0 : index
        %c0_93 = arith.constant 0 : index
        %153 = vector.load %arg5[%c1_91, %c0_92, %c0_93] : memref<9x128x128xbf16, #tpu.memory_space<vmem>>, vector<1x128x128xbf16>
        %154 = vector.shape_cast %153 : vector<1x128x128xbf16> to vector<128x128xbf16>
        %155 = arith.extf %154 : vector<128x128xbf16> to vector<128x128xf32>
        %cst_94 = arith.constant dense<0.000000e+00> : vector<128x128xf32>
        %156 = tpu.matmul %141, %155, %cst_94 {dimension_numbers = #tpu.dot_dimension_numbers<[1], [0], [0], [1], [0, 0, 1, 1], [], []>} : vector<128x128xf32>, vector<128x128xf32>, vector<128x128xf32> -> vector<128x128xf32>
        %157 = arith.truncf %156 : vector<128x128xf32> to vector<128x128xbf16>
        %c1_95 = arith.constant 1 : index
        %c0_96 = arith.constant 0 : index
        %c0_97 = arith.constant 0 : index
        %158 = vector.load %arg11[%c1_95, %c0_96, %c0_97] : memref<9x128x128xbf16, #tpu.memory_space<vmem>>, vector<1x128x128xbf16>
        %159 = vector.shape_cast %158 : vector<1x128x128xbf16> to vector<128x128xbf16>
        %160 = vector.shape_cast %157 : vector<128x128xbf16> to vector<1x128x128xbf16>
        tpu.vector_store %arg11[%c1_95, %c0_96, %c0_97], %160 {strides = array<i32>} : memref<9x128x128xbf16, #tpu.memory_space<vmem>>, vector<1x128x128xbf16>,
        %cst_98 = arith.constant dense<0.000000e+00> : vector<1x128xf32>
        %161 = tpu.matmul %134, %155, %cst_98 {dimension_numbers = #tpu.dot_dimension_numbers<[1], [0], [0], [1], [0, 0, 1, 1], [], []>} : vector<1x128xf32>, vector<128x128xf32>, vector<1x128xf32> -> vector<1x128xf32>
        %162 = arith.addf %152, %161 : vector<1x128xf32>
        %c2_99 = arith.constant 2 : index
        %c0_100 = arith.constant 0 : index
        %c0_101 = arith.constant 0 : index
        %163 = vector.load %arg5[%c2_99, %c0_100, %c0_101] : memref<9x128x128xbf16, #tpu.memory_space<vmem>>, vector<1x128x128xbf16>
        %164 = vector.shape_cast %163 : vector<1x128x128xbf16> to vector<128x128xbf16>
        %165 = arith.extf %164 : vector<128x128xbf16> to vector<128x128xf32>
        %cst_102 = arith.constant dense<0.000000e+00> : vector<128x128xf32>
        %166 = tpu.matmul %141, %165, %cst_102 {dimension_numbers = #tpu.dot_dimension_numbers<[1], [0], [0], [1], [0, 0, 1, 1], [], []>} : vector<128x128xf32>, vector<128x128xf32>, vector<128x128xf32> -> vector<128x128xf32>
        %167 = arith.truncf %166 : vector<128x128xf32> to vector<128x128xbf16>
        %c2_103 = arith.constant 2 : index
        %c0_104 = arith.constant 0 : index
        %c0_105 = arith.constant 0 : index
        %168 = vector.load %arg11[%c2_103, %c0_104, %c0_105] : memref<9x128x128xbf16, #tpu.memory_space<vmem>>, vector<1x128x128xbf16>
        %169 = vector.shape_cast %168 : vector<1x128x128xbf16> to vector<128x128xbf16>
        %170 = vector.shape_cast %167 : vector<128x128xbf16> to vector<1x128x128xbf16>
        tpu.vector_store %arg11[%c2_103, %c0_104, %c0_105], %170 {strides = array<i32>} : memref<9x128x128xbf16, #tpu.memory_space<vmem>>, vector<1x128x128xbf16>,
        %cst_106 = arith.constant dense<0.000000e+00> : vector<1x128xf32>
        %171 = tpu.matmul %134, %165, %cst_106 {dimension_numbers = #tpu.dot_dimension_numbers<[1], [0], [0], [1], [0, 0, 1, 1], [], []>} : vector<1x128xf32>, vector<128x128xf32>, vector<1x128xf32> -> vector<1x128xf32>
        %172 = arith.addf %162, %171 : vector<1x128xf32>
        %c3_107 = arith.constant 3 : index
        %c0_108 = arith.constant 0 : index
        %c0_109 = arith.constant 0 : index
        %173 = vector.load %arg5[%c3_107, %c0_108, %c0_109] : memref<9x128x128xbf16, #tpu.memory_space<vmem>>, vector<1x128x128xbf16>
        %174 = vector.shape_cast %173 : vector<1x128x128xbf16> to vector<128x128xbf16>
        %175 = arith.extf %174 : vector<128x128xbf16> to vector<128x128xf32>
        %cst_110 = arith.constant dense<0.000000e+00> : vector<128x128xf32>
        %176 = tpu.matmul %141, %175, %cst_110 {dimension_numbers = #tpu.dot_dimension_numbers<[1], [0], [0], [1], [0, 0, 1, 1], [], []>} : vector<128x128xf32>, vector<128x128xf32>, vector<128x128xf32> -> vector<128x128xf32>
        %177 = arith.truncf %176 : vector<128x128xf32> to vector<128x128xbf16>
        %c3_111 = arith.constant 3 : index
        %c0_112 = arith.constant 0 : index
        %c0_113 = arith.constant 0 : index
        %178 = vector.load %arg11[%c3_111, %c0_112, %c0_113] : memref<9x128x128xbf16, #tpu.memory_space<vmem>>, vector<1x128x128xbf16>
        %179 = vector.shape_cast %178 : vector<1x128x128xbf16> to vector<128x128xbf16>
        %180 = vector.shape_cast %177 : vector<128x128xbf16> to vector<1x128x128xbf16>
        tpu.vector_store %arg11[%c3_111, %c0_112, %c0_113], %180 {strides = array<i32>} : memref<9x128x128xbf16, #tpu.memory_space<vmem>>, vector<1x128x128xbf16>,
        %cst_114 = arith.constant dense<0.000000e+00> : vector<1x128xf32>
        %181 = tpu.matmul %134, %175, %cst_114 {dimension_numbers = #tpu.dot_dimension_numbers<[1], [0], [0], [1], [0, 0, 1, 1], [], []>} : vector<1x128xf32>, vector<128x128xf32>, vector<1x128xf32> -> vector<1x128xf32>
        %182 = arith.addf %172, %181 : vector<1x128xf32>
        %c4_115 = arith.constant 4 : index
        %c0_116 = arith.constant 0 : index
        %c0_117 = arith.constant 0 : index
        %183 = vector.load %arg5[%c4_115, %c0_116, %c0_117] : memref<9x128x128xbf16, #tpu.memory_space<vmem>>, vector<1x128x128xbf16>
        %184 = vector.shape_cast %183 : vector<1x128x128xbf16> to vector<128x128xbf16>
        %185 = arith.extf %184 : vector<128x128xbf16> to vector<128x128xf32>
        %cst_118 = arith.constant dense<0.000000e+00> : vector<128x128xf32>
        %186 = tpu.matmul %141, %185, %cst_118 {dimension_numbers = #tpu.dot_dimension_numbers<[1], [0], [0], [1], [0, 0, 1, 1], [], []>} : vector<128x128xf32>, vector<128x128xf32>, vector<128x128xf32> -> vector<128x128xf32>
        %187 = arith.truncf %186 : vector<128x128xf32> to vector<128x128xbf16>
        %c4_119 = arith.constant 4 : index
        %c0_120 = arith.constant 0 : index
        %c0_121 = arith.constant 0 : index
        %188 = vector.load %arg11[%c4_119, %c0_120, %c0_121] : memref<9x128x128xbf16, #tpu.memory_space<vmem>>, vector<1x128x128xbf16>
        %189 = vector.shape_cast %188 : vector<1x128x128xbf16> to vector<128x128xbf16>
        %190 = vector.shape_cast %187 : vector<128x128xbf16> to vector<1x128x128xbf16>
        tpu.vector_store %arg11[%c4_119, %c0_120, %c0_121], %190 {strides = array<i32>} : memref<9x128x128xbf16, #tpu.memory_space<vmem>>, vector<1x128x128xbf16>,
        %cst_122 = arith.constant dense<0.000000e+00> : vector<1x128xf32>
        %191 = tpu.matmul %134, %185, %cst_122 {dimension_numbers = #tpu.dot_dimension_numbers<[1], [0], [0], [1], [0, 0, 1, 1], [], []>} : vector<1x128xf32>, vector<128x128xf32>, vector<1x128xf32> -> vector<1x128xf32>
        %192 = arith.addf %182, %191 : vector<1x128xf32>
        %c5_123 = arith.constant 5 : index
        %c0_124 = arith.constant 0 : index
        %c0_125 = arith.constant 0 : index
        %193 = vector.load %arg5[%c5_123, %c0_124, %c0_125] : memref<9x128x128xbf16, #tpu.memory_space<vmem>>, vector<1x128x128xbf16>
        %194 = vector.shape_cast %193 : vector<1x128x128xbf16> to vector<128x128xbf16>
        %195 = arith.extf %194 : vector<128x128xbf16> to vector<128x128xf32>
        %cst_126 = arith.constant dense<0.000000e+00> : vector<128x128xf32>
        %196 = tpu.matmul %141, %195, %cst_126 {dimension_numbers = #tpu.dot_dimension_numbers<[1], [0], [0], [1], [0, 0, 1, 1], [], []>} : vector<128x128xf32>, vector<128x128xf32>, vector<128x128xf32> -> vector<128x128xf32>
        %197 = arith.truncf %196 : vector<128x128xf32> to vector<128x128xbf16>
        %c5_127 = arith.constant 5 : index
        %c0_128 = arith.constant 0 : index
        %c0_129 = arith.constant 0 : index
        %198 = vector.load %arg11[%c5_127, %c0_128, %c0_129] : memref<9x128x128xbf16, #tpu.memory_space<vmem>>, vector<1x128x128xbf16>
        %199 = vector.shape_cast %198 : vector<1x128x128xbf16> to vector<128x128xbf16>
        %200 = vector.shape_cast %197 : vector<128x128xbf16> to vector<1x128x128xbf16>
        tpu.vector_store %arg11[%c5_127, %c0_128, %c0_129], %200 {strides = array<i32>} : memref<9x128x128xbf16, #tpu.memory_space<vmem>>, vector<1x128x128xbf16>,
        %cst_130 = arith.constant dense<0.000000e+00> : vector<1x128xf32>
        %201 = tpu.matmul %134, %195, %cst_130 {dimension_numbers = #tpu.dot_dimension_numbers<[1], [0], [0], [1], [0, 0, 1, 1], [], []>} : vector<1x128xf32>, vector<128x128xf32>, vector<1x128xf32> -> vector<1x128xf32>
        %202 = arith.addf %192, %201 : vector<1x128xf32>
        %c6_131 = arith.constant 6 : index
        %c0_132 = arith.constant 0 : index
        %c0_133 = arith.constant 0 : index
        %203 = vector.load %arg5[%c6_131, %c0_132, %c0_133] : memref<9x128x128xbf16, #tpu.memory_space<vmem>>, vector<1x128x128xbf16>
        %204 = vector.shape_cast %203 : vector<1x128x128xbf16> to vector<128x128xbf16>
        %205 = arith.extf %204 : vector<128x128xbf16> to vector<128x128xf32>
        %cst_134 = arith.constant dense<0.000000e+00> : vector<128x128xf32>
        %206 = tpu.matmul %141, %205, %cst_134 {dimension_numbers = #tpu.dot_dimension_numbers<[1], [0], [0], [1], [0, 0, 1, 1], [], []>} : vector<128x128xf32>, vector<128x128xf32>, vector<128x128xf32> -> vector<128x128xf32>
        %207 = arith.truncf %206 : vector<128x128xf32> to vector<128x128xbf16>
        %c6_135 = arith.constant 6 : index
        %c0_136 = arith.constant 0 : index
        %c0_137 = arith.constant 0 : index
        %208 = vector.load %arg11[%c6_135, %c0_136, %c0_137] : memref<9x128x128xbf16, #tpu.memory_space<vmem>>, vector<1x128x128xbf16>
        %209 = vector.shape_cast %208 : vector<1x128x128xbf16> to vector<128x128xbf16>
        %210 = vector.shape_cast %207 : vector<128x128xbf16> to vector<1x128x128xbf16>
        tpu.vector_store %arg11[%c6_135, %c0_136, %c0_137], %210 {strides = array<i32>} : memref<9x128x128xbf16, #tpu.memory_space<vmem>>, vector<1x128x128xbf16>,
        %cst_138 = arith.constant dense<0.000000e+00> : vector<1x128xf32>
        %211 = tpu.matmul %134, %205, %cst_138 {dimension_numbers = #tpu.dot_dimension_numbers<[1], [0], [0], [1], [0, 0, 1, 1], [], []>} : vector<1x128xf32>, vector<128x128xf32>, vector<1x128xf32> -> vector<1x128xf32>
        %212 = arith.addf %202, %211 : vector<1x128xf32>
        %c7_139 = arith.constant 7 : index
        %c0_140 = arith.constant 0 : index
        %c0_141 = arith.constant 0 : index
        %213 = vector.load %arg5[%c7_139, %c0_140, %c0_141] : memref<9x128x128xbf16, #tpu.memory_space<vmem>>, vector<1x128x128xbf16>
        %214 = vector.shape_cast %213 : vector<1x128x128xbf16> to vector<128x128xbf16>
        %215 = arith.extf %214 : vector<128x128xbf16> to vector<128x128xf32>
        %cst_142 = arith.constant dense<0.000000e+00> : vector<128x128xf32>
        %216 = tpu.matmul %141, %215, %cst_142 {dimension_numbers = #tpu.dot_dimension_numbers<[1], [0], [0], [1], [0, 0, 1, 1], [], []>} : vector<128x128xf32>, vector<128x128xf32>, vector<128x128xf32> -> vector<128x128xf32>
        %217 = arith.truncf %216 : vector<128x128xf32> to vector<128x128xbf16>
        %c7_143 = arith.constant 7 : index
        %c0_144 = arith.constant 0 : index
        %c0_145 = arith.constant 0 : index
        %218 = vector.load %arg11[%c7_143, %c0_144, %c0_145] : memref<9x128x128xbf16, #tpu.memory_space<vmem>>, vector<1x128x128xbf16>
        %219 = vector.shape_cast %218 : vector<1x128x128xbf16> to vector<128x128xbf16>
        %220 = vector.shape_cast %217 : vector<128x128xbf16> to vector<1x128x128xbf16>
        tpu.vector_store %arg11[%c7_143, %c0_144, %c0_145], %220 {strides = array<i32>} : memref<9x128x128xbf16, #tpu.memory_space<vmem>>, vector<1x128x128xbf16>,
        %cst_146 = arith.constant dense<0.000000e+00> : vector<1x128xf32>
        %221 = tpu.matmul %134, %215, %cst_146 {dimension_numbers = #tpu.dot_dimension_numbers<[1], [0], [0], [1], [0, 0, 1, 1], [], []>} : vector<1x128xf32>, vector<128x128xf32>, vector<1x128xf32> -> vector<1x128xf32>
        %222 = arith.addf %212, %221 : vector<1x128xf32>
        %c8_147 = arith.constant 8 : index
        %c0_148 = arith.constant 0 : index
        %c0_149 = arith.constant 0 : index
        %223 = vector.load %arg5[%c8_147, %c0_148, %c0_149] : memref<9x128x128xbf16, #tpu.memory_space<vmem>>, vector<1x128x128xbf16>
        %224 = vector.shape_cast %223 : vector<1x128x128xbf16> to vector<128x128xbf16>
        %225 = arith.extf %224 : vector<128x128xbf16> to vector<128x128xf32>
        %cst_150 = arith.constant dense<0.000000e+00> : vector<128x128xf32>
        %226 = tpu.matmul %141, %225, %cst_150 {dimension_numbers = #tpu.dot_dimension_numbers<[1], [0], [0], [1], [0, 0, 1, 1], [], []>} : vector<128x128xf32>, vector<128x128xf32>, vector<128x128xf32> -> vector<128x128xf32>
        %227 = arith.truncf %226 : vector<128x128xf32> to vector<128x128xbf16>
        %c8_151 = arith.constant 8 : index
        %c0_152 = arith.constant 0 : index
        %c0_153 = arith.constant 0 : index
        %228 = vector.load %arg11[%c8_151, %c0_152, %c0_153] : memref<9x128x128xbf16, #tpu.memory_space<vmem>>, vector<1x128x128xbf16>
        %229 = vector.shape_cast %228 : vector<1x128x128xbf16> to vector<128x128xbf16>
        %230 = vector.shape_cast %227 : vector<128x128xbf16> to vector<1x128x128xbf16>
        tpu.vector_store %arg11[%c8_151, %c0_152, %c0_153], %230 {strides = array<i32>} : memref<9x128x128xbf16, #tpu.memory_space<vmem>>, vector<1x128x128xbf16>,
        %cst_154 = arith.constant dense<0.000000e+00> : vector<1x128xf32>
        %231 = tpu.matmul %134, %225, %cst_154 {dimension_numbers = #tpu.dot_dimension_numbers<[1], [0], [0], [1], [0, 0, 1, 1], [], []>} : vector<1x128xf32>, vector<128x128xf32>, vector<1x128xf32> -> vector<1x128xf32>
        %232 = arith.addf %222, %231 : vector<1x128xf32>
        %c0_155 = arith.constant 0 : index
        %c0_156 = arith.constant 0 : index
        %233 = vector.load %arg12[%c0_155, %c0_156] : memref<1x128xf32, #tpu.memory_space<vmem>>, vector<1x128xf32>
        tpu.vector_store %arg12[%c0_155, %c0_156], %232 {strides = array<i32>} : memref<1x128xf32, #tpu.memory_space<vmem>>, vector<1x128xf32>,
      } else {
      }
      %c0 = arith.constant 0 : index
      %c0_4 = arith.constant 0 : index
      %9 = vector.load %arg12[%c0, %c0_4] : memref<1x128xf32, #tpu.memory_space<vmem>>, vector<1x128xf32>
      %cst = arith.constant 0.000000e+00 : f32
      %10 = vector.broadcast %cst : f32 to vector<192x128xf32>
      %11 = arith.index_cast %arg1 : i32 to index
      %c0_5 = arith.constant 0 : index
      %c0_6 = arith.constant 0 : index
      %12 = vector.load %arg9[%11, %c0_5, %c0_6] : memref<2x240x128xbf16, #tpu.memory_space<vmem>>, vector<1x192x128xbf16>
      %13 = vector.shape_cast %12 : vector<1x192x128xbf16> to vector<192x128xbf16>
      %c0_7 = arith.constant 0 : index
      %c0_8 = arith.constant 0 : index
      %c0_9 = arith.constant 0 : index
      %14 = vector.load %arg11[%c0_7, %c0_8, %c0_9] : memref<9x128x128xbf16, #tpu.memory_space<vmem>>, vector<1x128x128xbf16>
      %15 = vector.shape_cast %14 : vector<1x128x128xbf16> to vector<128x128xbf16>
      %cst_10 = arith.constant dense<0.000000e+00> : vector<192x128xf32>
      %16 = tpu.matmul %13, %15, %cst_10 {dimension_numbers = #tpu.dot_dimension_numbers<[1], [0], [0], [1], [0, 0, 1, 1], [], []>} : vector<192x128xbf16>, vector<128x128xbf16>, vector<192x128xf32> -> vector<192x128xf32>
      %17 = arith.addf %10, %16 : vector<192x128xf32>
      %18 = arith.index_cast %arg1 : i32 to index
      %c1 = arith.constant 1 : index
      %c0_11 = arith.constant 0 : index
      %19 = vector.load %arg9[%18, %c1, %c0_11] : memref<2x240x128xbf16, #tpu.memory_space<vmem>>, vector<1x192x128xbf16>
      %20 = vector.shape_cast %19 : vector<1x192x128xbf16> to vector<192x128xbf16>
      %c1_12 = arith.constant 1 : index
      %c0_13 = arith.constant 0 : index
      %c0_14 = arith.constant 0 : index
      %21 = vector.load %arg11[%c1_12, %c0_13, %c0_14] : memref<9x128x128xbf16, #tpu.memory_space<vmem>>, vector<1x128x128xbf16>
      %22 = vector.shape_cast %21 : vector<1x128x128xbf16> to vector<128x128xbf16>
      %cst_15 = arith.constant dense<0.000000e+00> : vector<192x128xf32>
      %23 = tpu.matmul %20, %22, %cst_15 {dimension_numbers = #tpu.dot_dimension_numbers<[1], [0], [0], [1], [0, 0, 1, 1], [], []>} : vector<192x128xbf16>, vector<128x128xbf16>, vector<192x128xf32> -> vector<192x128xf32>
      %24 = arith.addf %17, %23 : vector<192x128xf32>
      %25 = arith.index_cast %arg1 : i32 to index
      %c2 = arith.constant 2 : index
      %c0_16 = arith.constant 0 : index
      %26 = vector.load %arg9[%25, %c2, %c0_16] : memref<2x240x128xbf16, #tpu.memory_space<vmem>>, vector<1x192x128xbf16>
      %27 = vector.shape_cast %26 : vector<1x192x128xbf16> to vector<192x128xbf16>
      %c2_17 = arith.constant 2 : index
      %c0_18 = arith.constant 0 : index
      %c0_19 = arith.constant 0 : index
      %28 = vector.load %arg11[%c2_17, %c0_18, %c0_19] : memref<9x128x128xbf16, #tpu.memory_space<vmem>>, vector<1x128x128xbf16>
      %29 = vector.shape_cast %28 : vector<1x128x128xbf16> to vector<128x128xbf16>
      %cst_20 = arith.constant dense<0.000000e+00> : vector<192x128xf32>
      %30 = tpu.matmul %27, %29, %cst_20 {dimension_numbers = #tpu.dot_dimension_numbers<[1], [0], [0], [1], [0, 0, 1, 1], [], []>} : vector<192x128xbf16>, vector<128x128xbf16>, vector<192x128xf32> -> vector<192x128xf32>
      %31 = arith.addf %24, %30 : vector<192x128xf32>
      %32 = arith.index_cast %arg1 : i32 to index
      %c16 = arith.constant 16 : index
      %c0_21 = arith.constant 0 : index
      %33 = vector.load %arg9[%32, %c16, %c0_21] : memref<2x240x128xbf16, #tpu.memory_space<vmem>>, vector<1x192x128xbf16>
      %34 = vector.shape_cast %33 : vector<1x192x128xbf16> to vector<192x128xbf16>
      %c3 = arith.constant 3 : index
      %c0_22 = arith.constant 0 : index
      %c0_23 = arith.constant 0 : index
      %35 = vector.load %arg11[%c3, %c0_22, %c0_23] : memref<9x128x128xbf16, #tpu.memory_space<vmem>>, vector<1x128x128xbf16>
      %36 = vector.shape_cast %35 : vector<1x128x128xbf16> to vector<128x128xbf16>
      %cst_24 = arith.constant dense<0.000000e+00> : vector<192x128xf32>
      %37 = tpu.matmul %34, %36, %cst_24 {dimension_numbers = #tpu.dot_dimension_numbers<[1], [0], [0], [1], [0, 0, 1, 1], [], []>} : vector<192x128xbf16>, vector<128x128xbf16>, vector<192x128xf32> -> vector<192x128xf32>
      %38 = arith.addf %31, %37 : vector<192x128xf32>
      %39 = arith.index_cast %arg1 : i32 to index
      %c17 = arith.constant 17 : index
      %c0_25 = arith.constant 0 : index
      %40 = vector.load %arg9[%39, %c17, %c0_25] : memref<2x240x128xbf16, #tpu.memory_space<vmem>>, vector<1x192x128xbf16>
      %41 = vector.shape_cast %40 : vector<1x192x128xbf16> to vector<192x128xbf16>
      %c4 = arith.constant 4 : index
      %c0_26 = arith.constant 0 : index
      %c0_27 = arith.constant 0 : index
      %42 = vector.load %arg11[%c4, %c0_26, %c0_27] : memref<9x128x128xbf16, #tpu.memory_space<vmem>>, vector<1x128x128xbf16>
      %43 = vector.shape_cast %42 : vector<1x128x128xbf16> to vector<128x128xbf16>
      %cst_28 = arith.constant dense<0.000000e+00> : vector<192x128xf32>
      %44 = tpu.matmul %41, %43, %cst_28 {dimension_numbers = #tpu.dot_dimension_numbers<[1], [0], [0], [1], [0, 0, 1, 1], [], []>} : vector<192x128xbf16>, vector<128x128xbf16>, vector<192x128xf32> -> vector<192x128xf32>
      %45 = arith.addf %38, %44 : vector<192x128xf32>
      %46 = arith.index_cast %arg1 : i32 to index
      %c18 = arith.constant 18 : index
      %c0_29 = arith.constant 0 : index
      %47 = vector.load %arg9[%46, %c18, %c0_29] : memref<2x240x128xbf16, #tpu.memory_space<vmem>>, vector<1x192x128xbf16>
      %48 = vector.shape_cast %47 : vector<1x192x128xbf16> to vector<192x128xbf16>
      %c5 = arith.constant 5 : index
      %c0_30 = arith.constant 0 : index
      %c0_31 = arith.constant 0 : index
      %49 = vector.load %arg11[%c5, %c0_30, %c0_31] : memref<9x128x128xbf16, #tpu.memory_space<vmem>>, vector<1x128x128xbf16>
      %50 = vector.shape_cast %49 : vector<1x128x128xbf16> to vector<128x128xbf16>
      %cst_32 = arith.constant dense<0.000000e+00> : vector<192x128xf32>
      %51 = tpu.matmul %48, %50, %cst_32 {dimension_numbers = #tpu.dot_dimension_numbers<[1], [0], [0], [1], [0, 0, 1, 1], [], []>} : vector<192x128xbf16>, vector<128x128xbf16>, vector<192x128xf32> -> vector<192x128xf32>
      %52 = arith.addf %45, %51 : vector<192x128xf32>
      %53 = arith.index_cast %arg1 : i32 to index
      %c32 = arith.constant 32 : index
      %c0_33 = arith.constant 0 : index
      %54 = vector.load %arg9[%53, %c32, %c0_33] : memref<2x240x128xbf16, #tpu.memory_space<vmem>>, vector<1x192x128xbf16>
      %55 = vector.shape_cast %54 : vector<1x192x128xbf16> to vector<192x128xbf16>
      %c6 = arith.constant 6 : index
      %c0_34 = arith.constant 0 : index
      %c0_35 = arith.constant 0 : index
      %56 = vector.load %arg11[%c6, %c0_34, %c0_35] : memref<9x128x128xbf16, #tpu.memory_space<vmem>>, vector<1x128x128xbf16>
      %57 = vector.shape_cast %56 : vector<1x128x128xbf16> to vector<128x128xbf16>
      %cst_36 = arith.constant dense<0.000000e+00> : vector<192x128xf32>
      %58 = tpu.matmul %55, %57, %cst_36 {dimension_numbers = #tpu.dot_dimension_numbers<[1], [0], [0], [1], [0, 0, 1, 1], [], []>} : vector<192x128xbf16>, vector<128x128xbf16>, vector<192x128xf32> -> vector<192x128xf32>
      %59 = arith.addf %52, %58 : vector<192x128xf32>
      %60 = arith.index_cast %arg1 : i32 to index
      %c33 = arith.constant 33 : index
      %c0_37 = arith.constant 0 : index
      %61 = vector.load %arg9[%60, %c33, %c0_37] : memref<2x240x128xbf16, #tpu.memory_space<vmem>>, vector<1x192x128xbf16>
      %62 = vector.shape_cast %61 : vector<1x192x128xbf16> to vector<192x128xbf16>
      %c7 = arith.constant 7 : index
      %c0_38 = arith.constant 0 : index
      %c0_39 = arith.constant 0 : index
      %63 = vector.load %arg11[%c7, %c0_38, %c0_39] : memref<9x128x128xbf16, #tpu.memory_space<vmem>>, vector<1x128x128xbf16>
      %64 = vector.shape_cast %63 : vector<1x128x128xbf16> to vector<128x128xbf16>
      %cst_40 = arith.constant dense<0.000000e+00> : vector<192x128xf32>
      %65 = tpu.matmul %62, %64, %cst_40 {dimension_numbers = #tpu.dot_dimension_numbers<[1], [0], [0], [1], [0, 0, 1, 1], [], []>} : vector<192x128xbf16>, vector<128x128xbf16>, vector<192x128xf32> -> vector<192x128xf32>
      %66 = arith.addf %59, %65 : vector<192x128xf32>
      %67 = arith.index_cast %arg1 : i32 to index
      %c34 = arith.constant 34 : index
      %c0_41 = arith.constant 0 : index
      %68 = vector.load %arg9[%67, %c34, %c0_41] : memref<2x240x128xbf16, #tpu.memory_space<vmem>>, vector<1x192x128xbf16>
      %69 = vector.shape_cast %68 : vector<1x192x128xbf16> to vector<192x128xbf16>
      %c8 = arith.constant 8 : index
      %c0_42 = arith.constant 0 : index
      %c0_43 = arith.constant 0 : index
      %70 = vector.load %arg11[%c8, %c0_42, %c0_43] : memref<9x128x128xbf16, #tpu.memory_space<vmem>>, vector<1x128x128xbf16>
      %71 = vector.shape_cast %70 : vector<1x128x128xbf16> to vector<128x128xbf16>
      %cst_44 = arith.constant dense<0.000000e+00> : vector<192x128xf32>
      %72 = tpu.matmul %69, %71, %cst_44 {dimension_numbers = #tpu.dot_dimension_numbers<[1], [0], [0], [1], [0, 0, 1, 1], [], []>} : vector<192x128xbf16>, vector<128x128xbf16>, vector<192x128xf32> -> vector<192x128xf32>
      %73 = arith.addf %66, %72 : vector<192x128xf32>
      %74 = vector.broadcast %9 : vector<1x128xf32> to vector<192x128xf32>
      %75 = arith.addf %73, %74 : vector<192x128xf32>
      %cst_45 = arith.constant 0.000000e+00 : f32
      %76 = vector.broadcast %cst_45 : f32 to vector<192x128xf32>
      %77 = arith.maximumf %75, %76 : vector<192x128xf32>
      %c0_46 = arith.constant 0 : index
      %c0_47 = arith.constant 0 : index
      %c0_48 = arith.constant 0 : index
      %78 = vector.load %arg7[%c0_46, %c0_47, %c0_48] : memref<1x192x128xf32, #tpu.memory_space<vmem>>, vector<1x192x128xf32>
      %79 = vector.shape_cast %78 : vector<1x192x128xf32> to vector<192x128xf32>
      %80 = vector.shape_cast %77 : vector<192x128xf32> to vector<1x192x128xf32>
      tpu.vector_store %arg7[%c0_46, %c0_47, %c0_48], %80 {strides = array<i32>} : memref<1x192x128xf32, #tpu.memory_space<vmem>>, vector<1x192x128xf32>,
      %81 = tpu.iota {dimensions = array<i32: 0>} : vector<192x1xi32>
      %c16_i32 = arith.constant 16 : i32
      %c0_i32_49 = arith.constant 0 : i32
      %82 = arith.cmpi eq, %c16_i32, %c0_i32_49 : i32
      %c1_i32_50 = arith.constant 1 : i32
      %83 = arith.select %82, %c1_i32_50, %c16_i32 : i32
      %84 = vector.broadcast %83 : i32 to vector<192x1xi32>
      %85 = arith.remsi %81, %84 : vector<192x1xi32>
      %c0_i32_51 = arith.constant 0 : i32
      %86 = vector.broadcast %c0_i32_51 : i32 to vector<192x1xi32>
      %87 = arith.cmpi ne, %85, %86 : vector<192x1xi32>
      %c0_i32_52 = arith.constant 0 : i32
      %88 = vector.broadcast %c0_i32_52 : i32 to vector<192x1xi32>
      %89 = arith.cmpi slt, %85, %88 : vector<192x1xi32>
      %c0_i32_53 = arith.constant 0 : i32
      %90 = arith.cmpi slt, %83, %c0_i32_53 : i32
      %91 = vector.broadcast %90 : i1 to vector<192x1xi1>
      %92 = vector.broadcast %91 : vector<192x1xi1> to vector<192x1xi1>
      %93 = arith.xori %89, %92 : vector<192x1xi1>
      %94 = arith.andi %93, %87 : vector<192x1xi1>
      %95 = vector.broadcast %83 : i32 to vector<192x1xi32>
      %96 = arith.addi %85, %95 : vector<192x1xi32>
      %97 = arith.select %94, %96, %85 : vector<192x1xi1>, vector<192x1xi32>
      %c12_i32 = arith.constant 12 : i32
      %98 = vector.broadcast %c12_i32 : i32 to vector<192x1xi32>
      %99 = arith.cmpi slt, %97, %98 : vector<192x1xi32>
      %cst_54 = arith.constant 0.000000e+00 : f32
      %100 = vector.shape_cast %99 : vector<192x1xi1> to vector<192x1xi1>
      %101 = vector.broadcast %100 : vector<192x1xi1> to vector<192x128xi1>
      %102 = vector.broadcast %cst_54 : f32 to vector<192x128xf32>
      %103 = arith.select %101, %77, %102 : vector<192x128xi1>, vector<192x128xf32>
      %c0_55 = arith.constant 0 : index
      %c0_56 = arith.constant 0 : index
      %104 = vector.load %arg8[%c0_55, %c0_56] : memref<2x128xf32, #tpu.memory_space<vmem>>, vector<1x128xf32>
      %cst_57 = arith.constant dense<0.000000e+00> : vector<128xf32>
      %105 = vector.multi_reduction <add>, %103, %cst_57 [0] : vector<192x128xf32> to vector<128xf32>
      %106 = vector.shape_cast %105 : vector<128xf32> to vector<1x128xf32>
      %107 = arith.addf %104, %106 : vector<1x128xf32>
      %c0_58 = arith.constant 0 : index
      %c0_59 = arith.constant 0 : index
      %108 = vector.load %arg8[%c0_58, %c0_59] : memref<2x128xf32, #tpu.memory_space<vmem>>, vector<1x128xf32>
      tpu.vector_store %arg8[%c0_58, %c0_59], %107 {strides = array<i32>} : memref<2x128xf32, #tpu.memory_space<vmem>>, vector<1x128xf32>,
      %c1_60 = arith.constant 1 : index
      %c0_61 = arith.constant 0 : index
      %109 = vector.load %arg8[%c1_60, %c0_61] : memref<2x128xf32, #tpu.memory_space<vmem>>, vector<1x128xf32>
      %110 = arith.mulf %103, %103 : vector<192x128xf32>
      %cst_62 = arith.constant dense<0.000000e+00> : vector<128xf32>
      %111 = vector.multi_reduction <add>, %110, %cst_62 [0] : vector<192x128xf32> to vector<128xf32>
      %112 = vector.shape_cast %111 : vector<128xf32> to vector<1x128xf32>
      %113 = arith.addf %109, %112 : vector<1x128xf32>
      %c1_63 = arith.constant 1 : index
      %c0_64 = arith.constant 0 : index
      %114 = vector.load %arg8[%c1_63, %c0_64] : memref<2x128xf32, #tpu.memory_space<vmem>>, vector<1x128xf32>
      tpu.vector_store %arg8[%c1_63, %c0_64], %113 {strides = array<i32>} : memref<2x128xf32, #tpu.memory_space<vmem>>, vector<1x128xf32>,
    } else {
    }
    return
  }
  func.func @transform_0(%arg0: i32, %arg1: i32) -> (i32, i32, i32) {
    %c0_i32 = arith.constant 0 : i32
    %0 = arith.cmpi eq, %arg0, %c0_i32 : i32
    %c1_i32 = arith.constant 1 : i32
    %1 = arith.select %0, %arg1, %c1_i32 : i32
    %c0_i32_0 = arith.constant 0 : i32
    %c0_i32_1 = arith.constant 0 : i32
    %c0_i32_2 = arith.constant 0 : i32
    return %1, %c0_i32_0, %c0_i32_1 : i32, i32, i32
  }
  func.func @transform_1(%arg0: i32, %arg1: i32) -> (i32, i32, i32) {
    %c0_i32 = arith.constant 0 : i32
    %c0_i32_0 = arith.constant 0 : i32
    %c0_i32_1 = arith.constant 0 : i32
    %c0_i32_2 = arith.constant 0 : i32
    return %c0_i32, %c0_i32_0, %c0_i32_1 : i32, i32, i32
  }
  func.func @transform_2(%arg0: i32, %arg1: i32) -> (i32, i32) {
    %c0_i32 = arith.constant 0 : i32
    %c0_i32_0 = arith.constant 0 : i32
    %c0_i32_1 = arith.constant 0 : i32
    return %c0_i32, %c0_i32_0 : i32, i32
  }
  func.func @transform_3(%arg0: i32, %arg1: i32) -> (i32, i32, i32) {
    %c0_i32 = arith.constant 0 : i32
    %c0_i32_0 = arith.constant 0 : i32
    %c0_i32_1 = arith.constant 0 : i32
    %c0_i32_2 = arith.constant 0 : i32
    return %c0_i32, %c0_i32_0, %c0_i32_1 : i32, i32, i32
  }
  func.func @transform_4(%arg0: i32, %arg1: i32) -> (i32, i32) {
    %c0_i32 = arith.constant 0 : i32
    %c0_i32_0 = arith.constant 0 : i32
    %c0_i32_1 = arith.constant 0 : i32
    return %c0_i32, %c0_i32_0 : i32, i32
  }
  func.func @transform_5(%arg0: i32, %arg1: i32) -> (i32, i32, i32) {
    %c0_i32 = arith.constant 0 : i32
    %0 = arith.cmpi eq, %arg0, %c0_i32 : i32
    %c0_i32_0 = arith.constant 0 : i32
    %1 = arith.select %0, %c0_i32_0, %arg1 : i32
    %c0_i32_1 = arith.constant 0 : i32
    %c0_i32_2 = arith.constant 0 : i32
    %c0_i32_3 = arith.constant 0 : i32
    return %1, %c0_i32_1, %c0_i32_2 : i32, i32, i32
  }
  func.func @transform_6(%arg0: i32, %arg1: i32) -> (i32, i32) {
    %c0_i32 = arith.constant 0 : i32
    %c0_i32_0 = arith.constant 0 : i32
    %c0_i32_1 = arith.constant 0 : i32
    return %c0_i32, %c0_i32_0 : i32, i32
  }
}

</mosaic_0001>

<bundles_post_ra>
// kernel: double_conv.1
= control target key start
LH: loop header
LB: loop body
LE: loop exit
PB: predicated region body
PF: predicated region fallthrough
CT: control target
= control target key end

     0   :  { %s13788_s21 = smov 0   ;;  %s13790_s22 = smov 0   ;;  %s16062_s0 = inlined_call_operand.vmem [shape: bf16[2,258,128], index: 0, kind: input, shape index: {}]   ;;  %s16063_s1 = inlined_call_operand.vmem [shape: bf16[9,128,128], index: 1, kind: input, shape index: {}]   ;;  %s16064_s2 = inlined_call_operand.vmem [shape: f32[3,128], index: 2, kind: input, shape index: {}]   ;;  %s16065_s3 = inlined_call_operand.vmem [shape: bf16[9,128,128], index: 3, kind: input, shape index: {}]   ;;  %s16066_s4 = inlined_call_operand.vmem [shape: f32[1,128], index: 4, kind: input, shape index: {}]   ;;  %s16067_s5 = inlined_call_operand.vmem [shape: f32[2,192,128], index: 5, kind: output, shape index: {0}]   ;;  %s16068_s6 = inlined_call_operand.vmem [shape: f32[2,128], index: 6, kind: output, shape index: {1}]  }
   0x1   :  { %s13792_s23 = smov 0   ;;  %s13794_s24 = smov 0  }
   0x2   :  { %s13796_s25 = smov 0  }
   0x3 LB: > { %s26_s26 = sadd.s32 1, %s13738_s23  ;;  %s29_s27 = sadd.s32 1, %s13742_s24  ;;  %s13746_s25 = sphi %s13796_s25, %s17_s25   ;;  %s13742_s24 = sphi %s13794_s24, %s16159_s24   ;;  %s13738_s23 = sphi %s13792_s23, %s16158_s23   ;;  %s13734_s22 = sphi %s13790_s22, %s16157_s22   ;;  %s13730_s21 = sphi %s13788_s21, %s16156_s21  }
   0x4   : > { %p27_p0 = scmp.ge.s32.totalorder %s26_s26, 2  ;;  %p9207_p1 = scmp.ge.s32.totalorder %s13746_s25, 1 }
   0x5   : > { %p234_p2 = scmp.lt.s32.totalorder %s13746_s25, 5 }
   0x6   : > { %s16161_s26 = smov (%p27_p0, %s26_s26), 0  ;;  %s16163_s27 = smov (!%p27_p0, %s29_s27), %s13742_s24 }
   0x7   : > { %p235_p3 = pnand %p9207_p1, %p234_p2  ;;  %p31_p4 = scmp.ge.s32.totalorder %s16163_s27, 2 }
   0x8   : > { %p268_p5 = scmp.eq.s32.totalorder (!%p235_p3), %s13734_s22, 0  ;;  %p9210_p8 = scmp.ne.s32.totalorder (!%p235_p3), %s13734_s22, 0 }
   0x9   : > { %s16165_s27 = smov (%p31_p4, %s16163_s27), 0  ;;  %238 = sbr.rel (%p235_p3) target bundleno = 1618 (0x652), region = 40 }
  0x10   : > { %s269_s28 = scalar_select %p268_p5, %s13730_s21, 1 }
  0x11   : > { %s278_s29 = scalar_select %p268_p5, 0, %s13730_s21 }
  0x12   : > { %p270_p6 = scmp.lt.s32.totalorder %s269_s28, 1  ;;  %290 = sbr.rel (%p9210_p8) target bundleno = 560 (0x230), region = 44 }
  0x13   : > { %p279_p7 = scmp.lt.s32.totalorder %s278_s29, 1  ;;  %p9211_p9 = scmp.ne.s32.totalorder (!%p9210_p8), %s13730_s21, 0 }
  0x14   : > { %s16167_s28 = smov (!%p270_p6, %s269_s28), 1 }
  0x15   : > { %s16169_s29 = smov (!%p279_p7, %s278_s29), 1  ;;  %s13492_s30 = smul.u32 132, %s16167_s28 }
  0x16   : > { %s13493_s7 = smul.u32 192, %s16169_s29 }
  0x17   : > { %s13828_s10 = scalar_lea.vmem %s16062_s0, %s13492_s30 }
  0x18   : > { %s13833_s13 = scalar_lea.vmem %s16067_s5, %s13493_s7 }
  0x19   : > { %294 = sbr.rel (%p9211_p9) target bundleno = 32 (0x20), region = 48  ;;  %v13748_v0 = vmov (!%p9211_p9), 0.0  }
  0x1a   : > { %295 = vst [vmem:[#allocation3] sm:$0x3] (!%p9211_p9), %v13748_v0 }
  0x20 PF: > { %v13539_v1 = vld [vmem:[%s16063_s1 + $0x40] sm:$0xff]   ;;  %v13541_v3 = vld [vmem:[%s16063_s1 + $0x48] sm:$0xff]   ;;  %v13543_v5 = vld [vmem:[%s16063_s1 + $0x50] sm:$0xff]   ;;  %vm432_vm0 = vsmask.f32 7424  ;;  %vm984_vm1 = vcmask 1046528  }
  0x21   : > { %v13540_v2 = vld [vmem:[%s16063_s1 + $0x100] sm:$0xff]   ;;  %10948 = vmatprep.subr.bf16.mxu1 %v13539_v1  ;;  %v13542_v4 = vld [vmem:[%s16063_s1 + $0x108] sm:$0xff]   ;;  %v13544_v6 = vld [vmem:[%s16063_s1 + $0x110] sm:$0xff]  }
  0x22   : > { %11124 = vmatprep.subr.bf16.mxu0 %v13540_v2  ;;  %10949 = vmatpush3.bf16.msra.mxu1 %v13539_v1  ;;  %v13545_v7 = vld [vmem:[%s16063_s1 + $0x58] sm:$0xff]   ;;  %v13547_v9 = vld [vmem:[%s16063_s1 + $0x60] sm:$0xff]   ;;  %v13549_v11 = vld [vmem:[%s16063_s1 + $0x68] sm:$0xff]  }
  0x23   : > { %11125 = vmatpush3.bf16.msra.mxu0 %v13540_v2  ;;  %10950 = vmatprep.subr.bf16.mxu1 %v13541_v3  ;;  %v13546_v8 = vld [vmem:[%s16063_s1 + $0x118] sm:$0xff]   ;;  %v13548_v10 = vld [vmem:[%s16063_s1 + $0x120] sm:$0xff]   ;;  %v13550_v12 = vld [vmem:[%s16063_s1 + $0x128] sm:$0xff]  }
  0x24   : > { %11126 = vmatprep.subr.bf16.mxu0 %v13542_v4  ;;  %v297_v13 = vld [vmem:[%s13828_s10] sm:$0xf]  ;;  %v298_v14 = vld [vmem:[%s13828_s10 + $0x4] sm:$0xf]  ;;  %v13878_v16 = vld [vmem:[%s13828_s10 + $0x8] sm:$0xff]  }
  0x25   : > { %v13875_v15 = vcombine.low %v297_v13, %v298_v14  ;;  %v13881_v17 = vld [vmem:[%s13828_s10 + $0x10] sm:$0xff]   ;;  %v1599_v19 = vld [vmem:[%s13828_s10 + $0x8] sm:$0xf]  ;;  %v13888_v20 = vld [vmem:[%s13828_s10 + $0xc] sm:$0xf]  ;;  %v441_v23 = vshll.u32 %v13878_v16, 16 }
  0x26   : > { %10951 = vmatpush3.bf16.msra.mxu1 %v13541_v3  ;;  %v13551_v18 = vld [vmem:[%s16063_s1 + $0x70] sm:$0xff]   ;;  %v9338_v24 = vcombine.low %v1599_v19, %v13888_v20  ;;  %v1726_v27 = vshll.u32 %v13881_v17, 16  ;;  %v13553_v32 = vld [vmem:[%s16063_s1 + $0x78] sm:$0xff]   ;;  %v445_v33 = vshrl.u32 %v13878_v16, 16  ;;  %v1730_v40 = vshrl.u32 %v13881_v17, 16  ;;  %v13561_v50 = vld [vmem:[%s16063_s1 + $0x140] sm:$0xff]  }
  0x27   : > { %11127 = vmatpush3.bf16.msra.mxu0 %v13542_v4  ;;  %10952 = vmatprep.subr.bf16.mxu1 %v13543_v5  ;;  %v434_v21 = vshrl.u32 %v13875_v15, 16  ;;  %v436_v22 = vshll.u32 %v13875_v15, 16  ;;  %v13895_v25 = vld [vmem:[%s13828_s10 + $0x10] sm:$0xff]   ;;  %v443_v29 = vrot.slane %v441_v23, 1  ;;  %v13907_v35 = vld [vmem:[%s13828_s10 + $0x18] sm:$0xff]   ;;  %v13924_v51 = vld [vmem:[%s13828_s10 + $0x20] sm:$0xff]  }
  0x28   : > { %11128 = vmatprep.subr.bf16.mxu0 %v13544_v6  ;;  %v13552_v26 = vld [vmem:[%s16063_s1 + $0x130] sm:$0xff]   ;;  %v1719_v30 = vshrl.u32 %v9338_v24, 16  ;;  %v1721_v31 = vshll.u32 %v9338_v24, 16  ;;  %v449_v34 = vshll.u32 %v13895_v25, 16  ;;  %v13554_v36 = vld [vmem:[%s16063_s1 + $0x138] sm:$0xff]   ;;  %v1728_v39 = vrot.slane %v1726_v27, 1 }
  0x29   : > { %v438_v28 = vrot.slane %v436_v22, 1  ;;  %v1734_v41 = vshll.u32 %v13907_v35, 16  ;;  %v453_v45 = vshrl.u32 %v13895_v25, 16  ;;  %v13917_v47 = vld [vmem:[%s13828_s10 + $0x18] sm:$0xff]   ;;  %v447_v49 = vor.u32 %v445_v33, %v443_v29  ;;  %v13929_v56 = vld [vmem:[%s13828_s10 + $0x20] sm:$0xff]   ;;  %v13936_v60 = vld [vmem:[%s13828_s10 + $0x28] sm:$0xff]  }
  0x2a   : > { %10953 = vmatpush3.bf16.msra.mxu1 %v13543_v5  ;;  %v1723_v38 = vrot.slane %v1721_v31, 1  ;;  %v451_v44 = vrot.slane %v449_v34, 1  ;;  %v1738_v52 = vshrl.u32 %v13907_v35, 16  ;;  %v1732_v53 = vor.u32 %v1730_v40, %v1728_v39  ;;  %v13566_v57 = vld [vmem:[%s16063_s1] sm:$0xff]   ;;  %v13562_v1 = vld [vmem:[%s16063_s1 + $0x148] sm:$0xff]   ;;  %v13962_v23 = vld [vmem:[%s13828_s10 + $0x30] sm:$0xff]  }
  0x2b   : > { %11129 = vmatpush3.bf16.msra.mxu0 %v13544_v6  ;;  %10954 = vmatprep.subr.bf16.mxu1 %v13545_v7  ;;  %v439_v37 = vor.u32 %v438_v28, %v434_v21  ;;  %v1736_v46 = vrot.slane %v1734_v41, 1  ;;  %v457_v55 = vshll.u32 %v13917_v47, 16  ;;  %v1742_v59 = vshll.u32 %v13924_v51, 16  ;;  %v13571_v13 = vld [vmem:[%s16063_s1 + $0x8] sm:$0xff]   ;;  %v13568_v24 = vld [vmem:[%s16063_s1 + $0x150] sm:$0xff]   ;;  %v13969_v28 = vld [vmem:[%s13828_s10 + $0x38] sm:$0xff]  }
  0x2c   : > { %11130 = vmatprep.subr.bf16.mxu0 %v13546_v8  ;;  %v1724_v43 = vor.u32 %v1723_v38, %v1719_v30  ;;  %v455_v54 = vor.u32 %v453_v45, %v451_v44  ;;  %v461_v62 = vshrl.u32 %v13917_v47, 16  ;;  %v465_v63 = vshll.u32 %v13929_v56, 16  ;;  %v13577_v41 = vld [vmem:[%s16063_s1 + $0x10] sm:$0xff]  }
  0x2d   : > { %v444_v42 = vsel %vm432_vm0, %v439_v37, %v443_v29  ;;  %v1740_v58 = vor.u32 %v1738_v52, %v1736_v46  ;;  %v459_v61 = vrot.slane %v457_v55, 1  ;;  %v452_v0 = vsel %vm432_vm0, %v447_v49, %v451_v44  ;;  %v13986_v44 = vld [vmem:[%s13828_s10 + $0x38] sm:$0xff]   ;;  %v13996_v55 = vld [vmem:[%s13828_s10 + $0x40] sm:$0xff]  }
  0x2e   : > { %10955 = vmatpush3.bf16.msra.mxu1 %v13545_v7  ;;  %10964 = vmatprep.mubr.bf16.mxu1 %v444_v42  ;;  %v1729_v48 = vsel %vm432_vm0, %v1724_v43, %v1728_v39  ;;  %v1744_v2 = vrot.slane %v1742_v59, 1  ;;  %v1750_v3 = vshll.u32 %v13936_v60, 16  ;;  %v1737_v4 = vsel %vm432_vm0, %v1732_v53, %v1736_v46  ;;  %v13990_v46 = vld [vmem:[%s13828_s10 + $0x40] sm:$0xff]  }
  0x2f   : > { %11131 = vmatpush3.bf16.msra.mxu0 %v13546_v8  ;;  %10956 = vmatprep.subr.bf16.mxu1 %v13547_v9  ;;  %v460_v5 = vsel %vm432_vm0, %v455_v54, %v459_v61  ;;  %v467_v6 = vrot.slane %v465_v63, 1  ;;  %v1746_v7 = vshrl.u32 %v13924_v51, 16  ;;  %v1754_v22 = vshrl.u32 %v13936_v60, 16  ;;  %v14003_v63 = vld [vmem:[%s13828_s10 + $0x48] sm:$0xff]  }
  0x30   : > { %11132 = vmatprep.subr.bf16.mxu0 %v13548_v10  ;;  %11140 = vmatprep.mubr.bf16.mxu0 %v1729_v48  ;;  %v1745_v8 = vsel %vm432_vm0, %v1740_v58, %v1744_v2  ;;  %v481_v31 = vshll.u32 %v13962_v23, 16  ;;  %v1766_v37 = vshll.u32 %v13969_v28, 16  ;;  %v485_v45 = vshrl.u32 %v13962_v23, 16 }
  0x31   : > { %v1748_v19 = vor.u32 %v1746_v7, %v1744_v2  ;;  %v489_v49 = vshll.u32 %v13986_v44, 16  ;;  %v1774_v54 = vshll.u32 %v13990_v46, 16  ;;  %v1778_v2 = vshrl.u32 %v13990_v46, 16  ;;  %v13584_v7 = vld [vmem:[%s16063_s1 + $0x18] sm:$0xff]  }
  0x32   : > { %10957 = vmatpush3.bf16.msra.mxu1 %v13547_v9  ;;  %v1752_v9 = vrot.slane %v1750_v3, 1  ;;  %v483_v40 = vrot.slane %v481_v31, 1  ;;  %v1768_v43 = vrot.slane %v1766_v37, 1  ;;  %v14041_v37 = vld [vmem:[%s13828_s10 + $0x58] sm:$0xff]  }
  0x33   : > { %11133 = vmatpush3.bf16.msra.mxu0 %v13548_v10  ;;  %10958 = vmatprep.subr.bf16.mxu1 %v13549_v11  ;;  %v13950_v10 = vld [vmem:[%s13828_s10 + $0x28] sm:$0xff]   ;;  %v491_v58 = vrot.slane %v489_v49, 1 }
  0x34   : > { %11134 = vmatprep.subr.bf16.mxu0 %v13550_v12  ;;  %v473_v14 = vshll.u32 %v13950_v10, 16  ;;  %v1756_v30 = vor.u32 %v1754_v22, %v1752_v9  ;;  %v477_v34 = vshrl.u32 %v13950_v10, 16  ;;  %v1753_v38 = vsel %vm432_vm0, %v1748_v19, %v1752_v9  ;;  %v14025_v22 = vld [vmem:[%s13828_s10 + $0x50] sm:$0xff]  }
  0x35   : > { %v487_v53 = vor.u32 %v485_v45, %v483_v40 }
  0x36   : > { %10959 = vmatpush3.bf16.msra.mxu1 %v13549_v11  ;;  %v463_v11 = vor.u32 %v461_v62, %v459_v61  ;;  %v1776_v61 = vrot.slane %v1774_v54, 1  ;;  %v497_v62 = vshll.u32 %v13996_v55, 16 }
  0x37   : > { %11135 = vmatpush3.bf16.msra.mxu0 %v13550_v12  ;;  %10960 = vmatprep.subr.bf16.mxu1 %v13551_v18  ;;  %v469_v12 = vshrl.u32 %v13929_v56, 16 }
  0x38   : > { %11136 = vmatprep.subr.bf16.mxu0 %v13552_v26  ;;  %v468_v29 = vsel %vm432_vm0, %v463_v11, %v467_v6  ;;  %v499_v11 = vrot.slane %v497_v62, 1  ;;  %v1780_v19 = vor.u32 %v1778_v2, %v1776_v61  ;;  %v525_v62 = vshrl.u32 %v14041_v37, 16 }
  0x39   : > { %v471_v21 = vor.u32 %v469_v12, %v467_v6  ;;  %v1782_v6 = vshll.u32 %v14003_v63, 16  ;;  %v14020_v12 = vld [vmem:[%s13828_s10 + $0x48] sm:$0xff]  }
  0x3a   : > { %10961 = vmatpush3.bf16.msra.mxu1 %v13551_v18  ;;  %v13958_v18 = vld [vmem:[%s13828_s10 + $0x30] sm:$0xff]  }
  0x3b   : > { %11137 = vmatpush3.bf16.msra.mxu0 %v13552_v26  ;;  %10962 = vmatprep.subr.bf16.mxu1 %v13553_v32  ;;  %v475_v26 = vrot.slane %v473_v14, 1  ;;  %v1758_v27 = vshll.u32 %v13958_v18, 16 }
  0x3c   : > { %11138 = vmatprep.subr.bf16.mxu0 %v13554_v36 }
  0x3d   : > { %v1760_v33 = vrot.slane %v1758_v27, 1  ;;  %v476_v39 = vsel %vm432_vm0, %v471_v21, %v475_v26  ;;  %v479_v48 = vor.u32 %v477_v34, %v475_v26  ;;  %v13582_v26 = vld [vmem:[%s16063_s1 + $0x170] sm:$0xff]  }
  0x3e   : > { %10963 = vmatpush3.bf16.msra.mxu1 %v13553_v32  ;;  %v13569_v32 = vld [vmem:[%s16063_s1 + $0x158] sm:$0xff]  }
  0x3f   : > { %11139 = vmatpush3.bf16.msra.mxu0 %v13554_v36  ;;  %10992 = vmatprep.subr.bf16.mxu1 %v13566_v57  ;;  %v1762_v36 = vshrl.u32 %v13958_v18, 16  ;;  %v1761_v42 = vsel %vm432_vm0, %v1756_v30, %v1760_v33  ;;  %v2091_v30 = vrot.slane %v13881_v17, 1 }
  0x40   : > { %11168 = vmatprep.subr.bf16.mxu0 %v13561_v50 }
  0x41   : > { %10965 = vmatmul.mubr.bf16.vlgmr.msra.gmra.mrb[0].mxu1 %v452_v0  ;;  %v1764_v52 = vor.u32 %v1762_v36, %v1760_v33  ;;  %v484_v0 = vsel %vm432_vm0, %v479_v48, %v483_v40  ;;  %v13589_v33 = vld [vmem:[%s16063_s1 + $0x20] sm:$0xff]   ;;  %v509_v36 = vshrl.u32 %v14020_v12, 16  ;;  %v517_v40 = vshrl.u32 %v14025_v22, 16  ;;  %v13593_v48 = vld [vmem:[%s16063_s1 + $0x28] sm:$0xff]  }
  0x42   : > { %11141 = vmatmul.mubr.bf16.vlgmr.msra.gmra.mrb[0].mxu0 %v1737_v4  ;;  %10968 = vmatprep.mubr.bf16.mxu1 %v460_v5  ;;  %v13576_v4 = vld [vmem:[%s16063_s1 + $0x168] sm:$0xff]   ;;  %v492_v5 = vsel %vm432_vm0, %v487_v53, %v491_v58 }
  0x43   : > { %11169 = vmatpush3.bf16.msra.mxu0 %v13561_v50  ;;  %11144 = vmatprep.mubr.bf16.mxu0 %v1745_v8  ;;  %v1770_v50 = vshrl.u32 %v13969_v28, 16  ;;  %v1769_v3 = vsel %vm432_vm0, %v1764_v52, %v1768_v43  ;;  %v501_v8 = vshrl.u32 %v13996_v55, 16  ;;  %v13588_v52 = vld [vmem:[%s16063_s1 + $0x180] sm:$0xff]  }
  0x44   : > { %11170 = vmatprep.subr.bf16.mxu0 %v13562_v1  ;;  %10993 = vmatpush3.bf16.msra.mxu1 %v13566_v57  ;;  %v13575_v57 = vld [vmem:[%s16063_s1 + $0x160] sm:$0xff]  }
  0x45   : > { %10994 = vmatprep.subr.bf16.mxu1 %v13571_v13  ;;  %v1772_v59 = vor.u32 %v1770_v50, %v1768_v43  ;;  %v503_v27 = vor.u32 %v501_v8, %v499_v11  ;;  %v14053_v43 = vld [vmem:[%s13828_s10 + $0x60] sm:$0xff]   ;;  %v2093_v50 = vrot.slane %v13907_v35, 1 }
  0x46   : > { %v529_v35 = vshll.u32 %v14053_v43, 16 }
  0x47   : > { %11171 = vmatpush3.bf16.msra.mxu0 %v13562_v1  ;;  %v493_v1 = vshrl.u32 %v13986_v44, 16  ;;  %v1777_v9 = vsel %vm432_vm0, %v1772_v59, %v1776_v61  ;;  %v13597_v59 = vld [vmem:[%s16063_s1 + $0x30] sm:$0xff]  }
  0x48   : > { %11172 = vmatprep.subr.bf16.mxu0 %v13568_v24  ;;  %10995 = vmatpush3.bf16.msra.mxu1 %v13571_v13  ;;  %v2069_v13 = vld [vmem:[%s13828_s10 + $0x8] sm:$0xe] }
  0x49   : > { %10969 = vmatmul.mubr.bf16.gmra.mrb[4].mxu1 %v468_v29  ;;  %10996 = vmatprep.subr.bf16.mxu1 %v13577_v41  ;;  %v495_v14 = vor.u32 %v493_v1, %v491_v58  ;;  %v9377_v21 = vcombine.low %v2069_v13, %v13888_v20  ;;  %v505_v29 = vshll.u32 %v14020_v12, 16  ;;  %v513_v20 = vshll.u32 %v14025_v22, 16  ;;  %v14064_v58 = vld [vmem:[%s13828_s10 + $0x68] sm:$0xff]  }
  0x4a   : > { %11145 = vmatmul.mubr.bf16.gmra.mrb[4].mxu0 %v1753_v38  ;;  %10972 = vmatprep.mubr.bf16.mxu1 %v476_v39  ;;  %v13583_v38 = vld [vmem:[%s16063_s1 + $0x178] sm:$0xff]   ;;  %v533_v1 = vshrl.u32 %v14053_v43, 16  ;;  %v537_v2 = vshll.u32 %v14064_v58, 16 }
  0x4b   : > { %11173 = vmatpush3.bf16.msra.mxu0 %v13568_v24  ;;  %11148 = vmatprep.mubr.bf16.mxu0 %v1761_v42  ;;  %v14027_v24 = vrot.slane %v1782_v6, 1  ;;  %v2090_v31 = vrot.slane %v9377_v21, 1  ;;  %v500_v34 = vsel %vm432_vm0, %v495_v14, %v499_v11  ;;  %v521_v42 = vshll.u32 %v14041_v37, 16  ;;  %v13594_v14 = vld [vmem:[%s16063_s1 + $0x190] sm:$0xff]   ;;  %v13602_v21 = vld [vmem:[%s16063_s1 + $0x80] sm:$0xff]  }
  0x4c   : > { %11174 = vmatprep.subr.bf16.mxu0 %v13569_v32  ;;  %10997 = vmatpush3.bf16.msra.mxu1 %v13577_v41  ;;  %v515_v45 = vrot.slane %v513_v20, 1  ;;  %v531_v6 = vrot.slane %v529_v35, 1  ;;  %v539_v13 = vrot.slane %v537_v2, 1 }
  0x4d   : > { %10998 = vmatprep.subr.bf16.mxu1 %v13584_v7  ;;  %v1785_v17 = vsel %vm432_vm0, %v1780_v19, %v14027_v24  ;;  %v2092_v41 = vsel %vm984_vm1, %v2090_v31, %v2091_v30  ;;  %v523_v54 = vrot.slane %v521_v42, 1  ;;  %v2099_v19 = vrot.slane %v13958_v18, 1  ;;  %v13599_v31 = vld [vmem:[%s16063_s1 + $0x198] sm:$0xff]   ;;  %v13608_v42 = vld [vmem:[%s16063_s1 + $0x1b0] sm:$0xff]  }
  0x4e   : > { %v519_v53 = vor.u32 %v517_v40, %v515_v45  ;;  %v535_v11 = vor.u32 %v533_v1, %v531_v6  ;;  %v14163_v1 = vld [vmem:[%s13828_s10 + $0x78] ss:$0 sps:$4 sm:$0x11]  }
  0x4f   : > { %11175 = vmatpush3.bf16.msra.mxu0 %v13569_v32  ;;  %v507_v32 = vrot.slane %v505_v29, 1  ;;  %v527_v8 = vor.u32 %v525_v62, %v523_v54 }
  0x50   : > { %11176 = vmatprep.subr.bf16.mxu0 %v13575_v57  ;;  %10999 = vmatpush3.bf16.msra.mxu1 %v13584_v7  ;;  %v13598_v7 = vld [vmem:[%s16063_s1 + $0x38] sm:$0xff]  }
  0x51   : > { %10973 = vmatmul.mubr.bf16.gmra.mrb[8].mxu1 %v484_v0  ;;  %v508_v39 = vsel %vm432_vm0, %v503_v27, %v507_v32  ;;  %11000 = vmatprep.subr.bf16.mxu1 %v13589_v33  ;;  %v511_v49 = vor.u32 %v509_v36, %v507_v32  ;;  %v2094_v0 = vsel %vm984_vm1, %v2091_v30, %v2093_v50  ;;  %v541_v27 = vshrl.u32 %v14064_v58, 16  ;;  %v13600_v36 = vld [vmem:[%s16063_s1 + $0x1a0] sm:$0xff]  }
  0x52   : > { %11149 = vmatmul.mubr.bf16.gmra.mrb[8].mxu0 %v1769_v3  ;;  %10976 = vmatprep.mubr.bf16.mxu1 %v492_v5  ;;  %v14081_v5 = vld [vmem:[%s13828_s10 + $0x70] ss:$0 sps:$4 sm:$0x11]   ;;  %v540_v30 = vsel %vm432_vm0, %v535_v11, %v539_v13 }
  0x53   : > { %11177 = vmatpush3.bf16.msra.mxu0 %v13575_v57  ;;  %11152 = vmatprep.mubr.bf16.mxu0 %v1777_v9  ;;  %v2095_v57 = vrot.slane %v13924_v51, 1  ;;  %v516_v61 = vsel %vm432_vm0, %v511_v49, %v515_v45  ;;  %v524_v51 = vsel %vm432_vm0, %v519_v53, %v523_v54  ;;  %v2097_v9 = vrot.slane %v13936_v60, 1  ;;  %v14121_v45 = vld [vmem:[%s13828_s10 + $0x58] sm:$0xff]   ;;  %v13605_v49 = vld [vmem:[%s16063_s1 + $0x88] sm:$0xff]   ;;  %v13616_v54 = vld [vmem:[%s16063_s1 + $0x1c0] sm:$0xff]  }
  0x54   : > { %11178 = vmatprep.subr.bf16.mxu0 %v13576_v4  ;;  %11001 = vmatpush3.bf16.msra.mxu1 %v13589_v33  ;;  %v545_v60 = vshll.u32 %v14081_v5, 16  ;;  %v543_v20 = vor.u32 %v541_v27, %v539_v13  ;;  %v2101_v33 = vrot.slane %v13969_v28, 1  ;;  %v13604_v28 = vld [vmem:[%s16063_s1 + $0x1a8] sm:$0xff]   ;;  %v13622_v11 = vld [vmem:[%s16063_s1 + $0x1d0] sm:$0xff]   ;;  %v963_v13 = vld [vmem:[%s13828_s10] sm:$0xe] }
  0x55   : > { %11002 = vmatprep.subr.bf16.mxu1 %v13593_v48  ;;  %v2096_v3 = vsel %vm984_vm1, %v2093_v50, %v2095_v57  ;;  %v2098_v29 = vsel %vm984_vm1, %v2095_v57, %v2097_v9  ;;  %v2100_v18 = vsel %vm984_vm1, %v2097_v9, %v2099_v19  ;;  %v13612_v50 = vld [vmem:[%s16063_s1 + $0x1b8] sm:$0xff]   ;;  %v14145_v57 = vld [vmem:[%s13828_s10 + $0x68] sm:$0xff]   ;;  %v13618_v9 = vld [vmem:[%s13828_s10 + $0x20] sm:$0xff]  }
  0x56   : > { %v547_v32 = vrot.slane %v545_v60, 1  ;;  %v2113_v62 = vrot.slane %v14145_v57, 1  ;;  %v13627_v27 = vld [vmem:[%s16063_s1 + $0x1d8] sm:$0xff]  }
  0x57   : > { %11179 = vmatpush3.bf16.msra.mxu0 %v13576_v4  ;;  %v13591_v4 = vld [vmem:[%s16063_s1 + $0x188] sm:$0xff]  }
  0x58   : > { %11180 = vmatprep.subr.bf16.mxu0 %v13582_v26  ;;  %11003 = vmatpush3.bf16.msra.mxu1 %v13593_v48 }
  0x59   : > { %10977 = vmatmul.mubr.bf16.gmra.mrb[12].mxu1 %v500_v34  ;;  %11004 = vmatprep.subr.bf16.mxu1 %v13597_v59  ;;  %v2103_v34 = vrot.slane %v13990_v46, 1  ;;  %v2105_v46 = vrot.slane %v14003_v63, 1  ;;  %v14129_v63 = vld [vmem:[%s13828_s10 + $0x60] sm:$0xff]  }
  0x5a   : > { %11153 = vmatmul.mubr.bf16.gmra.mrb[12].mxu0 %v1785_v17  ;;  %10980 = vmatprep.mubr.bf16.mxu1 %v508_v39  ;;  %v548_v17 = vsel %vm432_vm0, %v543_v20, %v547_v32  ;;  %v2102_v39 = vsel %vm984_vm1, %v2099_v19, %v2101_v33  ;;  %v2111_v53 = vrot.slane %v14129_v63, 1  ;;  %v13623_v19 = vld [vmem:[%s13828_s10 + $0x30] sm:$0xff]   ;;  %v13629_v32 = vld [vmem:[%s13828_s10 + $0x40] sm:$0xff]  }
  0x5b   : > { %11181 = vmatpush3.bf16.msra.mxu0 %v13582_v26  ;;  %11184 = vmatprep.mubr.bf16.mxu0 %v2092_v41  ;;  %v532_v26 = vsel %vm432_vm0, %v527_v8, %v531_v6  ;;  %v2104_v40 = vsel %vm984_vm1, %v2101_v33, %v2103_v34  ;;  %v2106_v48 = vsel %vm984_vm1, %v2103_v34, %v2105_v46  ;;  %v13615_v8 = vld [vmem:[%s13828_s10 + $0x18] sm:$0xff]   ;;  %v13635_v33 = vld [vmem:[%s16063_s1 + $0x1e8] sm:$0xff]   ;;  %v13689_v34 = vld [vmem:[%s13828_s10 + $0x10] sm:$0xff]  }
  0x5c   : > { %11182 = vmatprep.subr.bf16.mxu0 %v13583_v38  ;;  %11005 = vmatpush3.bf16.msra.mxu1 %v13597_v59  ;;  %v14149_v59 = vld [vmem:[%s13828_s10 + $0x70] sm:$0xff]  }
  0x5d   : > { %11006 = vmatprep.subr.bf16.mxu1 %v13598_v7 }
  0x5f   : > { %11183 = vmatpush3.bf16.msra.mxu0 %v13583_v38  ;;  %v13601_v38 = vld [vmem:[%s13828_s10 + $0x50] sm:$0xff]  }
  0x60   : > { %11212 = vmatprep.subr.bf16.mxu0 %v13588_v52  ;;  %11007 = vmatpush3.bf16.msra.mxu1 %v13598_v7  ;;  %v2107_v41 = vrot.slane %v13601_v38, 1  ;;  %v13614_v7 = vld [vmem:[%s13828_s10 + $0x10] sm:$0xff]  }
  0x61   : > { %10981 = vmatmul.mubr.bf16.gmra.mrb[16].mxu1 %v516_v61  ;;  %11036 = vmatprep.subr.bf16.mxu1 %v13602_v21  ;;  %v13613_v61 = vld [vmem:[%s16063_s1 + $0x98] sm:$0xff]  }
  0x62   : > { %11185 = vmatmul.mubr.bf16.vlgmr.msra.gmra.mrb[0].mxu0 %v2094_v0  ;;  %10984 = vmatprep.mubr.bf16.mxu1 %v524_v51  ;;  %v2115_v0 = vrot.slane %v14149_v59, 1  ;;  %v13617_v51 = vld [vmem:[%s16063_s1 + $0xa0] sm:$0xff]  }
  0x63   : > { %11213 = vmatpush3.bf16.msra.mxu0 %v13588_v52  ;;  %11188 = vmatprep.mubr.bf16.mxu0 %v2096_v3  ;;  %v2109_v52 = vrot.slane %v14121_v45, 1  ;;  %v2117_v3 = vrot.slane %v14163_v1, 1 }
  0x64   : > { %11214 = vmatprep.subr.bf16.mxu0 %v13591_v4  ;;  %v2116_v2 = vsel %vm984_vm1, %v2113_v62, %v2115_v0 }
  0x65   : > { %v2112_v35 = vsel %vm984_vm1, %v2109_v52, %v2111_v53  ;;  %v2118_v6 = vsel %vm984_vm1, %v2115_v0, %v2117_v3  ;;  %v13637_v0 = vld [vmem:[%s13828_s10 + $0x60] sm:$0xff]   ;;  %v13694_v3 = vld [vmem:[%s13828_s10 + $0x38] sm:$0xff]  }
  0x67   : > { %11215 = vmatpush3.bf16.msra.mxu0 %v13591_v4  ;;  %v13624_v4 = vld [vmem:[%s16063_s1 + $0xb0] sm:$0xff]  }
  0x68   : > { %11216 = vmatprep.subr.bf16.mxu0 %v13594_v14 }
  0x69   : > { %10985 = vmatmul.mubr.bf16.gmra.mrb[20].mxu1 %v532_v26 }
  0x6a   : > { %11189 = vmatmul.mubr.bf16.gmra.mrb[4].mxu0 %v2098_v29  ;;  %10988 = vmatprep.mubr.bf16.mxu1 %v540_v30  ;;  %v13688_v29 = vld [vmem:[%s13828_s10 + $0x8] sm:$0xff]  }
  0x6b   : > { %11192 = vmatprep.mubr.bf16.mxu0 %v2100_v18  ;;  %11217 = vmatpush3.bf16.msra.mxu0 %v13594_v14  ;;  %v13620_v14 = vld [vmem:[%s13828_s10 + $0x28] sm:$0xff]   ;;  %v986_v30 = vrot.slane %v13688_v29, 1  ;;  %v13631_v18 = vld [vmem:[%s16063_s1 + $0x1e0] sm:$0xff]  }
  0x6c   : > { %11218 = vmatprep.subr.bf16.mxu0 %v13599_v31 }
  0x6f   : > { %11219 = vmatpush3.bf16.msra.mxu0 %v13599_v31  ;;  %v13625_v31 = vld [vmem:[%s13828_s10 + $0x38] sm:$0xff]  }
  0x70   : > { %11220 = vmatprep.subr.bf16.mxu0 %v13600_v36 }
  0x71   : > { %10989 = vmatmul.mubr.bf16.gmra.mrb[24].mxu1 %v548_v17  ;;  %v13690_v17 = vld [vmem:[%s13828_s10 + $0x18] sm:$0xff]  }
  0x72   : > { %11193 = vmatmul.mubr.bf16.gmra.mrb[8].mxu0 %v2102_v39  ;;  %11008 = vmatprep.mubr.bf16.mxu1 %v13875_v15  ;;  %v2108_v15 = vsel %vm984_vm1, %v2105_v46, %v2107_v41  ;;  %v990_v38 = vrot.slane %v13690_v17, 1  ;;  %v13639_v39 = vld [vmem:[%s16063_s1 + $0x1f0] sm:$0xff]   ;;  %v13658_v17 = vld [vmem:[%s16063_s1 + $0xf8] sm:$0xff]  }
  0x73   : > { %11196 = vmatprep.mubr.bf16.mxu0 %v2104_v40  ;;  %11221 = vmatpush3.bf16.msra.mxu0 %v13600_v36  ;;  %v988_v36 = vrot.slane %v13689_v34, 1 }
  0x74   : > { %11222 = vmatprep.subr.bf16.mxu0 %v13604_v28 }
  0x75   : > { %v989_v40 = vsel %vm984_vm1, %v986_v30, %v988_v36  ;;  %v991_v46 = vsel %vm984_vm1, %v988_v36, %v990_v38 }
  0x77   : > { %11223 = vmatpush3.bf16.msra.mxu0 %v13604_v28  ;;  %v13630_v28 = vld [vmem:[%s13828_s10 + $0x48] sm:$0xff]  }
  0x78   : > { %11224 = vmatprep.subr.bf16.mxu0 %v13608_v42 }
  0x79   : > { %11009 = vmatmul.mubr.bf16.vlgmr.msra.gmra.mrb[0].mxu1 %v13878_v16  ;;  %v13609_v16 = vld [vmem:[%s16063_s1 + $0x90] sm:$0xff]  }
  0x7a   : > { %11197 = vmatmul.mubr.bf16.gmra.mrb[12].mxu0 %v2106_v48  ;;  %11012 = vmatprep.mubr.bf16.mxu1 %v13895_v25  ;;  %v2110_v25 = vsel %vm984_vm1, %v2107_v41, %v2109_v52  ;;  %v13632_v41 = vld [vmem:[%s13828_s10 + $0x50] sm:$0xff]   ;;  %v13643_v48 = vld [vmem:[%s16063_s1 + $0x1f8] sm:$0xff]  }
  0x7b   : > { %11200 = vmatprep.mubr.bf16.mxu0 %v2108_v15  ;;  %11037 = vmatpush3.bf16.msra.mxu1 %v13602_v21  ;;  %v13687_v21 = vld [vmem:[%s13828_s10 + $0x4] sm:$0xf] }
  0x7c   : > { %11038 = vmatprep.subr.bf16.mxu1 %v13605_v49  ;;  %11225 = vmatpush3.bf16.msra.mxu0 %v13608_v42  ;;  %v9275_v26 = vcombine.low %v963_v13, %v13687_v21  ;;  %v13636_v42 = vld [vmem:[%s16063_s1 + $0xc8] sm:$0xff]   ;;  %v1000_v21 = vrot.slane %v13996_v55, 1 }
  0x7d   : > { %11226 = vmatprep.subr.bf16.mxu0 %v13612_v50 }
  0x7e   : > { %v985_v60 = vrot.slane %v9275_v26, 1  ;;  %v14276_v26 = vld [vmem:[%s13828_s10 + $0x20] sm:$0xff]  }
  0x7f   : > { %11039 = vmatpush3.bf16.msra.mxu1 %v13605_v49  ;;  %v13691_v49 = vld [vmem:[%s13828_s10 + $0x20] sm:$0xff]   ;;  %v2843_v34 = vshrl.u32 %v14276_v26, 16 }
  0x80   : > { %11040 = vmatprep.subr.bf16.mxu1 %v13609_v16  ;;  %11227 = vmatpush3.bf16.msra.mxu0 %v13612_v50  ;;  %v987_v20 = vsel %vm984_vm1, %v985_v60, %v986_v30  ;;  %v992_v15 = vrot.slane %v13691_v49, 1  ;;  %v13692_v50 = vld [vmem:[%s13828_s10 + $0x28] sm:$0xff]  }
  0x81   : > { %11013 = vmatmul.mubr.bf16.gmra.mrb[4].mxu1 %v13917_v47  ;;  %11256 = vmatprep.subr.bf16.mxu0 %v13616_v54  ;;  %v2114_v47 = vsel %vm984_vm1, %v2111_v53, %v2113_v62  ;;  %v994_v52 = vrot.slane %v13692_v50, 1  ;;  %v13640_v53 = vld [vmem:[%s16063_s1 + $0xd0] sm:$0xff]   ;;  %v14280_v30 = vld [vmem:[%s13828_s10 + $0x28] sm:$0xff]  }
  0x82   : > { %11201 = vmatmul.mubr.bf16.gmra.mrb[16].mxu0 %v2110_v25  ;;  %11016 = vmatprep.mubr.bf16.mxu1 %v13929_v56  ;;  %v13621_v56 = vld [vmem:[%s16063_s1 + $0xa8] sm:$0xff]   ;;  %v14247_v25 = vld [vmem:[%s16063_s1 + $0x200] sm:$0xff]   ;;  %v2847_v36 = vshll.u32 %v14280_v30, 16 }
  0x83   : > { %11204 = vmatprep.mubr.bf16.mxu0 %v2112_v35  ;;  %11041 = vmatpush3.bf16.msra.mxu1 %v13609_v16  ;;  %v2704_v16 = vld [vmem:[%s13828_s10 + $0x10] sm:$0xf]  ;;  %v993_v35 = vsel %vm984_vm1, %v990_v38, %v992_v15  ;;  %v995_v62 = vsel %vm984_vm1, %v992_v15, %v994_v52  ;;  %v1004_v38 = vrot.slane %v14025_v22, 1 }
  0x84   : > { %11042 = vmatprep.subr.bf16.mxu1 %v13613_v61 }
  0x87   : > { %11043 = vmatpush3.bf16.msra.mxu1 %v13613_v61  ;;  %v13634_v61 = vld [vmem:[%s13828_s10 + $0x58] sm:$0xff]  }
  0x88   : > { %11044 = vmatprep.subr.bf16.mxu1 %v13617_v51 }
  0x89   : > { %11017 = vmatmul.mubr.bf16.gmra.mrb[8].mxu1 %v13950_v10  ;;  %v13626_v10 = vld [vmem:[%s16063_s1 + $0xb8] sm:$0xff]  }
  0x8a   : > { %11205 = vmatmul.mubr.bf16.gmra.mrb[20].mxu0 %v2114_v47  ;;  %11020 = vmatprep.mubr.bf16.mxu1 %v13962_v23  ;;  %v14186_v23 = vld [vmem:[%s16063_s1 + $0xc0] sm:$0xff]  }
  0x8b   : > { %11208 = vmatprep.mubr.bf16.mxu0 %v2116_v2  ;;  %11045 = vmatpush3.bf16.msra.mxu1 %v13617_v51  ;;  %v13644_v51 = vld [vmem:[%s16063_s1 + $0xd8] sm:$0xff]   ;;  %v13693_v2 = vld [vmem:[%s13828_s10 + $0x30] sm:$0xff]  }
  0x8c   : > { %11046 = vmatprep.subr.bf16.mxu1 %v13621_v56 }
  0x8f   : > { %11047 = vmatpush3.bf16.msra.mxu1 %v13621_v56  ;;  %v996_v56 = vrot.slane %v13693_v2, 1  ;;  %v1010_v2 = vrot.slane %v14064_v58, 1 }
  0x90   : > { %11048 = vmatprep.subr.bf16.mxu1 %v13624_v4 }
  0x91   : > { %11021 = vmatmul.mubr.bf16.gmra.mrb[12].mxu1 %v13986_v44  ;;  %v13619_v44 = vld [vmem:[%s16063_s1 + $0x1c8] sm:$0xff]  }
  0x92   : > { %11209 = vmatmul.mubr.bf16.gmra.mrb[24].mxu0 %v2118_v6  ;;  %11024 = vmatprep.mubr.bf16.mxu1 %v13996_v55  ;;  %v14261_v6 = vld [vmem:[%s13828_s10 + $0x18] sm:$0xff]   ;;  %v2839_v55 = vshll.u32 %v14276_v26, 16 }
  0x93   : > { %11228 = vmatprep.mubr.bf16.mxu0 %v13614_v7  ;;  %11049 = vmatpush3.bf16.msra.mxu1 %v13624_v4  ;;  %v998_v4 = vrot.slane %v13694_v3, 1 }
  0x94   : > { %11050 = vmatprep.subr.bf16.mxu1 %v13626_v10 }
  0x97   : > { %11051 = vmatpush3.bf16.msra.mxu1 %v13626_v10  ;;  %v13649_v10 = vld [vmem:[%s16063_s1 + $0xe0] sm:$0xff]  }
  0x98   : > { %11080 = vmatprep.subr.bf16.mxu1 %v14186_v23 }
  0x99   : > { %11025 = vmatmul.mubr.bf16.gmra.mrb[16].mxu1 %v14020_v12 }
  0x9a   : > { %11229 = vmatmul.mubr.bf16.vlgmr.msra.gmra.mrb[0].mxu0 %v13615_v8  ;;  %11028 = vmatprep.mubr.bf16.mxu1 %v14025_v22  ;;  %v13638_v8 = vld [vmem:[%s13828_s10 + $0x68] sm:$0xff]  }
  0x9b   : > { %11257 = vmatpush3.bf16.msra.mxu0 %v13616_v54  ;;  %11232 = vmatprep.mubr.bf16.mxu0 %v13618_v9  ;;  %v14242_v54 = vld [vmem:[%s13828_s10 + $0x14] sm:$0xf]  ;;  %v999_v9 = vsel %vm984_vm1, %v996_v56, %v998_v4 }
  0x9c   : > { %11258 = vmatprep.subr.bf16.mxu0 %v13619_v44  ;;  %v9440_v47 = vcombine.low %v2704_v16, %v14242_v54 }
  0x9e   : > { %v2826_v7 = vshll.u32 %v9440_v47, 16 }
  0x9f   : > { %11259 = vmatpush3.bf16.msra.mxu0 %v13619_v44  ;;  %v13641_v44 = vld [vmem:[%s13828_s10 + $0x70] sm:$0xff]  }
  0xa0   : > { %11260 = vmatprep.subr.bf16.mxu0 %v13622_v11  ;;  %v2828_v13 = vrot.slane %v2826_v7, 1  ;;  %v14331_v7 = vld [vmem:[%s13828_s10 + $0x48] sm:$0xff]  }
  0xa1   : > { %11029 = vmatmul.mubr.bf16.gmra.mrb[20].mxu1 %v14041_v37 }
  0xa2   : > { %11233 = vmatmul.mubr.bf16.gmra.mrb[4].mxu0 %v13620_v14  ;;  %11032 = vmatprep.mubr.bf16.mxu1 %v14053_v43  ;;  %v2831_v14 = vshll.u32 %v14261_v6, 16 }
  0xa3   : > { %11236 = vmatprep.mubr.bf16.mxu0 %v13623_v19  ;;  %11261 = vmatpush3.bf16.msra.mxu0 %v13622_v11  ;;  %v2824_v11 = vshrl.u32 %v9440_v47, 16  ;;  %v13653_v19 = vld [vmem:[%s16063_s1 + $0xe8] sm:$0xff]  }
  0xa4   : > { %11262 = vmatprep.subr.bf16.mxu0 %v13627_v27  ;;  %v2833_v29 = vrot.slane %v2831_v14, 1 }
  0xa5   : > { %v2829_v60 = vor.u32 %v2828_v13, %v2824_v11  ;;  %v2879_v11 = vshll.u32 %v14331_v7, 16  ;;  %v1012_v13 = vrot.slane %v14081_v5, 1 }
  0xa7   : > { %11263 = vmatpush3.bf16.msra.mxu0 %v13627_v27  ;;  %v1002_v27 = vrot.slane %v14020_v12, 1  ;;  %v2835_v12 = vshrl.u32 %v14261_v6, 16 }
  0xa8   : > { %11264 = vmatprep.subr.bf16.mxu0 %v13631_v18 }
  0xa9   : > { %11033 = vmatmul.mubr.bf16.gmra.mrb[24].mxu1 %v14064_v58  ;;  %v1005_v49 = vsel %vm984_vm1, %v1002_v27, %v1004_v38 }
  0xaa   : > { %11237 = vmatmul.mubr.bf16.gmra.mrb[8].mxu0 %v13625_v31  ;;  %11052 = vmatprep.mubr.bf16.mxu1 %v987_v20  ;;  %v1001_v31 = vsel %vm984_vm1, %v998_v4, %v1000_v21  ;;  %v13642_v20 = vld [vmem:[%s13828_s10 + $0x78] sm:$0xff]  }
  0xab   : > { %11240 = vmatprep.mubr.bf16.mxu0 %v13629_v32  ;;  %11265 = vmatpush3.bf16.msra.mxu0 %v13631_v18  ;;  %v13656_v18 = vld [vmem:[%s16063_s1 + $0xf0] sm:$0xff]   ;;  %v1003_v32 = vsel %vm984_vm1, %v1000_v21, %v1002_v27 }
  0xac   : > { %11266 = vmatprep.subr.bf16.mxu0 %v13635_v33 }
  0xaf   : > { %11267 = vmatpush3.bf16.msra.mxu0 %v13635_v33  ;;  %v2834_v33 = vsel %vm432_vm0, %v2829_v60, %v2833_v29  ;;  %v2881_v60 = vrot.slane %v2879_v11, 1 }
  0xb0   : > { %11268 = vmatprep.subr.bf16.mxu0 %v13639_v39 }
  0xb1   : > { %11053 = vmatmul.mubr.bf16.vlgmr.msra.gmra.mrb[0].mxu1 %v989_v40  ;;  %v14298_v40 = vld [vmem:[%s13828_s10 + $0x30] sm:$0xff]  }
  0xb2   : > { %11241 = vmatmul.mubr.bf16.gmra.mrb[12].mxu0 %v13630_v28  ;;  %11056 = vmatprep.mubr.bf16.mxu1 %v991_v46  ;;  %v2837_v28 = vor.u32 %v2835_v12, %v2833_v29  ;;  %v1006_v46 = vrot.slane %v14041_v37, 1  ;;  %v2855_v15 = vshll.u32 %v14298_v40, 16  ;;  %v2859_v16 = vshrl.u32 %v14298_v40, 16  ;;  %v13664_v29 = vld [vmem:[%s16063_s1 + $0x220] sm:$0xff]  }
  0xb3   : > { %11244 = vmatprep.mubr.bf16.mxu0 %v13632_v41  ;;  %11081 = vmatpush3.bf16.msra.mxu1 %v14186_v23  ;;  %v997_v23 = vsel %vm984_vm1, %v994_v52, %v996_v56  ;;  %v2851_v52 = vshrl.u32 %v14280_v30, 16  ;;  %v13654_v56 = vld [vmem:[%s16063_s1 + $0x210] sm:$0xff]  }
  0xb4   : > { %11082 = vmatprep.subr.bf16.mxu1 %v13636_v42  ;;  %11269 = vmatpush3.bf16.msra.mxu0 %v13639_v39  ;;  %v2841_v39 = vrot.slane %v2839_v55, 1  ;;  %v1007_v50 = vsel %vm984_vm1, %v1004_v38, %v1006_v46  ;;  %v14366_v38 = vld [vmem:[%s13828_s10 + $0x60] sm:$0xff]  }
  0xb5   : > { %11270 = vmatprep.subr.bf16.mxu0 %v13643_v48 }
  0xb6   : > { %v2845_v41 = vor.u32 %v2843_v34, %v2841_v39  ;;  %v2842_v22 = vsel %vm432_vm0, %v2837_v28, %v2841_v39 }
  0xb7   : > { %11083 = vmatpush3.bf16.msra.mxu1 %v13636_v42  ;;  %v2849_v42 = vrot.slane %v2847_v36, 1  ;;  %v13669_v36 = vld [vmem:[%s16063_s1 + $0x228] sm:$0xff]  }
  0xb8   : > { %11084 = vmatprep.subr.bf16.mxu1 %v13640_v53  ;;  %11271 = vmatpush3.bf16.msra.mxu0 %v13643_v48  ;;  %v14302_v48 = vld [vmem:[%s13828_s10 + $0x38] sm:$0xff]  }
  0xb9   : > { %11057 = vmatmul.mubr.bf16.gmra.mrb[4].mxu1 %v993_v35  ;;  %11300 = vmatprep.subr.bf16.mxu0 %v14247_v25  ;;  %v2850_v37 = vsel %vm432_vm0, %v2845_v41, %v2849_v42  ;;  %v2863_v35 = vshll.u32 %v14302_v48, 16  ;;  %v2853_v47 = vor.u32 %v2851_v52, %v2849_v42  ;;  %v2867_v58 = vshrl.u32 %v14302_v48, 16  ;;  %v14369_v41 = vld [vmem:[%s13828_s10 + $0x68] sm:$0xff]   ;;  %v13674_v42 = vld [vmem:[%s16063_s1 + $0x230] sm:$0xff]  }
  0xba   : > { %11245 = vmatmul.mubr.bf16.gmra.mrb[16].mxu0 %v13634_v61  ;;  %11060 = vmatprep.mubr.bf16.mxu1 %v995_v62  ;;  %v14318_v61 = vld [vmem:[%s16063_s1 + $0x100] sm:$0xff]   ;;  %v1008_v62 = vrot.slane %v14053_v43, 1 }
  0xbb   : > { %11248 = vmatprep.mubr.bf16.mxu0 %v13637_v0  ;;  %11085 = vmatpush3.bf16.msra.mxu1 %v13640_v53  ;;  %v13651_v53 = vld [vmem:[%s16063_s1 + $0x208] sm:$0xff]   ;;  %v2857_v0 = vrot.slane %v2855_v15, 1  ;;  %v2865_v4 = vrot.slane %v2863_v35, 1  ;;  %v13665_v15 = vld [vmem:[%s13828_s10 + $0x18] sm:$0xff]  }
  0xbc   : > { %11086 = vmatprep.subr.bf16.mxu1 %v13644_v51  ;;  %v1009_v43 = vsel %vm984_vm1, %v1006_v46, %v1008_v62  ;;  %v13679_v35 = vld [vmem:[%s16063_s1 + $0x238] sm:$0xff]  }
  0xbd   : > { %v2861_v3 = vor.u32 %v2859_v16, %v2857_v0  ;;  %v2869_v21 = vor.u32 %v2867_v58, %v2865_v4  ;;  %v2911_v16 = vshll.u32 %v14369_v41, 16 }
  0xbf   : > { %11087 = vmatpush3.bf16.msra.mxu1 %v13644_v51  ;;  %v14323_v51 = vld [vmem:[%s13828_s10 + $0x40] sm:$0xff]  }
  0xc0   : > { %11088 = vmatprep.subr.bf16.mxu1 %v13649_v10 }
  0xc1   : > { %11061 = vmatmul.mubr.bf16.gmra.mrb[8].mxu1 %v997_v23  ;;  %v1011_v23 = vsel %vm984_vm1, %v1008_v62, %v1010_v2 }
  0xc2   : > { %11249 = vmatmul.mubr.bf16.gmra.mrb[20].mxu0 %v13638_v8  ;;  %11064 = vmatprep.mubr.bf16.mxu1 %v999_v9  ;;  %v2866_v8 = vsel %vm432_vm0, %v2861_v3, %v2865_v4  ;;  %v13659_v9 = vld [vmem:[%s16063_s1 + $0x218] sm:$0xff]   ;;  %v2913_v3 = vrot.slane %v2911_v16, 1 }
  0xc3   : > { %11252 = vmatprep.mubr.bf16.mxu0 %v13641_v44  ;;  %11089 = vmatpush3.bf16.msra.mxu1 %v13649_v10  ;;  %v2871_v10 = vshll.u32 %v14323_v51, 16  ;;  %v2875_v44 = vshrl.u32 %v14323_v51, 16  ;;  %v14393_v4 = vld [vmem:[%s13828_s10 + $0x78] sm:$0xff]  }
  0xc4   : > { %11090 = vmatprep.subr.bf16.mxu1 %v13653_v19 }
  0xc5   : > { %v2873_v14 = vrot.slane %v2871_v10, 1  ;;  %v13670_v10 = vld [vmem:[%s13828_s10 + $0x28] sm:$0xff]  }
  0xc7   : > { %11091 = vmatpush3.bf16.msra.mxu1 %v13653_v19  ;;  %v14346_v19 = vld [vmem:[%s13828_s10 + $0x50] sm:$0xff]   ;;  %v2877_v27 = vor.u32 %v2875_v44, %v2873_v14  ;;  %v2874_v55 = vsel %vm432_vm0, %v2869_v21, %v2873_v14  ;;  %v2927_v44 = vshll.u32 %v14393_v4, 16  ;;  %v14407_v14 = vld [vmem:[%s13828_s10 + $0x80] ss:$0 sps:$4 sm:$0x11]  }
  0xc8   : > { %11092 = vmatprep.subr.bf16.mxu1 %v13656_v18  ;;  %v2887_v5 = vshll.u32 %v14346_v19, 16 }
  0xc9   : > { %11065 = vmatmul.mubr.bf16.gmra.mrb[12].mxu1 %v1001_v31  ;;  %v1013_v31 = vsel %vm984_vm1, %v1010_v2, %v1012_v13  ;;  %v2882_v12 = vsel %vm432_vm0, %v2877_v27, %v2881_v60  ;;  %v13696_v2 = vld [vmem:[%s16063_s1 + $0x108] sm:$0xff]   ;;  %v2929_v27 = vrot.slane %v2927_v44, 1 }
  0xca   : > { %11253 = vmatmul.mubr.bf16.gmra.mrb[24].mxu0 %v13642_v20  ;;  %11068 = vmatprep.mubr.bf16.mxu1 %v1003_v32  ;;  %v13660_v20 = vld [vmem:[%s13828_s10 + $0x8] sm:$0xff]   ;;  %v2883_v32 = vshrl.u32 %v14331_v7, 16 }
  0xcb   : > { %11272 = vmatprep.mubr.bf16.mxu0 %v2834_v33  ;;  %11093 = vmatpush3.bf16.msra.mxu1 %v13656_v18  ;;  %v14352_v18 = vld [vmem:[%s13828_s10 + $0x58] sm:$0xff]   ;;  %v2891_v33 = vshrl.u32 %v14346_v19, 16 }
  0xcc   : > { %11094 = vmatprep.subr.bf16.mxu1 %v13658_v17  ;;  %v2895_v34 = vshll.u32 %v14352_v18, 16  ;;  %v2885_v39 = vor.u32 %v2883_v32, %v2881_v60  ;;  %v2899_v52 = vshrl.u32 %v14352_v18, 16  ;;  %v13698_v60 = vld [vmem:[%s16063_s1 + $0x118] sm:$0xff]   ;;  %v2935_v32 = vshll.u32 %v14407_v14, 16 }
  0xce   : > { %v2897_v46 = vrot.slane %v2895_v34, 1  ;;  %v13699_v34 = vld [vmem:[%s16063_s1 + $0x120] sm:$0xff]  }
  0xcf   : > { %11095 = vmatpush3.bf16.msra.mxu1 %v13658_v17  ;;  %v2889_v17 = vrot.slane %v2887_v5, 1 }
  0xd0   : > { %13027 = vmatprep.subr.bf16.mxu1 %v14318_v61 }
  0xd1   : > { %11069 = vmatmul.mubr.bf16.gmra.mrb[16].mxu1 %v1005_v49  ;;  %v2893_v28 = vor.u32 %v2891_v33, %v2889_v17  ;;  %v13662_v49 = vld [vmem:[%s13828_s10 + $0x10] sm:$0xff]  }
  0xd2   : > { %11273 = vmatmul.mubr.bf16.vlgmr.msra.gmra.mrb[0].mxu0 %v2842_v22  ;;  %11072 = vmatprep.mubr.bf16.mxu1 %v1007_v50  ;;  %v2903_v22 = vshll.u32 %v14366_v38, 16  ;;  %v2890_v50 = vsel %vm432_vm0, %v2885_v39, %v2889_v17  ;;  %v2937_v17 = vrot.slane %v2935_v32, 1 }
  0xd3   : > { %11301 = vmatpush3.bf16.msra.mxu0 %v14247_v25  ;;  %11276 = vmatprep.mubr.bf16.mxu0 %v2850_v37  ;;  %v2858_v25 = vsel %vm432_vm0, %v2853_v47, %v2857_v0  ;;  %v2898_v37 = vsel %vm432_vm0, %v2893_v28, %v2897_v46  ;;  %v14386_v0 = vld [vmem:[%s13828_s10 + $0x70] sm:$0xff]   ;;  %v2901_v47 = vor.u32 %v2899_v52, %v2897_v46  ;;  %v3196_v28 = vrot.slane %v14261_v6, 1  ;;  %v13700_v46 = vld [vmem:[%s16063_s1 + $0x128] sm:$0xff]   ;;  %v13702_v52 = vld [vmem:[%s16063_s1 + $0x138] sm:$0xff]  }
  0xd4   : > { %11302 = vmatprep.subr.bf16.mxu0 %v13651_v53  ;;  %v2905_v62 = vrot.slane %v2903_v22, 1  ;;  %v13701_v22 = vld [vmem:[%s16063_s1 + $0x130] sm:$0xff]   ;;  %v3198_v6 = vrot.slane %v14276_v26, 1  ;;  %v3202_v26 = vrot.slane %v14298_v40, 1 }
  0xd6   : > { %v3199_v16 = vsel %vm984_vm1, %v3196_v28, %v3198_v6 }
  0xd7   : > { %11303 = vmatpush3.bf16.msra.mxu0 %v13651_v53  ;;  %v2907_v53 = vshrl.u32 %v14366_v38, 16 }
  0xd8   : > { %11304 = vmatprep.subr.bf16.mxu0 %v13654_v56 }
  0xd9   : > { %11073 = vmatmul.mubr.bf16.gmra.mrb[20].mxu1 %v1009_v43  ;;  %v13667_v43 = vld [vmem:[%s13828_s10 + $0x20] sm:$0xff]  }
  0xda   : > { %11277 = vmatmul.mubr.bf16.gmra.mrb[4].mxu0 %v2858_v25  ;;  %11076 = vmatprep.mubr.bf16.mxu1 %v1011_v23  ;;  %v2919_v25 = vshll.u32 %v14386_v0, 16  ;;  %v2906_v23 = vsel %vm432_vm0, %v2901_v47, %v2905_v62  ;;  %v13685_v47 = vld [vmem:[%s13828_s10 + $0x68] sm:$0xff]  }
  0xdb   : > { %11280 = vmatprep.mubr.bf16.mxu0 %v2866_v8  ;;  %11305 = vmatpush3.bf16.msra.mxu0 %v13654_v56  ;;  %v2909_v56 = vor.u32 %v2907_v53, %v2905_v62  ;;  %v13697_v8 = vld [vmem:[%s16063_s1 + $0x110] sm:$0xff]   ;;  %v13683_v53 = vld [vmem:[%s13828_s10 + $0x58] sm:$0xff]   ;;  %v13684_v62 = vld [vmem:[%s13828_s10 + $0x60] sm:$0xff]  }
  0xdc   : > { %11306 = vmatprep.subr.bf16.mxu0 %v13659_v9  ;;  %v2921_v11 = vrot.slane %v2919_v25, 1 }
  0xdd   : > { %v2914_v58 = vsel %vm432_vm0, %v2909_v56, %v2913_v3  ;;  %v13703_v56 = vld [vmem:[%s13828_s10 + $0x48] sm:$0xff]  }
  0xdf   : > { %11307 = vmatpush3.bf16.msra.mxu0 %v13659_v9  ;;  %v2923_v9 = vshrl.u32 %v14386_v0, 16 }
  0xe0   : > { %11308 = vmatprep.subr.bf16.mxu0 %v13664_v29 }
  0xe1   : > { %11077 = vmatmul.mubr.bf16.gmra.mrb[24].mxu1 %v1013_v31  ;;  %v2925_v21 = vor.u32 %v2923_v9, %v2921_v11  ;;  %v3174_v31 = vld [vmem:[%s13828_s10 + $0x10] sm:$0xe] }
  0xe2   : > { %11281 = vmatmul.mubr.bf16.gmra.mrb[8].mxu0 %v2874_v55  ;;  %11096 = vmatprep.mubr.bf16.mxu1 %v13660_v20  ;;  %v13675_v20 = vld [vmem:[%s13828_s10 + $0x38] sm:$0xff]   ;;  %v2931_v55 = vshrl.u32 %v14393_v4, 16  ;;  %v9479_v33 = vcombine.low %v3174_v31, %v14242_v54  ;;  %v13677_v54 = vld [vmem:[%s13828_s10 + $0x40] sm:$0xff]   ;;  %v3212_v31 = vrot.slane %v14352_v18, 1 }
  0xe3   : > { %11284 = vmatprep.mubr.bf16.mxu0 %v2882_v12  ;;  %11309 = vmatpush3.bf16.msra.mxu0 %v13664_v29  ;;  %v13672_v29 = vld [vmem:[%s13828_s10 + $0x30] sm:$0xff]   ;;  %v2930_v12 = vsel %vm432_vm0, %v2925_v21, %v2929_v27  ;;  %v1806_v21 = vshll.u32 %v14129_v63, 16 }
  0xe4   : > { %11310 = vmatprep.subr.bf16.mxu0 %v13669_v36  ;;  %v3195_v39 = vrot.slane %v9479_v33, 1  ;;  %v1822_v33 = vshll.u32 %v14149_v59, 16 }
  0xe7   : > { %11311 = vmatpush3.bf16.msra.mxu0 %v13669_v36  ;;  %v2933_v36 = vor.u32 %v2931_v55, %v2929_v27 }
  0xe8   : > { %11312 = vmatprep.subr.bf16.mxu0 %v13674_v42 }
  0xe9   : > { %11097 = vmatmul.mubr.bf16.vlgmr.msra.gmra.mrb[0].mxu1 %v13662_v49  ;;  %v2938_v49 = vsel %vm432_vm0, %v2933_v36, %v2937_v17  ;;  %v3214_v36 = vrot.slane %v14366_v38, 1 }
  0xea   : > { %11285 = vmatmul.mubr.bf16.gmra.mrb[12].mxu0 %v2890_v50  ;;  %11100 = vmatprep.mubr.bf16.mxu1 %v13665_v15  ;;  %v3197_v15 = vsel %vm984_vm1, %v3195_v39, %v3196_v28  ;;  %v3200_v50 = vrot.slane %v14280_v30, 1  ;;  %v3204_v30 = vrot.slane %v14302_v48, 1  ;;  %v1824_v39 = vrot.slane %v1822_v33, 1 }
  0xeb   : > { %11288 = vmatprep.mubr.bf16.mxu0 %v2898_v37  ;;  %13035 = vmatpush3.bf16.msra.mxu1 %v14318_v61  ;;  %v2915_v61 = vshrl.u32 %v14369_v41, 16  ;;  %v13682_v37 = vld [vmem:[%s13828_s10 + $0x50] sm:$0xff]   ;;  %v3216_v28 = vrot.slane %v14369_v41, 1  ;;  %v3218_v41 = vrot.slane %v14386_v0, 1  ;;  %v13749_v0 = vmov 0  }
  0xec   : > { %13028 = vmatprep.subr.bf16.mxu1 %v13696_v2  ;;  %11313 = vmatpush3.bf16.msra.mxu0 %v13674_v42  ;;  %v13680_v42 = vld [vmem:[%s13828_s10 + $0x48] sm:$0xff]   ;;  %v3205_v25 = vsel %vm984_vm1, %v3202_v26, %v3204_v30 }
  0xed   : > { %11314 = vmatprep.subr.bf16.mxu0 %v13679_v35  ;;  %v2917_v13 = vor.u32 %v2915_v61, %v2913_v3  ;;  %v1786_v3 = vshrl.u32 %v13703_v56, 16  ;;  %v3208_v61 = vrot.slane %v14331_v7, 1  ;;  %v3210_v7 = vrot.slane %v14346_v19, 1 }
  0xef   : > { %13036 = vmatpush3.bf16.msra.mxu1 %v13696_v2  ;;  %v2922_v5 = vsel %vm432_vm0, %v2917_v13, %v2921_v11  ;;  %v3203_v2 = vsel %vm984_vm1, %v3200_v50, %v3202_v26  ;;  %v1788_v40 = vor.u32 %v1786_v3, %v14027_v24  ;;  %v1802_v13 = vshrl.u32 %v14121_v45, 16 }
  0xf0   : > { %13029 = vmatprep.subr.bf16.mxu1 %v13697_v8  ;;  %11315 = vmatpush3.bf16.msra.mxu0 %v13679_v35  ;;  %v3201_v35 = vsel %vm984_vm1, %v3198_v6, %v3200_v50  ;;  %v3211_v55 = vsel %vm984_vm1, %v3208_v61, %v3210_v7  ;;  %v3213_v19 = vsel %vm984_vm1, %v3210_v7, %v3212_v31  ;;  %v3220_v6 = vrot.slane %v14393_v4, 1 }
  0xf1   : > { %11101 = vmatmul.mubr.bf16.gmra.mrb[4].mxu1 %v13667_v43  ;;  %v13704_v43 = vld [vmem:[%s13828_s10 + $0x50] sm:$0xff]  }
  0xf2   : > { %11289 = vmatmul.mubr.bf16.gmra.mrb[16].mxu0 %v2906_v23  ;;  %11104 = vmatprep.mubr.bf16.mxu1 %v13670_v10  ;;  %v1790_v10 = vshll.u32 %v13704_v43, 16  ;;  %v3206_v23 = vrot.slane %v14323_v51, 1  ;;  %v1794_v9 = vshrl.u32 %v13704_v43, 16  ;;  %v3221_v50 = vsel %vm984_vm1, %v3218_v41, %v3220_v6 }
  0xf3   : > { %11292 = vmatprep.mubr.bf16.mxu0 %v2914_v58  ;;  %13037 = vmatpush3.bf16.msra.mxu1 %v13697_v8  ;;  %v13686_v58 = vld [vmem:[%s13828_s10 + $0x70] sm:$0xff]   ;;  %v1798_v8 = vshll.u32 %v14121_v45, 16 }
  0xf4   : > { %13030 = vmatprep.subr.bf16.mxu1 %v13698_v60  ;;  %v1792_v48 = vrot.slane %v1790_v10, 1  ;;  %v3207_v44 = vsel %vm984_vm1, %v3204_v30, %v3206_v23  ;;  %v3209_v51 = vsel %vm984_vm1, %v3206_v23, %v3208_v61  ;;  %v3551_v10 = vlaneseq }
  0xf5   : > { %v1800_v24 = vrot.slane %v1798_v8, 1  ;;  %v14513_v8 = vld [vmem:[%s16064_s2] ss:$0 sm:$0xff] }
  0xf6   : > { %v1793_v11 = vsel %vm432_vm0, %v1788_v40, %v1792_v48  ;;  %v1796_v27 = vor.u32 %v1794_v9, %v1792_v48  ;;  %v14506_v48 = vshrl.u32 %v3551_v10, 7 }
  0xf7   : > { %13038 = vmatpush3.bf16.msra.mxu1 %v13698_v60  ;;  %v1804_v60 = vor.u32 %v1802_v13, %v1800_v24 }
  0xf8   : > { %13031 = vmatprep.subr.bf16.mxu1 %v13699_v34  ;;  %v1801_v45 = vsel %vm432_vm0, %v1796_v27, %v1800_v24  ;;  %v3555_v61 = vadd.s32 24, %v14506_v48  ;;  %v3559_v13 = vadd.s32 56, %v14506_v48 }
  0xf9   : > { %11105 = vmatmul.mubr.bf16.gmra.mrb[8].mxu1 %v13672_v29  ;;  %v1808_v29 = vrot.slane %v1806_v21, 1 }
  0xfa   : > { %11293 = vmatmul.mubr.bf16.gmra.mrb[20].mxu0 %v2922_v5  ;;  %11108 = vmatprep.mubr.bf16.mxu1 %v13675_v20  ;;  %v1814_v20 = vshll.u32 %v14145_v57, 16  ;;  %v13705_v5 = vld [vmem:[%s13828_s10 + $0x60] sm:$0xff]   ;;  %s9768_s10 = smul.u32 120, %s13730_s21  ;;  %v3605_v7 = vand.u32 15, %v3555_v61 }
  0xfb   : > { %11296 = vmatprep.mubr.bf16.mxu0 %v2930_v12  ;;  %13039 = vmatpush3.bf16.msra.mxu1 %v13699_v34  ;;  %v1810_v63 = vshrl.u32 %v13705_v5, 16  ;;  %v1809_v32 = vsel %vm432_vm0, %v1804_v60, %v1808_v29  ;;  %v1818_v12 = vshrl.u32 %v14145_v57, 16  ;;  %v1826_v57 = vshrl.u32 %v14149_v59, 16 }
  0xfc   : > { %13032 = vmatprep.subr.bf16.mxu1 %v13700_v46  ;;  %v1816_v34 = vrot.slane %v1814_v20, 1  ;;  %s14487_s7 = scalar_lea.vmem [#allocation2], %s9768_s10  ;;  %vm3919_vm2 = vcmp.lt.s32.totalorder %v3605_v7, 14 }
  0xfd   : > { %v1812_v18 = vor.u32 %v1810_v63, %v1808_v29  ;;  %v1828_v38 = vor.u32 %v1826_v57, %v1824_v39  ;;  %3550 = vst [vmem:[%s14487_s7 + $0x70] sm:$0xff] %v13749_v0  ;;  %v3633_v63 = vand.u32 15, %v3559_v13 }
  0xfe   : > { %v1820_v17 = vor.u32 %v1818_v12, %v1816_v34 }
  0xff   : > { %13040 = vmatpush3.bf16.msra.mxu1 %v13700_v46  ;;  %v1817_v46 = vsel %vm432_vm0, %v1812_v18, %v1816_v34  ;;  %vm14523_vm4 = vcmp.lt.s32.totalorder %v3633_v63, 14 }
 0x100   : > { %13033 = vmatprep.subr.bf16.mxu1 %v13701_v22 }
 0x101   : > { %11109 = vmatmul.mubr.bf16.gmra.mrb[12].mxu1 %v13677_v54  ;;  %v1830_v54 = vshll.u32 %v14163_v1, 16  ;;  %v3219_v1 = vsel %vm984_vm1, %v3216_v28, %v3218_v41 }
 0x102   : > { %11297 = vmatmul.mubr.bf16.gmra.mrb[24].mxu0 %v2938_v49  ;;  %11112 = vmatprep.mubr.bf16.mxu1 %v13680_v42  ;;  %v3215_v42 = vsel %vm984_vm1, %v3212_v31, %v3214_v36  ;;  %v1825_v49 = vsel %vm432_vm0, %v1820_v17, %v1824_v39  ;;  %v3561_v17 = vadd.s32 72, %v14506_v48 }
 0x103   : > { %11316 = vmatprep.mubr.bf16.mxu0 %v3197_v15  ;;  %13041 = vmatpush3.bf16.msra.mxu1 %v13701_v22  ;;  %v3217_v15 = vsel %vm984_vm1, %v3214_v36, %v3216_v28  ;;  %v1832_v22 = vrot.slane %v1830_v54, 1  ;;  %v3563_v36 = vadd.s32 88, %v14506_v48 }
 0x104   : > { %13034 = vmatprep.subr.bf16.mxu1 %v13702_v52 }
 0x105   : > { %v1833_v59 = vsel %vm432_vm0, %v1828_v38, %v1832_v22  ;;  %v3661_v0 = vand.u32 15, %v3563_v36 }
 0x107   : > { %13042 = vmatpush3.bf16.msra.mxu1 %v13702_v52  ;;  %v3222_v52 = vrot.slane %v14407_v14, 1  ;;  %vm14537_vm6 = vcmp.lt.s32.totalorder %v3661_v0, 14 }
 0x109   : > { %11113 = vmatmul.mubr.bf16.gmra.mrb[16].mxu1 %v13682_v37  ;;  %v3223_v37 = vsel %vm984_vm1, %v3220_v6, %v3222_v52 }
 0x10a   : > { %11317 = vmatmul.mubr.bf16.vlgmr.msra.gmra.mrb[0].mxu0 %v3199_v16  ;;  %11116 = vmatprep.mubr.bf16.mxu1 %v13683_v53 }
 0x10b   : > { %11320 = vmatprep.mubr.bf16.mxu0 %v3201_v35 }
 0x111   : > { %11117 = vmatmul.mubr.bf16.gmra.mrb[20].mxu1 %v13684_v62 }
 0x112   : > { %11321 = vmatmul.mubr.bf16.gmra.mrb[4].mxu0 %v3203_v2  ;;  %11120 = vmatprep.mubr.bf16.mxu1 %v13685_v47 }
 0x113   : > { %11324 = vmatprep.mubr.bf16.mxu0 %v3205_v25 }
 0x119   : > { %11121 = vmatmul.mubr.bf16.gmra.mrb[24].mxu1 %v13686_v58  ;;  %v3553_v58 = vadd.s32 8, %v14506_v48 }
 0x11a   : > { %11325 = vmatmul.mubr.bf16.gmra.mrb[8].mxu0 %v3207_v44  ;;  %11156 = vmatprep.mubr.bf16.mxu1 %v1793_v11 }
 0x11b   : > { %11328 = vmatprep.mubr.bf16.mxu0 %v3209_v51  ;;  %v3591_v29 = vand.u32 15, %v3553_v58 }
 0x11d   : > { %vm3917_vm3 = vcmp.lt.s32.totalorder %v3591_v29, 14 }
 0x121   : > { %11157 = vmatmul.mubr.bf16.vlgmr.msra.gmra.mrb[16].mxu1 %v1801_v45  ;;  %v3557_v45 = vadd.s32 40, %v14506_v48 }
 0x122   : > { %11329 = vmatmul.mubr.bf16.gmra.mrb[12].mxu0 %v3211_v55  ;;  %11160 = vmatprep.mubr.bf16.mxu1 %v1809_v32 }
 0x123   : > { %11332 = vmatprep.mubr.bf16.mxu0 %v3213_v19  ;;  %v3619_v18 = vand.u32 15, %v3557_v45 }
 0x125   : > { %vm14533_vm5 = vcmp.lt.s32.totalorder %v3619_v18, 14 }
 0x129   : > { %11161 = vmatmul.mubr.bf16.gmra.mrb[20].mxu1 %v1817_v46 }
 0x12a   : > { %11333 = vmatmul.mubr.bf16.gmra.mrb[16].mxu0 %v3215_v42  ;;  %11164 = vmatprep.mubr.bf16.mxu1 %v1825_v49 }
 0x12b   : > { %11336 = vmatprep.mubr.bf16.mxu0 %v3217_v15 }
 0x131   : > { %11165 = vmatmul.mubr.bf16.gmra.mrb[24].mxu1 %v1833_v59 }
 0x132   : > { %11337 = vmatmul.mubr.bf16.gmra.mrb[20].mxu0 %v3219_v1 }
 0x133   : > { %11340 = vmatprep.mubr.bf16.mxu0 %v3221_v50 }
 0x13a   : > { %11341 = vmatmul.mubr.bf16.gmra.mrb[24].mxu0 %v3223_v37 }
 0x1bc   : > { %v11098_v4 = vpop.f32.mrb[0].mxu1 }
 0x1bd   : > { %v1460_v53 = vpop.f32.mrb[1].mxu1 }
 0x1be   : > { %v11099_v16 = vpop.f32.mrb[2].mxu1 }
 0x1bf   : > { %v1463_v35 = vpop.f32.mrb[3].mxu1 }
 0x1c4   : > { %v11102_v26 = vpop.f32.mrb[4].mxu1 }
 0x1c5   : > { %v1476_v30 = vpop.f32.mrb[5].mxu1 }
 0x1c6   : > { %v11103_v62 = vpop.f32.mrb[6].mxu1 }
 0x1c7   : > { %v1479_v47 = vpop.f32.mrb[7].mxu1 }
 0x1cc   : > { %v14490_v2 = vpop.f32.mrb[8].mxu1 }
 0x1cd   : > { %v14492_v14 = vpop.f32.mrb[9].mxu1 }
 0x1ce   : > { %v14494_v56 = vpop.f32.mrb[10].mxu1 }
 0x1cf   : > { %v14496_v3 = vpop.f32.mrb[11].mxu1 }
 0x1d4   : > { %v14498_v43 = vpop.f32.mrb[12].mxu1 }
 0x1d5   : > { %v14500_v25 = vpop.f32.mrb[13].mxu1 }
 0x1d6   : > { %v14502_v23 = vpop.f32.mrb[14].mxu1 }
 0x1d7   : > { %v14504_v40 = vpop.f32.mrb[15].mxu1 }
 0x1dd   : > { %v11318_v9 = vpop.f32.mrb[0].mxu0 }
 0x1de   : > { %v13043_v44 = vadd.f32 %v11318_v9, %v11098_v4  ;;  %v3320_v11 = vpop.f32.mrb[1].mxu0  ;;  %v3647_v4 = vand.u32 15, %v3561_v17 }
 0x1df   : > { %v13044_v21 = vadd.f32 %v3320_v11, %v1460_v53  ;;  %v11319_v51 = vpop.f32.mrb[2].mxu0 }
 0x1e0   : > { %v3465_v24 = vadd.f32 %v13043_v44, %v14513_v8  ;;  %v13045_v27 = vadd.f32 %v11319_v51, %v11099_v16  ;;  %v3323_v60 = vpop.f32.mrb[3].mxu0  ;;  %vm14541_vm7 = vcmp.lt.s32.totalorder %v3647_v4, 14 }
 0x1e1   : > { %v3463_v31 = vadd.f32 %v13044_v21, %v14513_v8  ;;  %v13046_v20 = vadd.f32 %v3323_v60, %v1463_v35 }
 0x1e2   : > { %v3466_v5 = vadd.f32 %v13045_v27, %v14513_v8  ;;  %v3493_v12 = vmax.f32 %v3465_v24, 0.0 }
 0x1e3   : > { %v3491_v55 = vmax.f32 %v3463_v31, 0.0  ;;  %v3464_v32 = vadd.f32 %v13046_v20, %v14513_v8  ;;  %v14546_v31 = vadd.s32 120, %v14506_v48 }
 0x1e4   : > { %v3494_v33 = vmax.f32 %v3466_v5, 0.0  ;;  %v4067_v53 = vmul.f32 %v3493_v12, %v3493_v12 }
 0x1e5   : > { %v3492_v19 = vmax.f32 %v3464_v32, 0.0  ;;  %v11322_v34 = vpop.f32.mrb[4].mxu0  ;;  %v4065_v39 = vmul.f32 %v3491_v55, %v3491_v55 }
 0x1e6   : > { %v3520_v28 = vpack.c.bf16 %v3494_v33, %v3493_v12  ;;  %v13047_v46 = vadd.f32 %v11322_v34, %v11102_v26  ;;  %v3336_v57 = vpop.f32.mrb[5].mxu0  ;;  %v4003_v42 = vsel %vm3919_vm2, %v3494_v33, 0.0 }
 0x1e7   : > { %v3519_v49 = vpack.c.bf16 %v3492_v19, %v3491_v55  ;;  %v4001_v15 = vsel %vm3917_vm3, %v3492_v19, 0.0  ;;  %v13048_v38 = vadd.f32 %v3336_v57, %v1476_v30  ;;  %v11323_v22 = vpop.f32.mrb[6].mxu0  ;;  %v4068_v30 = vmul.f32 %v4003_v42, %v4003_v42 }
 0x1e8   : > { %3537 = vst [vmem:[%s14487_s7 + $0x8] sm:$0xff] %v3520_v28  ;;  %v4029_v41 = vadd.f32 %v4001_v15, %v3491_v55  ;;  %v4066_v6 = vmul.f32 %v4001_v15, %v4001_v15  ;;  %v3469_v59 = vadd.f32 %v13047_v46, %v14513_v8  ;;  %v13049_v1 = vadd.f32 %v11323_v22, %v11103_v62  ;;  %v3339_v50 = vpop.f32.mrb[7].mxu0 }
 0x1e9   : > { %3536 = vst [vmem:[%s14487_s7] sm:$0xff] %v3519_v49  ;;  %v3467_v52 = vadd.f32 %v13048_v38, %v14513_v8  ;;  %v13050_v37 = vadd.f32 %v3339_v50, %v1479_v47  ;;  %v14552_v55 = vadd.s32 104, %v14506_v48  ;;  %v3689_v49 = vand.u32 15, %v14546_v31 }
 0x1ea   : > { %v4030_v16 = vadd.f32 %v4029_v41, %v3493_v12  ;;  %v4093_v35 = vadd.f32 %v4066_v6, %v4065_v39  ;;  %v3470_v26 = vadd.f32 %v13049_v1, %v14513_v8  ;;  %v3497_v9 = vmax.f32 %v3469_v59, 0.0 }
 0x1eb   : > { %v3495_v10 = vmax.f32 %v3467_v52, 0.0  ;;  %v3468_v61 = vadd.f32 %v13050_v37, %v14513_v8  ;;  %v3675_v54 = vand.u32 15, %v14552_v55  ;;  %v3571_v52 = vadd.s32 152, %v14506_v48 }
 0x1ec   : > { %v4094_v62 = vadd.f32 %v4093_v35, %v4067_v53  ;;  %v4031_v44 = vadd.f32 %v4030_v16, %v4003_v42  ;;  %v3498_v11 = vmax.f32 %v3470_v26, 0.0  ;;  %v4071_v39 = vmul.f32 %v3497_v9, %v3497_v9 }
 0x1ed   : > { %v4069_v47 = vmul.f32 %v3495_v10, %v3495_v10  ;;  %v3496_v13 = vmax.f32 %v3468_v61, 0.0  ;;  %v11326_v21 = vpop.f32.mrb[8].mxu0  ;;  %v3717_v31 = vand.u32 15, %v3571_v52  ;;  %vm14585_vm8 = vcmp.lt.s32.totalorder %v3675_v54, 14 }
 0x1ee   : > { %v4032_v27 = vadd.f32 %v4031_v44, %v3495_v10  ;;  %v4095_v7 = vadd.f32 %v4094_v62, %v4068_v30  ;;  %v3522_v60 = vpack.c.bf16 %v3498_v11, %v3497_v9  ;;  %v3352_v29 = vpop.f32.mrb[9].mxu0  ;;  %v13051_v5 = vadd.f32 %v11326_v21, %v14490_v2 }
 0x1ef   : > { %v3521_v20 = vpack.c.bf16 %v3496_v13, %v3495_v10  ;;  %v4005_v45 = vsel %vm14533_vm5, %v3496_v13, 0.0  ;;  %v11327_v63 = vpop.f32.mrb[10].mxu0  ;;  %v13052_v19 = vadd.f32 %v3352_v29, %v14492_v14  ;;  %v4007_v18 = vsel %vm14523_vm4, %v3498_v11, 0.0 }
 0x1f0   : > { %v4096_v32 = vadd.f32 %v4095_v7, %v4069_v47  ;;  %3539 = vst [vmem:[%s14487_s7 + $0x18] sm:$0xff] %v3522_v60  ;;  %v4033_v12 = vadd.f32 %v4032_v27, %v4005_v45  ;;  %v4070_v33 = vmul.f32 %v4005_v45, %v4005_v45  ;;  %v3355_v34 = vpop.f32.mrb[11].mxu0  ;;  %v3473_v36 = vadd.f32 %v13051_v5, %v14513_v8 }
 0x1f1   : > { %3538 = vst [vmem:[%s14487_s7 + $0x10] sm:$0xff] %v3521_v20  ;;  %v13053_v17 = vadd.f32 %v11327_v63, %v14494_v56  ;;  %v13054_v2 = vadd.f32 %v3355_v34, %v14496_v3  ;;  %v3471_v57 = vadd.f32 %v13052_v19, %v14513_v8  ;;  %v4072_v15 = vmul.f32 %v4007_v18, %v4007_v18 }
 0x1f2   : > { %v4034_v28 = vadd.f32 %v4033_v12, %v3497_v9  ;;  %v4097_v46 = vadd.f32 %v4096_v32, %v4070_v33  ;;  %v3501_v6 = vmax.f32 %v3473_v36, 0.0  ;;  %v3569_v62 = vadd.s32 136, %v14506_v48 }
 0x1f3   : > { %v3474_v42 = vadd.f32 %v13053_v17, %v14513_v8  ;;  %v3472_v14 = vadd.f32 %v13054_v2, %v14513_v8  ;;  %v3499_v22 = vmax.f32 %v3471_v57, 0.0  ;;  %vm14589_vm9 = vcmp.lt.s32.totalorder %v3689_v49, 14 }
 0x1f4   : > { %v4098_v38 = vadd.f32 %v4097_v46, %v4071_v39  ;;  %v4035_v41 = vadd.f32 %v4034_v28, %v4007_v18  ;;  %v11158_v56 = vpop.f32.mrb[16].mxu1  ;;  %v4075_v7 = vmul.f32 %v3501_v6, %v3501_v6  ;;  %v3703_v5 = vand.u32 15, %v3569_v62 }
 0x1f5   : > { %v3502_v3 = vmax.f32 %v3474_v42, 0.0  ;;  %v3500_v59 = vmax.f32 %v3472_v14, 0.0  ;;  %v11330_v1 = vpop.f32.mrb[12].mxu0  ;;  %v14567_v50 = vpop.f32.mrb[17].mxu1  ;;  %v4073_v0 = vmul.f32 %v3499_v22, %v3499_v22  ;;  %vm14595_vm10 = vcmp.lt.s32.totalorder %v3717_v31, 14 }
 0x1f6   : > { %v4036_v37 = vadd.f32 %v4035_v41, %v3499_v22  ;;  %v4099_v4 = vadd.f32 %v4098_v38, %v4072_v15  ;;  %v13055_v53 = vadd.f32 %v11330_v1, %v14498_v43  ;;  %v3368_v16 = vpop.f32.mrb[13].mxu0  ;;  %v11159_v35 = vpop.f32.mrb[18].mxu1  ;;  %vm14599_vm11 = vcmp.lt.s32.totalorder %v3703_v5, 14 }
 0x1f7   : > { %v3524_v26 = vpack.c.bf16 %v3502_v3, %v3501_v6  ;;  %v3523_v30 = vpack.c.bf16 %v3500_v59, %v3499_v22  ;;  %v4009_v10 = vsel %vm14541_vm7, %v3500_v59, 0.0  ;;  %v11331_v61 = vpop.f32.mrb[14].mxu0  ;;  %v1997_v58 = vpop.f32.mrb[19].mxu1  ;;  %v4011_v44 = vsel %vm14537_vm6, %v3502_v3, 0.0 }
 0x1f8   : > { %v4100_v9 = vadd.f32 %v4099_v4, %v4073_v0  ;;  %v4037_v11 = vadd.f32 %v4036_v37, %v4009_v10  ;;  %v4074_v47 = vmul.f32 %v4009_v10, %v4009_v10  ;;  %v3371_v13 = vpop.f32.mrb[15].mxu0  ;;  %v3477_v43 = vadd.f32 %v13055_v53, %v14513_v8 }
 0x1f9   : > { %3541 = vst [vmem:[%s14487_s7 + $0x28] sm:$0xff] %v3524_v26  ;;  %3540 = vst [vmem:[%s14487_s7 + $0x20] sm:$0xff] %v3523_v30  ;;  %v13056_v21 = vadd.f32 %v3368_v16, %v14500_v25  ;;  %v13057_v24 = vadd.f32 %v11331_v61, %v14502_v23  ;;  %v13058_v27 = vadd.f32 %v3371_v13, %v14504_v40 }
 0x1fa   : > { %v4038_v60 = vadd.f32 %v4037_v11, %v3501_v6  ;;  %v4101_v29 = vadd.f32 %v4100_v9, %v4074_v47  ;;  %v4076_v63 = vmul.f32 %v4011_v44, %v4011_v44  ;;  %v3505_v40 = vmax.f32 %v3477_v43, 0.0 }
 0x1fb   : > { %v3475_v51 = vadd.f32 %v13056_v21, %v14513_v8  ;;  %v3478_v20 = vadd.f32 %v13057_v24, %v14513_v8  ;;  %v3476_v45 = vadd.f32 %v13058_v27, %v14513_v8  ;;  %v3573_v6 = vadd.s32 168, %v14506_v48 }
 0x1fc   : > { %v4102_v55 = vadd.f32 %v4101_v29, %v4075_v7  ;;  %v4039_v32 = vadd.f32 %v4038_v60, %v4011_v44  ;;  %v11162_v23 = vpop.f32.mrb[20].mxu1  ;;  %v4079_v16 = vmul.f32 %v3505_v40, %v3505_v40 }
 0x1fd   : > { %v3503_v12 = vmax.f32 %v3475_v51, 0.0  ;;  %v3506_v33 = vmax.f32 %v3478_v20, 0.0  ;;  %v3504_v19 = vmax.f32 %v3476_v45, 0.0  ;;  %v11334_v34 = vpop.f32.mrb[16].mxu0  ;;  %v2010_v18 = vpop.f32.mrb[21].mxu1 }
 0x1fe   : > { %v4103_v36 = vadd.f32 %v4102_v55, %v4076_v63  ;;  %v13059_v2 = vadd.f32 %v11334_v34, %v11158_v56  ;;  %v3384_v39 = vpop.f32.mrb[17].mxu0  ;;  %v14593_v28 = vpop.f32.mrb[22].mxu1  ;;  %v3575_v56 = vadd.s32 184, %v14506_v48 }
 0x1ff   : > { %v4040_v57 = vadd.f32 %v4039_v32, %v3503_v12  ;;  %v4077_v42 = vmul.f32 %v3503_v12, %v3503_v12  ;;  %v3526_v14 = vpack.c.bf16 %v3506_v33, %v3505_v40  ;;  %v11335_v54 = vpop.f32.mrb[18].mxu0  ;;  %v2013_v15 = vpop.f32.mrb[23].mxu1  ;;  %v3525_v38 = vpack.c.bf16 %v3504_v19, %v3503_v12 }
 0x200   : > { %v4013_v22 = vsel %vm14585_vm8, %v3504_v19, 0.0  ;;  %v3387_v41 = vpop.f32.mrb[19].mxu0  ;;  %v13060_v52 = vadd.f32 %v3384_v39, %v14567_v50  ;;  %v4015_v37 = vsel %vm14589_vm9, %v3506_v33, 0.0  ;;  %v3481_v0 = vadd.f32 %v13059_v2, %v14513_v8 }
 0x201   : > { %v4104_v3 = vadd.f32 %v4103_v36, %v4077_v42  ;;  %3543 = vst [vmem:[%s14487_s7 + $0x38] sm:$0xff] %v3526_v14  ;;  %v4041_v59 = vadd.f32 %v4040_v57, %v4013_v22  ;;  %v4078_v1 = vmul.f32 %v4013_v22, %v4013_v22  ;;  %3542 = vst [vmem:[%s14487_s7 + $0x30] sm:$0xff] %v3525_v38  ;;  %v3745_v44 = vand.u32 15, %v3575_v56 }
 0x202   : > { %v13061_v4 = vadd.f32 %v11335_v54, %v11159_v35  ;;  %v13062_v53 = vadd.f32 %v3387_v41, %v1997_v58  ;;  %v3479_v10 = vadd.f32 %v13060_v52, %v14513_v8  ;;  %v3731_v50 = vand.u32 15, %v3573_v6 }
 0x203   : > { %v4042_v26 = vadd.f32 %v4041_v59, %v3505_v40  ;;  %v4105_v30 = vadd.f32 %v4104_v3, %v4078_v1  ;;  %v4080_v11 = vmul.f32 %v4015_v37, %v4015_v37  ;;  %v3509_v35 = vmax.f32 %v3481_v0, 0.0 }
 0x204   : > { %v3482_v61 = vadd.f32 %v13061_v4, %v14513_v8  ;;  %v3480_v62 = vadd.f32 %v13062_v53, %v14513_v8  ;;  %v11166_v9 = vpop.f32.mrb[24].mxu1  ;;  %v3507_v13 = vmax.f32 %v3479_v10, 0.0  ;;  %vm14618_vm12 = vcmp.lt.s32.totalorder %v3745_v44, 14 }
 0x205   : > { %v4106_v47 = vadd.f32 %v4105_v30, %v4079_v16  ;;  %v4043_v43 = vadd.f32 %v4042_v26, %v4015_v37  ;;  %v11338_v21 = vpop.f32.mrb[20].mxu0  ;;  %v2026_v24 = vpop.f32.mrb[25].mxu1  ;;  %v4083_v39 = vmul.f32 %v3509_v35, %v3509_v35  ;;  %vm14629_vm13 = vcmp.lt.s32.totalorder %v3731_v50, 14 }
 0x206   : > { %v3510_v58 = vmax.f32 %v3482_v61, 0.0  ;;  %v3508_v27 = vmax.f32 %v3480_v62, 0.0  ;;  %v13063_v7 = vadd.f32 %v11338_v21, %v11162_v23  ;;  %v3400_v60 = vpop.f32.mrb[21].mxu0  ;;  %v11167_v29 = vpop.f32.mrb[26].mxu1  ;;  %v4081_v51 = vmul.f32 %v3507_v13, %v3507_v13 }
 0x207   : > { %v4044_v31 = vadd.f32 %v4043_v43, %v3507_v13  ;;  %v4107_v20 = vadd.f32 %v4106_v47, %v4080_v11  ;;  %v13064_v45 = vadd.f32 %v3400_v60, %v2010_v18  ;;  %v11339_v5 = vpop.f32.mrb[22].mxu0  ;;  %v2029_v63 = vpop.f32.mrb[27].mxu1  ;;  %v3577_v38 = vadd.s32 200, %v14506_v48 }
 0x208   : > { %v3528_v55 = vpack.c.bf16 %v3510_v58, %v3509_v35  ;;  %v3527_v32 = vpack.c.bf16 %v3508_v27, %v3507_v13  ;;  %v4017_v25 = vsel %vm14599_vm11, %v3508_v27, 0.0  ;;  %v3403_v23 = vpop.f32.mrb[23].mxu0  ;;  %v4019_v33 = vsel %vm14595_vm10, %v3510_v58, 0.0 }
 0x209   : > { %v4108_v12 = vadd.f32 %v4107_v20, %v4081_v51  ;;  %v4045_v19 = vadd.f32 %v4044_v31, %v4017_v25  ;;  %v4082_v34 = vmul.f32 %v4017_v25, %v4017_v25  ;;  %v3485_v18 = vadd.f32 %v13063_v7, %v14513_v8 }
 0x20a   : > { %3545 = vst [vmem:[%s14487_s7 + $0x48] sm:$0xff] %v3528_v55  ;;  %3544 = vst [vmem:[%s14487_s7 + $0x40] sm:$0xff] %v3527_v32  ;;  %v3483_v36 = vadd.f32 %v13064_v45, %v14513_v8  ;;  %v13065_v17 = vadd.f32 %v11339_v5, %v14593_v28  ;;  %v13066_v2 = vadd.f32 %v3403_v23, %v2013_v15  ;;  %v3579_v28 = vadd.s32 216, %v14506_v48 }
 0x20b   : > { %v4046_v57 = vadd.f32 %v4045_v19, %v3509_v35  ;;  %v4109_v42 = vadd.f32 %v4108_v12, %v4082_v34  ;;  %v4084_v22 = vmul.f32 %v4019_v33, %v4019_v33  ;;  %v3513_v15 = vmax.f32 %v3485_v18, 0.0 }
 0x20c   : > { %v3511_v46 = vmax.f32 %v3483_v36, 0.0  ;;  %v3486_v54 = vadd.f32 %v13065_v17, %v14513_v8  ;;  %v3484_v49 = vadd.f32 %v13066_v2, %v14513_v8  ;;  %v3759_v62 = vand.u32 15, %v3577_v38 }
 0x20d   : > { %v4110_v41 = vadd.f32 %v4109_v42, %v4083_v39  ;;  %v4047_v56 = vadd.f32 %v4046_v57, %v4019_v33  ;;  %v11342_v6 = vpop.f32.mrb[24].mxu0  ;;  %v4087_v21 = vmul.f32 %v3513_v15, %v3513_v15  ;;  %v3773_v58 = vand.u32 15, %v3579_v28 }
 0x20e   : > { %v4085_v3 = vmul.f32 %v3511_v46, %v3511_v46  ;;  %v3514_v59 = vmax.f32 %v3486_v54, 0.0  ;;  %v3512_v1 = vmax.f32 %v3484_v49, 0.0  ;;  %v3416_v52 = vpop.f32.mrb[25].mxu0  ;;  %v13067_v4 = vadd.f32 %v11342_v6, %v11166_v9  ;;  %v4028_v6 = vld [vmem:[#allocation3] sm:$0x1] }
 0x20f   : > { %v4048_v37 = vadd.f32 %v4047_v56, %v3511_v46  ;;  %v4111_v0 = vadd.f32 %v4110_v41, %v4084_v22  ;;  %v13068_v53 = vadd.f32 %v3416_v52, %v2026_v24  ;;  %v11343_v16 = vpop.f32.mrb[26].mxu0  ;;  %vm3941_vm14 = vcmp.lt.s32.totalorder %v3759_v62, 14 }
 0x210   : > { %v3530_v26 = vpack.c.bf16 %v3514_v59, %v3513_v15  ;;  %v3529_v30 = vpack.c.bf16 %v3512_v1, %v3511_v46  ;;  %v4021_v10 = vsel %vm14629_vm13, %v3512_v1, 0.0  ;;  %v3419_v61 = vpop.f32.mrb[27].mxu0  ;;  %v4023_v44 = vsel %vm14618_vm12, %v3514_v59, 0.0 }
 0x211   : > { %v4112_v48 = vadd.f32 %v4111_v0, %v4085_v3  ;;  %v4049_v50 = vadd.f32 %v4048_v37, %v4021_v10  ;;  %v4086_v11 = vmul.f32 %v4021_v10, %v4021_v10  ;;  %v3489_v47 = vadd.f32 %v13067_v4, %v14513_v8  ;;  %v4064_v3 = vld [vmem:[#allocation3 + $0x1] sm:$0x1] }
 0x212   : > { %3547 = vst [vmem:[%s14487_s7 + $0x58] sm:$0xff] %v3530_v26  ;;  %3546 = vst [vmem:[%s14487_s7 + $0x50] sm:$0xff] %v3529_v30  ;;  %v3487_v9 = vadd.f32 %v13068_v53, %v14513_v8  ;;  %v13069_v13 = vadd.f32 %v11343_v16, %v11167_v29  ;;  %v13070_v43 = vadd.f32 %v3419_v61, %v2029_v63  ;;  %vm3943_vm15 = vcmp.lt.s32.totalorder %v3773_v58, 14 }
 0x213   : > { %v4050_v24 = vadd.f32 %v4049_v50, %v3513_v15  ;;  %v4113_v35 = vadd.f32 %v4112_v48, %v4086_v11  ;;  %v4088_v31 = vmul.f32 %v4023_v44, %v4023_v44  ;;  %v3517_v45 = vmax.f32 %v3489_v47, 0.0 }
 0x214   : > { %v3515_v27 = vmax.f32 %v3487_v9, 0.0  ;;  %v3490_v7 = vadd.f32 %v13069_v13, %v14513_v8  ;;  %v3488_v60 = vadd.f32 %v13070_v43, %v14513_v8 }
 0x215   : > { %v4114_v51 = vadd.f32 %v4113_v35, %v4087_v21  ;;  %v4051_v20 = vadd.f32 %v4050_v24, %v4023_v44  ;;  %v4091_v34 = vmul.f32 %v3517_v45, %v3517_v45 }
 0x216   : > { %v4089_v5 = vmul.f32 %v3515_v27, %v3515_v27  ;;  %v3518_v55 = vmax.f32 %v3490_v7, 0.0  ;;  %v3516_v29 = vmax.f32 %v3488_v60, 0.0 }
 0x217   : > { %v4052_v63 = vadd.f32 %v4051_v20, %v3515_v27  ;;  %v4115_v32 = vadd.f32 %v4114_v51, %v4088_v31 }
 0x218   : > { %v3532_v25 = vpack.c.bf16 %v3518_v55, %v3517_v45  ;;  %v3531_v40 = vpack.c.bf16 %v3516_v29, %v3515_v27  ;;  %v4025_v23 = vsel %vm3941_vm14, %v3516_v29, 0.0  ;;  %v4027_v8 = vsel %vm3943_vm15, %v3518_v55, 0.0 }
 0x219   : > { %v4116_v12 = vadd.f32 %v4115_v32, %v4089_v5  ;;  %v4053_v33 = vadd.f32 %v4052_v63, %v4025_v23  ;;  %v4090_v19 = vmul.f32 %v4025_v23, %v4025_v23  ;;  %v4092_v17 = vmul.f32 %v4027_v8, %v4027_v8 }
 0x21a   : > { %3549 = vst [vmem:[%s14487_s7 + $0x68] sm:$0xff] %v3532_v25  ;;  %3548 = vst [vmem:[%s14487_s7 + $0x60] sm:$0xff] %v3531_v40 }
 0x21b   : > { %v4054_v18 = vadd.f32 %v4053_v33, %v3517_v45  ;;  %v4117_v36 = vadd.f32 %v4116_v12, %v4090_v19 }
 0x21d   : > { %v4055_v2 = vadd.f32 %v4054_v18, %v4027_v8  ;;  %v4118_v39 = vadd.f32 %v4117_v36, %v4091_v34 }
 0x21f   : > { %v4056_v57 = vrot.slane %v4055_v2, 4  ;;  %v4119_v42 = vadd.f32 %v4118_v39, %v4092_v17 }
 0x221   : > { %v4057_v14 = vadd.f32 %v4056_v57, %v4055_v2  ;;  %v4120_v46 = vrot.slane %v4119_v42, 4 }
 0x223   : > { %v4058_v54 = vrot.slane %v4057_v14, 2  ;;  %v4121_v49 = vadd.f32 %v4120_v46, %v4119_v42 }
 0x225   : > { %v4059_v38 = vadd.f32 %v4058_v54, %v4057_v14  ;;  %v4122_v22 = vrot.slane %v4121_v49, 2 }
 0x227   : > { %v4060_v41 = vrot.slane %v4059_v38, 1  ;;  %v4123_v56 = vadd.f32 %v4122_v22, %v4121_v49 }
 0x229   : > { %v4061_v28 = vadd.f32 %v4060_v41, %v4059_v38  ;;  %v4124_v15 = vrot.slane %v4123_v56, 1 }
 0x22b   : > { %v4062_v59 = vadd.f32 %v4061_v28, %v4028_v6  ;;  %v4125_v1 = vadd.f32 %v4124_v15, %v4123_v56 }
 0x22d   : > { %4063 = vst [vmem:[#allocation3] sm:$0x1] %v4062_v59  ;;  %v4126_v52 = vadd.f32 %v4125_v1, %v4064_v3 }
 0x22f   : > { %4127 = vst [vmem:[#allocation3 + $0x1] sm:$0x1] %v4126_v52 }
 0x230 PF: > { %p9490_p10 = scmp.ne.s32.totalorder %s13734_s22, 1 }
 0x231   : > { %p9491_p11 = scmp.ne.s32.totalorder (!%p9490_p10), %s13730_s21, 0 }
 0x232   : > { %4131 = sbr.rel (%p9490_p10) target bundleno = 1618 (0x652), region = 52 }
 0x239   : > { %4135 = sbr.rel (%p9491_p11) target bundleno = 1102 (0x44e), region = 56  ;;  %v9771_v37 = vld [vmem:[%s16065_s3] sm:$0xff] (!%p9491_p11)   ;;  %v10058_v0 = vld [vmem:[%s16065_s3 + $0x8] sm:$0xff] (!%p9491_p11)   ;;  %v13750_v4 = vmov (!%p9491_p11), 0.0|0.0   ;;  %v13751_v53 = vmov (!%p9491_p11), 0.0   ;;  %v10059_v10 = vld [vmem:[%s16065_s3 + $0x10] sm:$0xff] (!%p9491_p11)   ;;  %v4151_v9 = vlaneseq (!%p9491_p11) }
 0x23a   : > { %12524 = vmatprep.subr.bf16.mxu0 (!%p9491_p11), %v9771_v37  ;;  %12555 = vmatprep.subr.bf16.mxu1 (!%p9491_p11), %v13750_v4  ;;  %4136 = vst [vmem:[%s16068_s6] sm:$0x3] (!%p9491_p11), %v13751_v53  ;;  %v4137_v16 = vld [vmem:[#allocation3] sm:$0x1] (!%p9491_p11)  ;;  %v4139_v30 = vld [vmem:[#allocation3 + $0x1] sm:$0x1] (!%p9491_p11)  ;;  %vm16069_vm0 = vmmov (!%p9491_p11), 0  }
 0x23b   : > { %12526 = vmatpush3.bf16.msra.mxu0 (!%p9491_p11), %v9771_v37  ;;  %12557 = vmatpush3.bf16.msra.mxu1 (!%p9491_p11), %v9771_v37  ;;  %v4138_v26 = vmul.f32 (!%p9491_p11), 0.0025510204, %v4137_v16  ;;  %v4140_v61 = vmul.f32 (!%p9491_p11), 0.0025510204, %v4139_v30  ;;  %v10060_v44 = vld [vmem:[%s16065_s3 + $0x18] sm:$0xff] (!%p9491_p11)   ;;  %v10061_v47 = vld [vmem:[%s16065_s3 + $0x20] sm:$0xff] (!%p9491_p11)  }
 0x23c   : > { %12528 = vmatprep.subr.bf16.mxu0 (!%p9491_p11), %v10058_v0  ;;  %12558 = vmatprep.subr.bf16.mxu1 (!%p9491_p11), %v13750_v4  ;;  %v10062_v13 = vld [vmem:[%s16065_s3 + $0x28] sm:$0xff] (!%p9491_p11)   ;;  %v14680_v43 = vshrl.u32 (!%p9491_p11), %v4151_v9, 7  ;;  %v10063_v21 = vld [vmem:[%s16065_s3 + $0x30] sm:$0xff] (!%p9491_p11)   ;;  %v4144_v24 = vld [vmem:[%s16064_s2 + $0x1] sm:$0x1] (!%p9491_p11)  ;;  %v14689_v35 = vand.u32 (!%p9491_p11), 127, %v4151_v9 }
 0x23d   : > { %11432 = vmatprep.mubr.msk.f32.mxu1 (!%p9491_p11), %vm16069_vm0, %v13751_v53  ;;  %v4141_v62 = vmul.f32 (!%p9491_p11), %v4138_v26, %v4138_v26  ;;  %v10064_v7 = vld [vmem:[%s16065_s3 + $0x38] sm:$0xff] (!%p9491_p11)   ;;  %v16107_v31 = vmov (!%p9491_p11), 0  ;;  %v4148_v45 = vld [vmem:[%s16064_s2 + $0x2] sm:$0x1] (!%p9491_p11)  ;;  %v16109_v32 = vmov (!%p9491_p11), 0  ;;  %v10066_v23 = vld [vmem:[%s16065_s3 + $0x48] sm:$0xff] (!%p9491_p11)  }
 0x23e   : > { %v4188_v58 = vsub.s32 (!%p9491_p11), 0, %v14680_v43  ;;  %vm14698_vm1 = vcmp.eq.s32.totalorder (!%p9491_p11), %v14680_v43, %v14689_v35  ;;  %v4153_v20 = vadd.s32 (!%p9491_p11), 8, %v14680_v43  ;;  %v10065_v55 = vld [vmem:[%s16065_s3 + $0x40] sm:$0xff] (!%p9491_p11)   ;;  %v4154_v29 = vadd.s32 (!%p9491_p11), 16, %v14680_v43  ;;  %v10067_v34 = vld [vmem:[%s16065_s3 + $0x50] sm:$0xff] (!%p9491_p11)   ;;  %v10068_v39 = vld [vmem:[%s16065_s3 + $0x58] sm:$0xff] (!%p9491_p11)  }
 0x23f   : > { %12530 = vmatpush3.bf16.msra.mxu0 (!%p9491_p11), %v10058_v0  ;;  %12560 = vmatpush3.bf16.msra.mxu1 (!%p9491_p11), %v10058_v0  ;;  %v4142_v48 = vsub.f32 (!%p9491_p11), %v4140_v61, %v4141_v62  ;;  %v16108_v31 = vsel (!%p9491_p11), %vm14698_vm1, 4294967295, %v16107_v31  ;;  %v4155_v25 = vadd.s32 (!%p9491_p11), 24, %v14680_v43  ;;  %v4156_v12 = vadd.s32 (!%p9491_p11), 32, %v14680_v43  ;;  %v10069_v54 = vld [vmem:[%s16065_s3 + $0x60] sm:$0xff] (!%p9491_p11)   ;;  %v10070_v56 = vld [vmem:[%s16065_s3 + $0x68] sm:$0xff] (!%p9491_p11)   ;;  %v10071_v59 = vld [vmem:[%s16065_s3 + $0x70] sm:$0xff] (!%p9491_p11)  }
 0x240   : > { %12532 = vmatprep.subr.bf16.mxu0 %v10059_v10  ;;  %12561 = vmatprep.subr.bf16.mxu1 %v13750_v4  ;;  %vm14719_vm2 = vcmp.eq.s32.totalorder %v4153_v20, %v14689_v35  ;;  %vm14726_vm3 = vcmp.eq.s32.totalorder %v4154_v29, %v14689_v35  ;;  %v4157_v19 = vadd.s32 40, %v14680_v43  ;;  %v16115_v8 = vmov 0  ;;  %v10072_v16 = vld [vmem:[%s16065_s3 + $0x78] sm:$0xff]   ;;  %v10073_v30 = vld [vmem:[%s16065_s3 + $0x80] sm:$0xff]   ;;  %v10075_v61 = vld [vmem:[%s16065_s3 + $0x90] sm:$0xff]  }
 0x241   : > { %v4143_v50 = vmax.f32 %v4142_v48, 0.0  ;;  %v16110_v32 = vsel %vm14719_vm2, 4294967295, %v16109_v32  ;;  %vm14739_vm4 = vcmp.eq.s32.totalorder %v4155_v25, %v14689_v35  ;;  %vm14749_vm5 = vcmp.eq.s32.totalorder %v4156_v12, %v14689_v35  ;;  %v10076_v62 = vld [vmem:[%s16065_s3 + $0x98] sm:$0xff]   ;;  %v10077_v48 = vld [vmem:[%s16065_s3 + $0xa0] sm:$0xff]   ;;  %v10082_v9 = vld [vmem:[%s16065_s3 + $0xc8] sm:$0xff]  }
 0x242   : > { %v16116_v8 = vsel %vm14749_vm5, 4294967295, %v16115_v8  ;;  %v4158_v18 = vadd.s32 48, %v14680_v43  ;;  %vm14763_vm6 = vcmp.eq.s32.totalorder %v4157_v19, %v14689_v35  ;;  %v4159_v17 = vadd.s32 56, %v14680_v43  ;;  %v10092_v20 = vld [vmem:[%s16065_s3 + $0x118] sm:$0xff]   ;;  %v10097_v25 = vld [vmem:[%s16065_s3 + $0x140] sm:$0xff]   ;;  %v10099_v12 = vld [vmem:[%s16065_s3 + $0x150] sm:$0xff]  }
 0x243   : > { %12534 = vmatpush3.bf16.msra.mxu0 %v10059_v10  ;;  %12563 = vmatpush3.bf16.msra.mxu1 %v10059_v10  ;;  %v4145_v11 = vadd.f32 1e-05, %v4143_v50  ;;  %v4160_v57 = vadd.s32 64, %v14680_v43  ;;  %v16121_v42 = vmov 0  ;;  %v4161_v14 = vadd.s32 72, %v14680_v43  ;;  %v10074_v10 = vld [vmem:[%s16065_s3 + $0x88] sm:$0xff]  }
 0x244   : > { %12536 = vmatprep.subr.bf16.mxu0 %v10060_v44  ;;  %12564 = vmatprep.subr.bf16.mxu1 %v13750_v4  ;;  %vm14773_vm7 = vcmp.eq.s32.totalorder %v4158_v18, %v14689_v35  ;;  %vm14785_vm8 = vcmp.eq.s32.totalorder %v4159_v17, %v14689_v35  ;;  %v4162_v49 = vadd.s32 80, %v14680_v43  ;;  %v4163_v22 = vadd.s32 88, %v14680_v43  ;;  %v10079_v50 = vld [vmem:[%s16065_s3 + $0xb0] sm:$0xff]   ;;  %v10096_v29 = vld [vmem:[%s16065_s3 + $0x138] sm:$0xff]   ;;  %v10102_v18 = vld [vmem:[%s16065_s3 + $0x168] sm:$0xff]  }
 0x245   : > { %13706 = vrsqrt.f32 %v4145_v11  ;;  %v16122_v42 = vsel %vm14785_vm8, 4294967295, %v16121_v42  ;;  %vm14795_vm9 = vcmp.eq.s32.totalorder %v4160_v57, %v14689_v35  ;;  %vm14807_vm10 = vcmp.eq.s32.totalorder %v4161_v14, %v14689_v35  ;;  %v10080_v11 = vld [vmem:[%s16065_s3 + $0xb8] sm:$0xff]   ;;  %v10103_v17 = vld [vmem:[%s16065_s3 + $0x170] sm:$0xff]   ;;  %v10105_v57 = vld [vmem:[%s16065_s3 + $0x180] sm:$0xff]  }
 0x246   : > { %vm14817_vm11 = vcmp.eq.s32.totalorder %v4162_v49, %v14689_v35  ;;  %v16127_v41 = vmov 0  ;;  %v4164_v6 = vadd.s32 96, %v14680_v43  ;;  %vm14829_vm12 = vcmp.eq.s32.totalorder %v4163_v22, %v14689_v35  ;;  %v10100_v19 = vld [vmem:[%s16065_s3 + $0x158] sm:$0xff]   ;;  %v10106_v14 = vld [vmem:[%s16065_s3 + $0x188] sm:$0xff]   ;;  %v10109_v22 = vld [vmem:[%s16065_s3 + $0x1a0] sm:$0xff]  }
 0x247   : > { %12538 = vmatpush3.bf16.msra.mxu0 %v10060_v44  ;;  %12566 = vmatpush3.bf16.msra.mxu1 %v10060_v44  ;;  %v16128_v41 = vsel %vm14817_vm11, 4294967295, %v16127_v41  ;;  %v4165_v15 = vadd.s32 104, %v14680_v43  ;;  %v16131_v3 = vmov 0  ;;  %v4166_v1 = vadd.s32 112, %v14680_v43  ;;  %v10078_v44 = vld [vmem:[%s16065_s3 + $0xa8] sm:$0xff]   ;;  %v10108_v49 = vld [vmem:[%s16065_s3 + $0x198] sm:$0xff]  }
 0x248   : > { %12540 = vmatprep.subr.bf16.mxu0 %v10061_v47  ;;  %12567 = vmatprep.subr.bf16.mxu1 %v13750_v4  ;;  %vm14839_vm13 = vcmp.eq.s32.totalorder %v4164_v6, %v14689_v35  ;;  %v16133_v52 = vmov 0  ;;  %v4167_v37 = vadd.s32 120, %v14680_v43  ;;  %v16135_v0 = vmov 0  ;;  %v10084_v43 = vld [vmem:[%s16065_s3 + $0xd8] sm:$0xff]   ;;  %v10111_v6 = vld [vmem:[%s16065_s3 + $0x1b0] sm:$0xff]  }
 0x249   : > { %v16132_v3 = vsel %vm14839_vm13, 4294967295, %v16131_v3  ;;  %vm14851_vm14 = vcmp.eq.s32.totalorder %v4165_v15, %v14689_v35  ;;  %vm14861_vm15 = vcmp.eq.s32.totalorder %v4166_v1, %v14689_v35  ;;  %v10112_v15 = vld [vmem:[%s16065_s3 + $0x1b8] sm:$0xff]   ;;  %v10114_v1 = vld [vmem:[%s16065_s3 + $0x1c8] sm:$0xff]  }
 0x24a   : > { %v16134_v52 = vsel %vm14851_vm14, 4294967295, %v16133_v52  ;;  %v16136_v0 = vsel %vm14861_vm15, 4294967295, %v16135_v0 }
 0x24b   : > { %12542 = vmatpush3.bf16.msra.mxu0 %v10061_v47  ;;  %12569 = vmatpush3.bf16.msra.mxu1 %v10061_v47  ;;  %v10081_v47 = vld [vmem:[%s16065_s3 + $0xc0] sm:$0xff]  }
 0x24c   : > { %12544 = vmatprep.subr.bf16.mxu0 %v10062_v13  ;;  %12570 = vmatprep.subr.bf16.mxu1 %v13750_v4 }
 0x24f   : > { %12546 = vmatpush3.bf16.msra.mxu0 %v10062_v13  ;;  %12572 = vmatpush3.bf16.msra.mxu1 %v10062_v13  ;;  %v13707_v27 = vpop.eup %13706  ;;  %v10083_v13 = vld [vmem:[%s16065_s3 + $0xd0] sm:$0xff]  }
 0x250   : > { %12548 = vmatprep.subr.bf16.mxu0 %v10063_v21  ;;  %12573 = vmatprep.subr.bf16.mxu1 %v13750_v4  ;;  %v4147_v60 = vmul.f32 %v13707_v27, %v4144_v24  ;;  %v10086_v24 = vld [vmem:[%s16065_s3 + $0xe8] sm:$0xff]   ;;  %v10089_v27 = vld [vmem:[%s16065_s3 + $0x100] sm:$0xff]  }
 0x252   : > { %v14702_v51 = vrot.slane %v4147_v60, %v4188_v58  ;;  %v4149_v5 = vmul.f32 %v4147_v60, %v4138_v26  ;;  %v10088_v58 = vld [vmem:[%s16065_s3 + $0xf8] sm:$0xff]   ;;  %v10091_v60 = vld [vmem:[%s16065_s3 + $0x110] sm:$0xff]  }
 0x253   : > { %12550 = vmatpush3.bf16.msra.mxu0 %v10063_v21  ;;  %12575 = vmatpush3.bf16.msra.mxu1 %v10063_v21  ;;  %v10085_v21 = vld [vmem:[%s16065_s3 + $0xe0] sm:$0xff]  }
 0x254   : > { %12552 = vmatprep.subr.bf16.mxu0 %v10064_v7  ;;  %12576 = vmatprep.subr.bf16.mxu1 %v13750_v4  ;;  %v14716_v63 = vsub.f32 %v4148_v45, %v4149_v5  ;;  %v10093_v45 = vld [vmem:[%s16065_s3 + $0x120] sm:$0xff]   ;;  %v10094_v5 = vld [vmem:[%s16065_s3 + $0x128] sm:$0xff]  }
 0x255   : > { %11376 = vmatprep.mubr.msk.f32.mxu0 %vm14698_vm1, %v14702_v51 }
 0x257   : > { %12554 = vmatpush3.bf16.msra.mxu0 %v10064_v7  ;;  %12578 = vmatpush3.bf16.msra.mxu1 %v10064_v7  ;;  %v10090_v7 = vld [vmem:[%s16065_s3 + $0x108] sm:$0xff]  }
 0x258   : > { %12580 = vmatprep.subr.bf16.mxu0 %v10065_v55  ;;  %12611 = vmatprep.subr.bf16.mxu1 %v13750_v4 }
 0x25a   : > { %11377 = vmatmul.mubr.msk.f32.vlgmr.msra.gmra.mrb[0].mxu0 %vm14719_vm2, %v14702_v51  ;;  %11433 = vmatmul.mubr.f32.vlgmr.msra.gmra.mrb[0].mxu1 %v14716_v63 }
 0x25b   : > { %12582 = vmatpush3.bf16.msra.mxu0 %v10065_v55  ;;  %12613 = vmatpush3.bf16.msra.mxu1 %v10065_v55  ;;  %v10095_v55 = vld [vmem:[%s16065_s3 + $0x130] sm:$0xff]  }
 0x25c   : > { %11379 = vmatprep.mubr.msk.f32.mxu0 %vm14726_vm3, %v14702_v51  ;;  %12584 = vmatprep.subr.bf16.mxu0 %v10066_v23 }
 0x25d   : > { %12614 = vmatprep.subr.bf16.mxu1 %v13750_v4  ;;  %11523 = vmatprep.mubr.msk.f32.mxu1 %vm16069_vm0, %v13751_v53  ;;  %vm14872_vm0 = vcmp.eq.s32.totalorder %v4167_v37, %v14689_v35  ;;  %v10087_v35 = vld [vmem:[%s16065_s3 + $0xf0] sm:$0xff]  }
 0x25e   : > { %11380 = vmatmul.mubr.msk.f32.gmra.mrb[2].mxu0 %vm14739_vm4, %v14702_v51  ;;  %v10115_v37 = vld [vmem:[%s16065_s3 + $0x1d0] sm:$0xff]  }
 0x25f   : > { %12586 = vmatpush3.bf16.msra.mxu0 %v10066_v23  ;;  %12616 = vmatpush3.bf16.msra.mxu1 %v10066_v23  ;;  %v10098_v23 = vld [vmem:[%s16065_s3 + $0x148] sm:$0xff]  }
 0x260   : > { %11382 = vmatprep.mubr.msk.f32.mxu0 %vm14749_vm5, %v14702_v51  ;;  %12588 = vmatprep.subr.bf16.mxu0 %v10067_v34 }
 0x261   : > { %12617 = vmatprep.subr.bf16.mxu1 %v13750_v4 }
 0x262   : > { %11383 = vmatmul.mubr.msk.f32.gmra.mrb[4].mxu0 %vm14763_vm6, %v14702_v51 }
 0x263   : > { %12590 = vmatpush3.bf16.msra.mxu0 %v10067_v34  ;;  %12619 = vmatpush3.bf16.msra.mxu1 %v10067_v34  ;;  %v10101_v34 = vld [vmem:[%s16065_s3 + $0x160] sm:$0xff]  }
 0x264   : > { %11385 = vmatprep.mubr.msk.f32.mxu0 %vm14773_vm7, %v14702_v51  ;;  %12592 = vmatprep.subr.bf16.mxu0 %v10068_v39 }
 0x265   : > { %12620 = vmatprep.subr.bf16.mxu1 %v13750_v4 }
 0x266   : > { %11386 = vmatmul.mubr.msk.f32.gmra.mrb[6].mxu0 %vm14785_vm8, %v14702_v51 }
 0x267   : > { %12594 = vmatpush3.bf16.msra.mxu0 %v10068_v39  ;;  %12622 = vmatpush3.bf16.msra.mxu1 %v10068_v39  ;;  %v10104_v39 = vld [vmem:[%s16065_s3 + $0x178] sm:$0xff]  }
 0x268   : > { %11388 = vmatprep.mubr.msk.f32.mxu0 %vm14795_vm9, %v14702_v51  ;;  %12596 = vmatprep.subr.bf16.mxu0 %v10069_v54 }
 0x269   : > { %12623 = vmatprep.subr.bf16.mxu1 %v13750_v4 }
 0x26a   : > { %11389 = vmatmul.mubr.msk.f32.gmra.mrb[8].mxu0 %vm14807_vm10, %v14702_v51 }
 0x26b   : > { %12598 = vmatpush3.bf16.msra.mxu0 %v10069_v54  ;;  %12625 = vmatpush3.bf16.msra.mxu1 %v10069_v54  ;;  %v10107_v54 = vld [vmem:[%s16065_s3 + $0x190] sm:$0xff]  }
 0x26c   : > { %11391 = vmatprep.mubr.msk.f32.mxu0 %vm14817_vm11, %v14702_v51  ;;  %12600 = vmatprep.subr.bf16.mxu0 %v10070_v56 }
 0x26d   : > { %12626 = vmatprep.subr.bf16.mxu1 %v13750_v4 }
 0x26e   : > { %11392 = vmatmul.mubr.msk.f32.gmra.mrb[10].mxu0 %vm14829_vm12, %v14702_v51 }
 0x26f   : > { %12602 = vmatpush3.bf16.msra.mxu0 %v10070_v56  ;;  %12628 = vmatpush3.bf16.msra.mxu1 %v10070_v56  ;;  %v10110_v56 = vld [vmem:[%s16065_s3 + $0x1a8] sm:$0xff]  }
 0x270   : > { %11394 = vmatprep.mubr.msk.f32.mxu0 %vm14839_vm13, %v14702_v51  ;;  %12604 = vmatprep.subr.bf16.mxu0 %v10071_v59 }
 0x271   : > { %12629 = vmatprep.subr.bf16.mxu1 %v13750_v4 }
 0x272   : > { %11395 = vmatmul.mubr.msk.f32.gmra.mrb[12].mxu0 %vm14851_vm14, %v14702_v51 }
 0x273   : > { %12606 = vmatpush3.bf16.msra.mxu0 %v10071_v59  ;;  %12631 = vmatpush3.bf16.msra.mxu1 %v10071_v59  ;;  %v10113_v59 = vld [vmem:[%s16065_s3 + $0x1c0] sm:$0xff]  }
 0x274   : > { %11397 = vmatprep.mubr.msk.f32.mxu0 %vm14861_vm15, %v14702_v51  ;;  %12608 = vmatprep.subr.bf16.mxu0 %v10072_v16 }
 0x275   : > { %12632 = vmatprep.subr.bf16.mxu1 %v13750_v4 }
 0x276   : > { %11398 = vmatmul.mubr.msk.f32.gmra.mrb[14].mxu0 %vm14872_vm0, %v14702_v51 }
 0x277   : > { %12610 = vmatpush3.bf16.msra.mxu0 %v10072_v16  ;;  %12634 = vmatpush3.bf16.msra.mxu1 %v10072_v16  ;;  %v10116_v16 = vld [vmem:[%s16065_s3 + $0x1d8] sm:$0xff]  }
 0x278   : > { %11467 = vmatprep.mubr.msk.f32.mxu0 %vm14698_vm1, %v14702_v51  ;;  %12636 = vmatprep.subr.bf16.mxu0 %v10073_v30  ;;  %vm16139_vm1 = vmmov 0  }
 0x279   : > { %12667 = vmatprep.subr.bf16.mxu1 %v13750_v4 }
 0x27a   : > { %11468 = vmatmul.mubr.msk.f32.vlgmr.msra.gmra.mrb[16].mxu0 %vm14719_vm2, %v14702_v51  ;;  %11524 = vmatmul.mubr.f32.vlgmr.msra.gmra.mrb[0].mxu1 %v14716_v63 }
 0x27b   : > { %12638 = vmatpush3.bf16.msra.mxu0 %v10073_v30  ;;  %12669 = vmatpush3.bf16.msra.mxu1 %v10073_v30  ;;  %v10117_v30 = vld [vmem:[%s16065_s3 + $0x1e0] sm:$0xff]  }
 0x27c   : > { %11470 = vmatprep.mubr.msk.f32.mxu0 %vm14726_vm3, %v14702_v51  ;;  %12640 = vmatprep.subr.bf16.mxu0 %v10074_v10 }
 0x27d   : > { %12670 = vmatprep.subr.bf16.mxu1 %v13750_v4  ;;  %11614 = vmatprep.mubr.msk.f32.mxu1 %vm16139_vm1, %v13751_v53 }
 0x27e   : > { %11471 = vmatmul.mubr.msk.f32.gmra.mrb[18].mxu0 %vm14739_vm4, %v14702_v51 }
 0x27f   : > { %12642 = vmatpush3.bf16.msra.mxu0 %v10074_v10  ;;  %12672 = vmatpush3.bf16.msra.mxu1 %v10074_v10  ;;  %v10118_v10 = vld [vmem:[%s16065_s3 + $0x1e8] sm:$0xff]  }
 0x280   : > { %11473 = vmatprep.mubr.msk.f32.mxu0 %vm14749_vm5, %v14702_v51  ;;  %12644 = vmatprep.subr.bf16.mxu0 %v10075_v61 }
 0x281   : > { %12673 = vmatprep.subr.bf16.mxu1 %v13750_v4 }
 0x282   : > { %11474 = vmatmul.mubr.msk.f32.gmra.mrb[20].mxu0 %vm14763_vm6, %v14702_v51 }
 0x283   : > { %12646 = vmatpush3.bf16.msra.mxu0 %v10075_v61  ;;  %12675 = vmatpush3.bf16.msra.mxu1 %v10075_v61 }
 0x284   : > { %11476 = vmatprep.mubr.msk.f32.mxu0 %vm14773_vm7, %v14702_v51  ;;  %12648 = vmatprep.subr.bf16.mxu0 %v10076_v62 }
 0x285   : > { %12676 = vmatprep.subr.bf16.mxu1 %v13750_v4 }
 0x286   : > { %11477 = vmatmul.mubr.msk.f32.gmra.mrb[22].mxu0 %vm14785_vm8, %v14702_v51 }
 0x287   : > { %12650 = vmatpush3.bf16.msra.mxu0 %v10076_v62  ;;  %12678 = vmatpush3.bf16.msra.mxu1 %v10076_v62  ;;  %v10119_v62 = vld [vmem:[%s16065_s3 + $0x1f0] sm:$0xff]  }
 0x288   : > { %11479 = vmatprep.mubr.msk.f32.mxu0 %vm14795_vm9, %v14702_v51  ;;  %12652 = vmatprep.subr.bf16.mxu0 %v10077_v48 }
 0x289   : > { %12679 = vmatprep.subr.bf16.mxu1 %v13750_v4 }
 0x28a   : > { %11480 = vmatmul.mubr.msk.f32.gmra.mrb[24].mxu0 %vm14807_vm10, %v14702_v51 }
 0x28b   : > { %12654 = vmatpush3.bf16.msra.mxu0 %v10077_v48  ;;  %12681 = vmatpush3.bf16.msra.mxu1 %v10077_v48 }
 0x28c   : > { %11482 = vmatprep.mubr.msk.f32.mxu0 %vm14817_vm11, %v14702_v51  ;;  %12656 = vmatprep.subr.bf16.mxu0 %v10078_v44 }
 0x28d   : > { %12682 = vmatprep.subr.bf16.mxu1 %v13750_v4 }
 0x28e   : > { %11483 = vmatmul.mubr.msk.f32.gmra.mrb[26].mxu0 %vm14829_vm12, %v14702_v51 }
 0x28f   : > { %12658 = vmatpush3.bf16.msra.mxu0 %v10078_v44  ;;  %12684 = vmatpush3.bf16.msra.mxu1 %v10078_v44 }
 0x290   : > { %11485 = vmatprep.mubr.msk.f32.mxu0 %vm14839_vm13, %v14702_v51  ;;  %12660 = vmatprep.subr.bf16.mxu0 %v10079_v50 }
 0x291   : > { %12685 = vmatprep.subr.bf16.mxu1 %v13750_v4 }
 0x292   : > { %11486 = vmatmul.mubr.msk.f32.gmra.mrb[28].mxu0 %vm14851_vm14, %v14702_v51  ;;  %vm16140_vm14 = vnez %v16108_v31 }
 0x293   : > { %12662 = vmatpush3.bf16.msra.mxu0 %v10079_v50  ;;  %12687 = vmatpush3.bf16.msra.mxu1 %v10079_v50 }
 0x294   : > { %11488 = vmatprep.mubr.msk.f32.mxu0 %vm14861_vm15, %v14702_v51  ;;  %12664 = vmatprep.subr.bf16.mxu0 %v10080_v11 }
 0x295   : > { %12688 = vmatprep.subr.bf16.mxu1 %v13750_v4 }
 0x296   : > { %11489 = vmatmul.mubr.msk.f32.gmra.mrb[30].mxu0 %vm14872_vm0, %v14702_v51 }
 0x297   : > { %12666 = vmatpush3.bf16.msra.mxu0 %v10080_v11  ;;  %12690 = vmatpush3.bf16.msra.mxu1 %v10080_v11  ;;  %v10120_v11 = vld [vmem:[%s16065_s3 + $0x1f8] sm:$0xff]  }
 0x298   : > { %11558 = vmatprep.mubr.msk.f32.mxu0 %vm16140_vm14, %v14702_v51  ;;  %12692 = vmatprep.subr.bf16.mxu0 %v10081_v47 }
 0x299   : > { %12723 = vmatprep.subr.bf16.mxu1 %v13750_v4 }
 0x29a   : > { %11559 = vmatmul.mubr.msk.f32.vlgmr.msra.gmra.mrb[32].mxu0 %vm14719_vm2, %v14702_v51  ;;  %11615 = vmatmul.mubr.f32.vlgmr.msra.gmra.mrb[0].mxu1 %v14716_v63 }
 0x29b   : > { %12694 = vmatpush3.bf16.msra.mxu0 %v10081_v47  ;;  %12725 = vmatpush3.bf16.msra.mxu1 %v10081_v47 }
 0x29c   : > { %11561 = vmatprep.mubr.msk.f32.mxu0 %vm14726_vm3, %v14702_v51  ;;  %12696 = vmatprep.subr.bf16.mxu0 %v10082_v9 }
 0x29d   : > { %12726 = vmatprep.subr.bf16.mxu1 %v13750_v4  ;;  %11705 = vmatprep.mubr.msk.f32.mxu1 %vm16139_vm1, %v13751_v53 }
 0x29e   : > { %11562 = vmatmul.mubr.msk.f32.gmra.mrb[34].mxu0 %vm14739_vm4, %v14702_v51 }
 0x29f   : > { %12698 = vmatpush3.bf16.msra.mxu0 %v10082_v9  ;;  %12728 = vmatpush3.bf16.msra.mxu1 %v10082_v9 }
 0x2a0   : > { %11564 = vmatprep.mubr.msk.f32.mxu0 %vm14749_vm5, %v14702_v51  ;;  %12700 = vmatprep.subr.bf16.mxu0 %v10083_v13 }
 0x2a1   : > { %12729 = vmatprep.subr.bf16.mxu1 %v13750_v4 }
 0x2a2   : > { %11565 = vmatmul.mubr.msk.f32.gmra.mrb[36].mxu0 %vm14763_vm6, %v14702_v51 }
 0x2a3   : > { %12702 = vmatpush3.bf16.msra.mxu0 %v10083_v13  ;;  %12731 = vmatpush3.bf16.msra.mxu1 %v10083_v13 }
 0x2a4   : > { %11567 = vmatprep.mubr.msk.f32.mxu0 %vm14773_vm7, %v14702_v51  ;;  %12704 = vmatprep.subr.bf16.mxu0 %v10084_v43 }
 0x2a5   : > { %12732 = vmatprep.subr.bf16.mxu1 %v13750_v4 }
 0x2a6   : > { %11568 = vmatmul.mubr.msk.f32.gmra.mrb[38].mxu0 %vm14785_vm8, %v14702_v51 }
 0x2a7   : > { %12706 = vmatpush3.bf16.msra.mxu0 %v10084_v43  ;;  %12734 = vmatpush3.bf16.msra.mxu1 %v10084_v43  ;;  %v10121_v43 = vld [vmem:[%s16065_s3 + $0x200] sm:$0xff]  }
 0x2a8   : > { %11570 = vmatprep.mubr.msk.f32.mxu0 %vm14795_vm9, %v14702_v51  ;;  %12708 = vmatprep.subr.bf16.mxu0 %v10085_v21 }
 0x2a9   : > { %12735 = vmatprep.subr.bf16.mxu1 %v13750_v4 }
 0x2aa   : > { %11571 = vmatmul.mubr.msk.f32.gmra.mrb[40].mxu0 %vm14807_vm10, %v14702_v51 }
 0x2ab   : > { %12710 = vmatpush3.bf16.msra.mxu0 %v10085_v21  ;;  %12737 = vmatpush3.bf16.msra.mxu1 %v10085_v21 }
 0x2ac   : > { %11573 = vmatprep.mubr.msk.f32.mxu0 %vm14817_vm11, %v14702_v51  ;;  %12712 = vmatprep.subr.bf16.mxu0 %v10086_v24  ;;  %vm16141_vm11 = vnez %v16134_v52 }
 0x2ad   : > { %12738 = vmatprep.subr.bf16.mxu1 %v13750_v4 }
 0x2ae   : > { %11574 = vmatmul.mubr.msk.f32.gmra.mrb[42].mxu0 %vm14829_vm12, %v14702_v51 }
 0x2af   : > { %12714 = vmatpush3.bf16.msra.mxu0 %v10086_v24  ;;  %12740 = vmatpush3.bf16.msra.mxu1 %v10086_v24 }
 0x2b0   : > { %11576 = vmatprep.mubr.msk.f32.mxu0 %vm14839_vm13, %v14702_v51  ;;  %12716 = vmatprep.subr.bf16.mxu0 %v10087_v35 }
 0x2b1   : > { %12741 = vmatprep.subr.bf16.mxu1 %v13750_v4 }
 0x2b2   : > { %11577 = vmatmul.mubr.msk.f32.gmra.mrb[44].mxu0 %vm16141_vm11, %v14702_v51 }
 0x2b3   : > { %12718 = vmatpush3.bf16.msra.mxu0 %v10087_v35  ;;  %12743 = vmatpush3.bf16.msra.mxu1 %v10087_v35 }
 0x2b4   : > { %11579 = vmatprep.mubr.msk.f32.mxu0 %vm14861_vm15, %v14702_v51  ;;  %12720 = vmatprep.subr.bf16.mxu0 %v10088_v58 }
 0x2b5   : > { %12744 = vmatprep.subr.bf16.mxu1 %v13750_v4 }
 0x2b6   : > { %11580 = vmatmul.mubr.msk.f32.gmra.mrb[46].mxu0 %vm14872_vm0, %v14702_v51 }
 0x2b7   : > { %12722 = vmatpush3.bf16.msra.mxu0 %v10088_v58  ;;  %12746 = vmatpush3.bf16.msra.mxu1 %v10088_v58  ;;  %v10122_v58 = vld [vmem:[%s16065_s3 + $0x208] sm:$0xff]  }
 0x2b8   : > { %11649 = vmatprep.mubr.msk.f32.mxu0 %vm16140_vm14, %v14702_v51  ;;  %12748 = vmatprep.subr.bf16.mxu0 %v10089_v27 }
 0x2b9   : > { %12779 = vmatprep.subr.bf16.mxu1 %v13750_v4 }
 0x2ba   : > { %11650 = vmatmul.mubr.msk.f32.vlgmr.msra.gmra.mrb[48].mxu0 %vm14719_vm2, %v14702_v51  ;;  %11706 = vmatmul.mubr.f32.vlgmr.msra.gmra.mrb[0].mxu1 %v14716_v63 }
 0x2bb   : > { %12750 = vmatpush3.bf16.msra.mxu0 %v10089_v27  ;;  %12781 = vmatpush3.bf16.msra.mxu1 %v10089_v27 }
 0x2bc   : > { %11652 = vmatprep.mubr.msk.f32.mxu0 %vm14726_vm3, %v14702_v51  ;;  %12752 = vmatprep.subr.bf16.mxu0 %v10090_v7 }
 0x2bd   : > { %12782 = vmatprep.subr.bf16.mxu1 %v13750_v4  ;;  %11796 = vmatprep.mubr.msk.f32.mxu1 %vm16139_vm1, %v13751_v53 }
 0x2be   : > { %11653 = vmatmul.mubr.msk.f32.gmra.mrb[50].mxu0 %vm14739_vm4, %v14702_v51 }
 0x2bf   : > { %12754 = vmatpush3.bf16.msra.mxu0 %v10090_v7  ;;  %12784 = vmatpush3.bf16.msra.mxu1 %v10090_v7 }
 0x2c0   : > { %11655 = vmatprep.mubr.msk.f32.mxu0 %vm14749_vm5, %v14702_v51  ;;  %12756 = vmatprep.subr.bf16.mxu0 %v10091_v60 }
 0x2c1   : > { %12785 = vmatprep.subr.bf16.mxu1 %v13750_v4 }
 0x2c2   : > { %11656 = vmatmul.mubr.msk.f32.gmra.mrb[52].mxu0 %vm14763_vm6, %v14702_v51 }
 0x2c3   : > { %12758 = vmatpush3.bf16.msra.mxu0 %v10091_v60  ;;  %12787 = vmatpush3.bf16.msra.mxu1 %v10091_v60 }
 0x2c4   : > { %11658 = vmatprep.mubr.msk.f32.mxu0 %vm14773_vm7, %v14702_v51  ;;  %12760 = vmatprep.subr.bf16.mxu0 %v10092_v20 }
 0x2c5   : > { %12788 = vmatprep.subr.bf16.mxu1 %v13750_v4 }
 0x2c6   : > { %11659 = vmatmul.mubr.msk.f32.gmra.mrb[54].mxu0 %vm14785_vm8, %v14702_v51  ;;  %vm16142_vm8 = vnez %v16128_v41 }
 0x2c7   : > { %12762 = vmatpush3.bf16.msra.mxu0 %v10092_v20  ;;  %12790 = vmatpush3.bf16.msra.mxu1 %v10092_v20  ;;  %v10123_v20 = vld [vmem:[%s16065_s3 + $0x210] sm:$0xff]  }
 0x2c8   : > { %11661 = vmatprep.mubr.msk.f32.mxu0 %vm14795_vm9, %v14702_v51  ;;  %12764 = vmatprep.subr.bf16.mxu0 %v10093_v45 }
 0x2c9   : > { %12791 = vmatprep.subr.bf16.mxu1 %v13750_v4 }
 0x2ca   : > { %11662 = vmatmul.mubr.msk.f32.gmra.mrb[56].mxu0 %vm14807_vm10, %v14702_v51 }
 0x2cb   : > { %12766 = vmatpush3.bf16.msra.mxu0 %v10093_v45  ;;  %12793 = vmatpush3.bf16.msra.mxu1 %v10093_v45 }
 0x2cc   : > { %11664 = vmatprep.mubr.msk.f32.mxu0 %vm16142_vm8, %v14702_v51  ;;  %12768 = vmatprep.subr.bf16.mxu0 %v10094_v5 }
 0x2cd   : > { %12794 = vmatprep.subr.bf16.mxu1 %v13750_v4 }
 0x2ce   : > { %11665 = vmatmul.mubr.msk.f32.gmra.mrb[58].mxu0 %vm14829_vm12, %v14702_v51 }
 0x2cf   : > { %12770 = vmatpush3.bf16.msra.mxu0 %v10094_v5  ;;  %12796 = vmatpush3.bf16.msra.mxu1 %v10094_v5 }
 0x2d0   : > { %11667 = vmatprep.mubr.msk.f32.mxu0 %vm14839_vm13, %v14702_v51  ;;  %12772 = vmatprep.subr.bf16.mxu0 %v10095_v55 }
 0x2d1   : > { %12797 = vmatprep.subr.bf16.mxu1 %v13750_v4 }
 0x2d2   : > { %11668 = vmatmul.mubr.msk.f32.gmra.mrb[60].mxu0 %vm16141_vm11, %v14702_v51 }
 0x2d3   : > { %12774 = vmatpush3.bf16.msra.mxu0 %v10095_v55  ;;  %12799 = vmatpush3.bf16.msra.mxu1 %v10095_v55 }
 0x2d4   : > { %11670 = vmatprep.mubr.msk.f32.mxu0 %vm14861_vm15, %v14702_v51  ;;  %12776 = vmatprep.subr.bf16.mxu0 %v10096_v29 }
 0x2d5   : > { %12800 = vmatprep.subr.bf16.mxu1 %v13750_v4 }
 0x2d6   : > { %11671 = vmatmul.mubr.msk.f32.gmra.mrb[62].mxu0 %vm14872_vm0, %v14702_v51 }
 0x2d7   : > { %12778 = vmatpush3.bf16.msra.mxu0 %v10096_v29  ;;  %12802 = vmatpush3.bf16.msra.mxu1 %v10096_v29 }
 0x2d8   : > { %11740 = vmatprep.mubr.msk.f32.mxu0 %vm16140_vm14, %v14702_v51  ;;  %12804 = vmatprep.subr.bf16.mxu0 %v10097_v25 }
 0x2d9   : > { %12835 = vmatprep.subr.bf16.mxu1 %v13750_v4 }
 0x2da   : > { %11741 = vmatmul.mubr.msk.f32.vlgmr.msra.gmra.mrb[64].mxu0 %vm14719_vm2, %v14702_v51  ;;  %11797 = vmatmul.mubr.f32.vlgmr.msra.gmra.mrb[0].mxu1 %v14716_v63 }
 0x2db   : > { %12806 = vmatpush3.bf16.msra.mxu0 %v10097_v25  ;;  %12837 = vmatpush3.bf16.msra.mxu1 %v10097_v25 }
 0x2dc   : > { %11743 = vmatprep.mubr.msk.f32.mxu0 %vm14726_vm3, %v14702_v51  ;;  %12808 = vmatprep.subr.bf16.mxu0 %v10098_v23 }
 0x2dd   : > { %12838 = vmatprep.subr.bf16.mxu1 %v13750_v4  ;;  %11887 = vmatprep.mubr.msk.f32.mxu1 %vm16139_vm1, %v13751_v53 }
 0x2de   : > { %11744 = vmatmul.mubr.msk.f32.gmra.mrb[66].mxu0 %vm14739_vm4, %v14702_v51 }
 0x2df   : > { %12810 = vmatpush3.bf16.msra.mxu0 %v10098_v23  ;;  %12840 = vmatpush3.bf16.msra.mxu1 %v10098_v23 }
 0x2e0   : > { %11746 = vmatprep.mubr.msk.f32.mxu0 %vm14749_vm5, %v14702_v51  ;;  %12812 = vmatprep.subr.bf16.mxu0 %v10099_v12  ;;  %vm16143_vm5 = vnez %v16122_v42 }
 0x2e1   : > { %12841 = vmatprep.subr.bf16.mxu1 %v13750_v4 }
 0x2e2   : > { %11747 = vmatmul.mubr.msk.f32.gmra.mrb[68].mxu0 %vm14763_vm6, %v14702_v51 }
 0x2e3   : > { %12814 = vmatpush3.bf16.msra.mxu0 %v10099_v12  ;;  %12843 = vmatpush3.bf16.msra.mxu1 %v10099_v12  ;;  %v10125_v12 = vld [vmem:[%s16065_s3 + $0x220] sm:$0xff]  }
 0x2e4   : > { %11749 = vmatprep.mubr.msk.f32.mxu0 %vm14773_vm7, %v14702_v51  ;;  %12816 = vmatprep.subr.bf16.mxu0 %v10100_v19 }
 0x2e5   : > { %12844 = vmatprep.subr.bf16.mxu1 %v13750_v4 }
 0x2e6   : > { %11750 = vmatmul.mubr.msk.f32.gmra.mrb[70].mxu0 %vm16143_vm5, %v14702_v51 }
 0x2e7   : > { %12818 = vmatpush3.bf16.msra.mxu0 %v10100_v19  ;;  %12846 = vmatpush3.bf16.msra.mxu1 %v10100_v19 }
 0x2e8   : > { %11752 = vmatprep.mubr.msk.f32.mxu0 %vm14795_vm9, %v14702_v51  ;;  %12820 = vmatprep.subr.bf16.mxu0 %v10101_v34 }
 0x2e9   : > { %12847 = vmatprep.subr.bf16.mxu1 %v13750_v4 }
 0x2ea   : > { %11753 = vmatmul.mubr.msk.f32.gmra.mrb[72].mxu0 %vm14807_vm10, %v14702_v51 }
 0x2eb   : > { %12822 = vmatpush3.bf16.msra.mxu0 %v10101_v34  ;;  %12849 = vmatpush3.bf16.msra.mxu1 %v10101_v34 }
 0x2ec   : > { %11755 = vmatprep.mubr.msk.f32.mxu0 %vm16142_vm8, %v14702_v51  ;;  %12824 = vmatprep.subr.bf16.mxu0 %v10102_v18 }
 0x2ed   : > { %12850 = vmatprep.subr.bf16.mxu1 %v13750_v4 }
 0x2ee   : > { %11756 = vmatmul.mubr.msk.f32.gmra.mrb[74].mxu0 %vm14829_vm12, %v14702_v51 }
 0x2ef   : > { %12826 = vmatpush3.bf16.msra.mxu0 %v10102_v18  ;;  %12852 = vmatpush3.bf16.msra.mxu1 %v10102_v18 }
 0x2f0   : > { %11758 = vmatprep.mubr.msk.f32.mxu0 %vm14839_vm13, %v14702_v51  ;;  %12828 = vmatprep.subr.bf16.mxu0 %v10103_v17 }
 0x2f1   : > { %12853 = vmatprep.subr.bf16.mxu1 %v13750_v4 }
 0x2f2   : > { %11759 = vmatmul.mubr.msk.f32.gmra.mrb[76].mxu0 %vm16141_vm11, %v14702_v51 }
 0x2f3   : > { %12830 = vmatpush3.bf16.msra.mxu0 %v10103_v17  ;;  %12855 = vmatpush3.bf16.msra.mxu1 %v10103_v17  ;;  %v10126_v17 = vld [vmem:[%s16065_s3 + $0x228] sm:$0xff]  }
 0x2f4   : > { %11761 = vmatprep.mubr.msk.f32.mxu0 %vm14861_vm15, %v14702_v51  ;;  %12832 = vmatprep.subr.bf16.mxu0 %v10104_v39 }
 0x2f5   : > { %12856 = vmatprep.subr.bf16.mxu1 %v13750_v4 }
 0x2f6   : > { %11762 = vmatmul.mubr.msk.f32.gmra.mrb[78].mxu0 %vm14872_vm0, %v14702_v51 }
 0x2f7   : > { %12834 = vmatpush3.bf16.msra.mxu0 %v10104_v39  ;;  %12858 = vmatpush3.bf16.msra.mxu1 %v10104_v39 }
 0x2f8   : > { %11831 = vmatprep.mubr.msk.f32.mxu0 %vm16140_vm14, %v14702_v51  ;;  %12860 = vmatprep.subr.bf16.mxu0 %v10105_v57 }
 0x2f9   : > { %12891 = vmatprep.subr.bf16.mxu1 %v13750_v4 }
 0x2fa   : > { %11832 = vmatmul.mubr.msk.f32.vlgmr.msra.gmra.mrb[80].mxu0 %vm14719_vm2, %v14702_v51  ;;  %11888 = vmatmul.mubr.f32.vlgmr.msra.gmra.mrb[0].mxu1 %v14716_v63  ;;  %vm16144_vm2 = vnez %v16116_v8 }
 0x2fb   : > { %12862 = vmatpush3.bf16.msra.mxu0 %v10105_v57  ;;  %12893 = vmatpush3.bf16.msra.mxu1 %v10105_v57 }
 0x2fc   : > { %11834 = vmatprep.mubr.msk.f32.mxu0 %vm14726_vm3, %v14702_v51  ;;  %12864 = vmatprep.subr.bf16.mxu0 %v10106_v14 }
 0x2fd   : > { %12894 = vmatprep.subr.bf16.mxu1 %v13750_v4  ;;  %11978 = vmatprep.mubr.msk.f32.mxu1 %vm16139_vm1, %v13751_v53 }
 0x2fe   : > { %11835 = vmatmul.mubr.msk.f32.gmra.mrb[82].mxu0 %vm14739_vm4, %v14702_v51 }
 0x2ff   : > { %12866 = vmatpush3.bf16.msra.mxu0 %v10106_v14  ;;  %12896 = vmatpush3.bf16.msra.mxu1 %v10106_v14 }
 0x300   : > { %11837 = vmatprep.mubr.msk.f32.mxu0 %vm16144_vm2, %v14702_v51  ;;  %12868 = vmatprep.subr.bf16.mxu0 %v10107_v54 }
 0x301   : > { %12897 = vmatprep.subr.bf16.mxu1 %v13750_v4 }
 0x302   : > { %11838 = vmatmul.mubr.msk.f32.gmra.mrb[84].mxu0 %vm14763_vm6, %v14702_v51 }
 0x303   : > { %12870 = vmatpush3.bf16.msra.mxu0 %v10107_v54  ;;  %12899 = vmatpush3.bf16.msra.mxu1 %v10107_v54  ;;  %v10127_v54 = vld [vmem:[%s16065_s3 + $0x230] sm:$0xff]  }
 0x304   : > { %11840 = vmatprep.mubr.msk.f32.mxu0 %vm14773_vm7, %v14702_v51  ;;  %12872 = vmatprep.subr.bf16.mxu0 %v10108_v49 }
 0x305   : > { %12900 = vmatprep.subr.bf16.mxu1 %v13750_v4 }
 0x306   : > { %11841 = vmatmul.mubr.msk.f32.gmra.mrb[86].mxu0 %vm16143_vm5, %v14702_v51 }
 0x307   : > { %12874 = vmatpush3.bf16.msra.mxu0 %v10108_v49  ;;  %12902 = vmatpush3.bf16.msra.mxu1 %v10108_v49 }
 0x308   : > { %11843 = vmatprep.mubr.msk.f32.mxu0 %vm14795_vm9, %v14702_v51  ;;  %12876 = vmatprep.subr.bf16.mxu0 %v10109_v22 }
 0x309   : > { %12903 = vmatprep.subr.bf16.mxu1 %v13750_v4 }
 0x30a   : > { %11844 = vmatmul.mubr.msk.f32.gmra.mrb[88].mxu0 %vm14807_vm10, %v14702_v51 }
 0x30b   : > { %12878 = vmatpush3.bf16.msra.mxu0 %v10109_v22  ;;  %12905 = vmatpush3.bf16.msra.mxu1 %v10109_v22 }
 0x30c   : > { %11846 = vmatprep.mubr.msk.f32.mxu0 %vm16142_vm8, %v14702_v51  ;;  %12880 = vmatprep.subr.bf16.mxu0 %v10110_v56 }
 0x30d   : > { %12906 = vmatprep.subr.bf16.mxu1 %v13750_v4 }
 0x30e   : > { %11847 = vmatmul.mubr.msk.f32.gmra.mrb[90].mxu0 %vm14829_vm12, %v14702_v51 }
 0x30f   : > { %12882 = vmatpush3.bf16.msra.mxu0 %v10110_v56  ;;  %12908 = vmatpush3.bf16.msra.mxu1 %v10110_v56 }
 0x310   : > { %11849 = vmatprep.mubr.msk.f32.mxu0 %vm14839_vm13, %v14702_v51  ;;  %12884 = vmatprep.subr.bf16.mxu0 %v10111_v6 }
 0x311   : > { %12909 = vmatprep.subr.bf16.mxu1 %v13750_v4 }
 0x312   : > { %11850 = vmatmul.mubr.msk.f32.gmra.mrb[92].mxu0 %vm16141_vm11, %v14702_v51 }
 0x313   : > { %12886 = vmatpush3.bf16.msra.mxu0 %v10111_v6  ;;  %12911 = vmatpush3.bf16.msra.mxu1 %v10111_v6  ;;  %v10128_v6 = vld [vmem:[%s16065_s3 + $0x238] sm:$0xff]  }
 0x314   : > { %11852 = vmatprep.mubr.msk.f32.mxu0 %vm14861_vm15, %v14702_v51  ;;  %12888 = vmatprep.subr.bf16.mxu0 %v10112_v15  ;;  %vm16145_vm15 = vnez %v16110_v32 }
 0x315   : > { %12912 = vmatprep.subr.bf16.mxu1 %v13750_v4 }
 0x316   : > { %11853 = vmatmul.mubr.msk.f32.gmra.mrb[94].mxu0 %vm14872_vm0, %v14702_v51 }
 0x317   : > { %12890 = vmatpush3.bf16.msra.mxu0 %v10112_v15  ;;  %12914 = vmatpush3.bf16.msra.mxu1 %v10112_v15 }
 0x318   : > { %11922 = vmatprep.mubr.msk.f32.mxu0 %vm16140_vm14, %v14702_v51  ;;  %12916 = vmatprep.subr.bf16.mxu0 %v10113_v59 }
 0x319   : > { %12947 = vmatprep.subr.bf16.mxu1 %v13750_v4 }
 0x31a   : > { %11923 = vmatmul.mubr.msk.f32.vlgmr.msra.gmra.mrb[96].mxu0 %vm16145_vm15, %v14702_v51  ;;  %11979 = vmatmul.mubr.f32.vlgmr.msra.gmra.mrb[0].mxu1 %v14716_v63 }
 0x31b   : > { %12918 = vmatpush3.bf16.msra.mxu0 %v10113_v59  ;;  %12949 = vmatpush3.bf16.msra.mxu1 %v10113_v59 }
 0x31c   : > { %11925 = vmatprep.mubr.msk.f32.mxu0 %vm14726_vm3, %v14702_v51  ;;  %12920 = vmatprep.subr.bf16.mxu0 %v10114_v1 }
 0x31d   : > { %12950 = vmatprep.subr.bf16.mxu1 %v13750_v4  ;;  %12069 = vmatprep.mubr.msk.f32.mxu1 %vm16139_vm1, %v13751_v53 }
 0x31e   : > { %11926 = vmatmul.mubr.msk.f32.gmra.mrb[98].mxu0 %vm14739_vm4, %v14702_v51 }
 0x31f   : > { %12922 = vmatpush3.bf16.msra.mxu0 %v10114_v1  ;;  %12952 = vmatpush3.bf16.msra.mxu1 %v10114_v1 }
 0x320   : > { %11928 = vmatprep.mubr.msk.f32.mxu0 %vm16144_vm2, %v14702_v51  ;;  %12924 = vmatprep.subr.bf16.mxu0 %v10115_v37 }
 0x321   : > { %12953 = vmatprep.subr.bf16.mxu1 %v13750_v4 }
 0x322   : > { %11929 = vmatmul.mubr.msk.f32.gmra.mrb[100].mxu0 %vm14763_vm6, %v14702_v51 }
 0x323   : > { %12926 = vmatpush3.bf16.msra.mxu0 %v10115_v37  ;;  %12955 = vmatpush3.bf16.msra.mxu1 %v10115_v37 }
 0x324   : > { %11931 = vmatprep.mubr.msk.f32.mxu0 %vm14773_vm7, %v14702_v51  ;;  %12928 = vmatprep.subr.bf16.mxu0 %v10116_v16 }
 0x325   : > { %12956 = vmatprep.subr.bf16.mxu1 %v13750_v4 }
 0x326   : > { %11932 = vmatmul.mubr.msk.f32.gmra.mrb[102].mxu0 %vm16143_vm5, %v14702_v51 }
 0x327   : > { %12930 = vmatpush3.bf16.msra.mxu0 %v10116_v16  ;;  %12958 = vmatpush3.bf16.msra.mxu1 %v10116_v16 }
 0x328   : > { %11934 = vmatprep.mubr.msk.f32.mxu0 %vm14795_vm9, %v14702_v51  ;;  %12932 = vmatprep.subr.bf16.mxu0 %v10117_v30 }
 0x329   : > { %12959 = vmatprep.subr.bf16.mxu1 %v13750_v4 }
 0x32a   : > { %11935 = vmatmul.mubr.msk.f32.gmra.mrb[104].mxu0 %vm14807_vm10, %v14702_v51 }
 0x32b   : > { %12934 = vmatpush3.bf16.msra.mxu0 %v10117_v30  ;;  %12961 = vmatpush3.bf16.msra.mxu1 %v10117_v30 }
 0x32c   : > { %11937 = vmatprep.mubr.msk.f32.mxu0 %vm16142_vm8, %v14702_v51  ;;  %12936 = vmatprep.subr.bf16.mxu0 %v10118_v10 }
 0x32d   : > { %v11378_v61 = vpop.f32.mrb[0].mxu0  ;;  %12962 = vmatprep.subr.bf16.mxu1 %v13750_v4 }
 0x32e   : > { %v4305_v48 = vpop.f32.mrb[1].mxu0  ;;  %11938 = vmatmul.mubr.msk.f32.gmra.mrb[106].mxu0 %vm14829_vm12, %v14702_v51 }
 0x32f   : > { %v4384_v44 = vpack.c.bf16 %v11378_v61, %v4305_v48  ;;  %12938 = vmatpush3.bf16.msra.mxu0 %v10118_v10  ;;  %12964 = vmatpush3.bf16.msra.mxu1 %v10118_v10 }
 0x330   : > { %11940 = vmatprep.mubr.msk.f32.mxu0 %vm14839_vm13, %v14702_v51  ;;  %12940 = vmatprep.subr.bf16.mxu0 %v10119_v62  ;;  %vm16146_vm13 = vnez %v16136_v0 }
 0x331   : > { %4392 = vst [vmem:[#allocation4] sm:$0xff] %v4384_v44  ;;  %v11381_v50 = vpop.f32.mrb[2].mxu0  ;;  %12965 = vmatprep.subr.bf16.mxu1 %v13750_v4 }
 0x332   : > { %v4315_v47 = vpop.f32.mrb[3].mxu0  ;;  %11941 = vmatmul.mubr.msk.f32.gmra.mrb[108].mxu0 %vm16141_vm11, %v14702_v51 }
 0x333   : > { %v4385_v9 = vpack.c.bf16 %v11381_v50, %v4315_v47  ;;  %12942 = vmatpush3.bf16.msra.mxu0 %v10119_v62  ;;  %12967 = vmatpush3.bf16.msra.mxu1 %v10119_v62 }
 0x334   : > { %11943 = vmatprep.mubr.msk.f32.mxu0 %vm16146_vm13, %v14702_v51  ;;  %12944 = vmatprep.subr.bf16.mxu0 %v10120_v11 }
 0x335   : > { %4393 = vst [vmem:[#allocation4 + $0x8] sm:$0xff] %v4385_v9  ;;  %v11384_v13 = vpop.f32.mrb[4].mxu0  ;;  %12968 = vmatprep.subr.bf16.mxu1 %v13750_v4 }
 0x336   : > { %v4325_v21 = vpop.f32.mrb[5].mxu0  ;;  %11944 = vmatmul.mubr.msk.f32.gmra.mrb[110].mxu0 %vm14872_vm0, %v14702_v51 }
 0x337   : > { %v4386_v24 = vpack.c.bf16 %v11384_v13, %v4325_v21  ;;  %12946 = vmatpush3.bf16.msra.mxu0 %v10120_v11  ;;  %12970 = vmatpush3.bf16.msra.mxu1 %v10120_v11 }
 0x338   : > { %12013 = vmatprep.mubr.msk.f32.mxu0 %vm16140_vm14, %v14702_v51  ;;  %12972 = vmatprep.subr.bf16.mxu0 %v10121_v43 }
 0x339   : > { %4394 = vst [vmem:[#allocation4 + $0x10] sm:$0xff] %v4386_v24  ;;  %v11387_v35 = vpop.f32.mrb[6].mxu0  ;;  %13003 = vmatprep.subr.bf16.mxu1 %v13750_v4 }
 0x33a   : > { %v4335_v27 = vpop.f32.mrb[7].mxu0  ;;  %12014 = vmatmul.mubr.msk.f32.vlgmr.msra.gmra.mrb[112].mxu0 %vm16145_vm15, %v14702_v51  ;;  %12070 = vmatmul.mubr.f32.vlgmr.msra.gmra.mrb[0].mxu1 %v14716_v63 }
 0x33b   : > { %v4387_v7 = vpack.c.bf16 %v11387_v35, %v4335_v27  ;;  %12974 = vmatpush3.bf16.msra.mxu0 %v10121_v43  ;;  %13005 = vmatpush3.bf16.msra.mxu1 %v10121_v43 }
 0x33c   : > { %12016 = vmatprep.mubr.msk.f32.mxu0 %vm14726_vm3, %v14702_v51  ;;  %12976 = vmatprep.subr.bf16.mxu0 %v10122_v58 }
 0x33d   : > { %4395 = vst [vmem:[#allocation4 + $0x18] sm:$0xff] %v4387_v7  ;;  %v11390_v60 = vpop.f32.mrb[8].mxu0  ;;  %13006 = vmatprep.subr.bf16.mxu1 %v13750_v4  ;;  %12160 = vmatprep.mubr.msk.f32.mxu1 %vm16139_vm1, %v13751_v53  ;;  %v10124_v53 = vld [vmem:[%s16065_s3 + $0x218] sm:$0xff]   ;;  %vm16147_vm1 = vnez %v16132_v3 }
 0x33e   : > { %v4345_v45 = vpop.f32.mrb[9].mxu0  ;;  %12017 = vmatmul.mubr.msk.f32.gmra.mrb[114].mxu0 %vm14739_vm4, %v14702_v51 }
 0x33f   : > { %v4388_v5 = vpack.c.bf16 %v11390_v60, %v4345_v45  ;;  %12978 = vmatpush3.bf16.msra.mxu0 %v10122_v58  ;;  %13008 = vmatpush3.bf16.msra.mxu1 %v10122_v58 }
 0x340   : > { %12019 = vmatprep.mubr.msk.f32.mxu0 %vm16144_vm2, %v14702_v51  ;;  %12980 = vmatprep.subr.bf16.mxu0 %v10123_v20 }
 0x341   : > { %4396 = vst [vmem:[#allocation4 + $0x20] sm:$0xff] %v4388_v5  ;;  %v11393_v55 = vpop.f32.mrb[10].mxu0  ;;  %13009 = vmatprep.subr.bf16.mxu1 %v13750_v4 }
 0x342   : > { %v4355_v29 = vpop.f32.mrb[11].mxu0  ;;  %12020 = vmatmul.mubr.msk.f32.gmra.mrb[116].mxu0 %vm14763_vm6, %v14702_v51 }
 0x343   : > { %v4389_v25 = vpack.c.bf16 %v11393_v55, %v4355_v29  ;;  %12982 = vmatpush3.bf16.msra.mxu0 %v10123_v20  ;;  %13011 = vmatpush3.bf16.msra.mxu1 %v10123_v20 }
 0x344   : > { %12022 = vmatprep.mubr.msk.f32.mxu0 %vm14773_vm7, %v14702_v51  ;;  %12984 = vmatprep.subr.bf16.mxu0 %v10124_v53 }
 0x345   : > { %4397 = vst [vmem:[#allocation4 + $0x28] sm:$0xff] %v4389_v25  ;;  %v11396_v23 = vpop.f32.mrb[12].mxu0  ;;  %13012 = vmatprep.subr.bf16.mxu1 %v13750_v4 }
 0x346   : > { %v4365_v19 = vpop.f32.mrb[13].mxu0  ;;  %12023 = vmatmul.mubr.msk.f32.gmra.mrb[118].mxu0 %vm16143_vm5, %v14702_v51 }
 0x347   : > { %v4390_v34 = vpack.c.bf16 %v11396_v23, %v4365_v19  ;;  %12986 = vmatpush3.bf16.msra.mxu0 %v10124_v53  ;;  %13014 = vmatpush3.bf16.msra.mxu1 %v10124_v53 }
 0x348   : > { %12025 = vmatprep.mubr.msk.f32.mxu0 %vm14795_vm9, %v14702_v51  ;;  %12988 = vmatprep.subr.bf16.mxu0 %v10125_v12 }
 0x349   : > { %4398 = vst [vmem:[#allocation4 + $0x30] sm:$0xff] %v4390_v34  ;;  %v11399_v18 = vpop.f32.mrb[14].mxu0  ;;  %13015 = vmatprep.subr.bf16.mxu1 %v13750_v4 }
 0x34a   : > { %v4375_v39 = vpop.f32.mrb[15].mxu0  ;;  %12026 = vmatmul.mubr.msk.f32.gmra.mrb[120].mxu0 %vm14807_vm10, %v14702_v51 }
 0x34b   : > { %v4391_v57 = vpack.c.bf16 %v11399_v18, %v4375_v39  ;;  %12990 = vmatpush3.bf16.msra.mxu0 %v10125_v12  ;;  %13017 = vmatpush3.bf16.msra.mxu1 %v10125_v12 }
 0x34c   : > { %12028 = vmatprep.mubr.msk.f32.mxu0 %vm16142_vm8, %v14702_v51  ;;  %12992 = vmatprep.subr.bf16.mxu0 %v10126_v17 }
 0x34d   : > { %4399 = vst [vmem:[#allocation4 + $0x38] sm:$0xff] %v4391_v57  ;;  %v11469_v14 = vpop.f32.mrb[16].mxu0  ;;  %13018 = vmatprep.subr.bf16.mxu1 %v13750_v4 }
 0x34e   : > { %v4570_v49 = vpop.f32.mrb[17].mxu0  ;;  %12029 = vmatmul.mubr.msk.f32.gmra.mrb[122].mxu0 %vm14829_vm12, %v14702_v51 }
 0x34f   : > { %v4649_v22 = vpack.c.bf16 %v11469_v14, %v4570_v49  ;;  %12994 = vmatpush3.bf16.msra.mxu0 %v10126_v17  ;;  %13020 = vmatpush3.bf16.msra.mxu1 %v10126_v17 }
 0x350   : > { %12031 = vmatprep.mubr.msk.f32.mxu0 %vm16147_vm1, %v14702_v51  ;;  %12996 = vmatprep.subr.bf16.mxu0 %v10127_v54 }
 0x351   : > { %4658 = vst [vmem:[#allocation4 + $0x40] sm:$0xff] %v4649_v22  ;;  %v11472_v56 = vpop.f32.mrb[18].mxu0  ;;  %13021 = vmatprep.subr.bf16.mxu1 %v13750_v4 }
 0x352   : > { %v4580_v15 = vpop.f32.mrb[19].mxu0  ;;  %12032 = vmatmul.mubr.msk.f32.gmra.mrb[124].mxu0 %vm16141_vm11, %v14702_v51 }
 0x353   : > { %v4650_v59 = vpack.c.bf16 %v11472_v56, %v4580_v15  ;;  %12998 = vmatpush3.bf16.msra.mxu0 %v10127_v54  ;;  %13023 = vmatpush3.bf16.msra.mxu1 %v10127_v54 }
 0x354   : > { %12034 = vmatprep.mubr.msk.f32.mxu0 %vm16146_vm13, %v14702_v51  ;;  %13000 = vmatprep.subr.bf16.mxu0 %v10128_v6 }
 0x355   : > { %4659 = vst [vmem:[#allocation4 + $0x48] sm:$0xff] %v4650_v59  ;;  %v11475_v1 = vpop.f32.mrb[20].mxu0  ;;  %13024 = vmatprep.subr.bf16.mxu1 %v13750_v4 }
 0x356   : > { %v4590_v37 = vpop.f32.mrb[21].mxu0  ;;  %12035 = vmatmul.mubr.msk.f32.gmra.mrb[126].mxu0 %vm14872_vm0, %v14702_v51 }
 0x357   : > { %v4651_v16 = vpack.c.bf16 %v11475_v1, %v4590_v37  ;;  %13002 = vmatpush3.bf16.msra.mxu0 %v10128_v6  ;;  %13026 = vmatpush3.bf16.msra.mxu1 %v10128_v6 }
 0x358   : > { %12104 = vmatprep.mubr.msk.f32.mxu0 %vm16140_vm14, %v14702_v51 }
 0x359   : > { %4660 = vst [vmem:[#allocation4 + $0x50] sm:$0xff] %v4651_v16  ;;  %v11478_v30 = vpop.f32.mrb[22].mxu0 }
 0x35a   : > { %v4600_v10 = vpop.f32.mrb[23].mxu0  ;;  %12105 = vmatmul.mubr.msk.f32.vlgmr.msra.gmra.mrb[128].mxu0 %vm16145_vm15, %v14702_v51  ;;  %12161 = vmatmul.mubr.f32.vlgmr.msra.gmra.mrb[0].mxu1 %v14716_v63 }
 0x35b   : > { %v4652_v4 = vpack.c.bf16 %v11478_v30, %v4600_v10  ;;  %12107 = vmatprep.mubr.msk.f32.mxu0 %vm14726_vm3, %v14702_v51 }
 0x35d   : > { %4661 = vst [vmem:[#allocation4 + $0x58] sm:$0xff] %v4652_v4  ;;  %v11481_v61 = vpop.f32.mrb[24].mxu0 }
 0x35e   : > { %v4610_v62 = vpop.f32.mrb[25].mxu0  ;;  %12108 = vmatmul.mubr.msk.f32.gmra.mrb[130].mxu0 %vm14739_vm4, %v14702_v51 }
 0x35f   : > { %v4653_v31 = vpack.c.bf16 %v11481_v61, %v4610_v62  ;;  %12110 = vmatprep.mubr.msk.f32.mxu0 %vm16144_vm2, %v14702_v51 }
 0x361   : > { %4662 = vst [vmem:[#allocation4 + $0x60] sm:$0xff] %v4653_v31  ;;  %v11484_v32 = vpop.f32.mrb[26].mxu0 }
 0x362   : > { %v4620_v63 = vpop.f32.mrb[27].mxu0  ;;  %12111 = vmatmul.mubr.msk.f32.gmra.mrb[132].mxu0 %vm14763_vm6, %v14702_v51 }
 0x363   : > { %v4654_v40 = vpack.c.bf16 %v11484_v32, %v4620_v63  ;;  %12113 = vmatprep.mubr.msk.f32.mxu0 %vm14773_vm7, %v14702_v51 }
 0x365   : > { %4663 = vst [vmem:[#allocation4 + $0x68] sm:$0xff] %v4654_v40  ;;  %v11487_v33 = vpop.f32.mrb[28].mxu0 }
 0x366   : > { %v4630_v48 = vpop.f32.mrb[29].mxu0  ;;  %12114 = vmatmul.mubr.msk.f32.gmra.mrb[134].mxu0 %vm16143_vm5, %v14702_v51 }
 0x367   : > { %v4655_v8 = vpack.c.bf16 %v11487_v33, %v4630_v48  ;;  %12116 = vmatprep.mubr.msk.f32.mxu0 %vm14795_vm9, %v14702_v51 }
 0x369   : > { %4664 = vst [vmem:[#allocation4 + $0x70] sm:$0xff] %v4655_v8  ;;  %v11490_v36 = vpop.f32.mrb[30].mxu0 }
 0x36a   : > { %v4640_v44 = vpop.f32.mrb[31].mxu0  ;;  %12117 = vmatmul.mubr.msk.f32.gmra.mrb[136].mxu0 %vm14807_vm10, %v14702_v51 }
 0x36b   : > { %v4656_v2 = vpack.c.bf16 %v11490_v36, %v4640_v44  ;;  %12119 = vmatprep.mubr.msk.f32.mxu0 %vm16142_vm8, %v14702_v51 }
 0x36d   : > { %4665 = vst [vmem:[#allocation4 + $0x78] sm:$0xff] %v4656_v2  ;;  %v11560_v42 = vpop.f32.mrb[32].mxu0 }
 0x36e   : > { %v4836_v50 = vpop.f32.mrb[33].mxu0  ;;  %12120 = vmatmul.mubr.msk.f32.gmra.mrb[138].mxu0 %vm14829_vm12, %v14702_v51 }
 0x36f   : > { %v4915_v46 = vpack.c.bf16 %v11560_v42, %v4836_v50  ;;  %12122 = vmatprep.mubr.msk.f32.mxu0 %vm16147_vm1, %v14702_v51 }
 0x371   : > { %4924 = vst [vmem:[#allocation4 + $0x80] sm:$0xff] %v4915_v46  ;;  %v11563_v38 = vpop.f32.mrb[34].mxu0 }
 0x372   : > { %v4846_v11 = vpop.f32.mrb[35].mxu0  ;;  %12123 = vmatmul.mubr.msk.f32.gmra.mrb[140].mxu0 %vm16141_vm11, %v14702_v51 }
 0x373   : > { %v4916_v41 = vpack.c.bf16 %v11563_v38, %v4846_v11  ;;  %12125 = vmatprep.mubr.msk.f32.mxu0 %vm16146_vm13, %v14702_v51 }
 0x375   : > { %4925 = vst [vmem:[#allocation4 + $0x88] sm:$0xff] %v4916_v41  ;;  %v11566_v28 = vpop.f32.mrb[36].mxu0 }
 0x376   : > { %v4856_v47 = vpop.f32.mrb[37].mxu0  ;;  %12126 = vmatmul.mubr.msk.f32.gmra.mrb[142].mxu0 %vm14872_vm0, %v14702_v51 }
 0x377   : > { %v4917_v3 = vpack.c.bf16 %v11566_v28, %v4856_v47 }
 0x379   : > { %4926 = vst [vmem:[#allocation4 + $0x90] sm:$0xff] %v4917_v3  ;;  %v11569_v9 = vpop.f32.mrb[38].mxu0 }
 0x37a   : > { %v4866_v13 = vpop.f32.mrb[39].mxu0 }
 0x37b   : > { %v4918_v43 = vpack.c.bf16 %v11569_v9, %v4866_v13 }
 0x37d   : > { %4927 = vst [vmem:[#allocation4 + $0x98] sm:$0xff] %v4918_v43  ;;  %v11572_v52 = vpop.f32.mrb[40].mxu0 }
 0x37e   : > { %v4876_v21 = vpop.f32.mrb[41].mxu0 }
 0x37f   : > { %v4919_v24 = vpack.c.bf16 %v11572_v52, %v4876_v21 }
 0x381   : > { %4928 = vst [vmem:[#allocation4 + $0xa0] sm:$0xff] %v4919_v24  ;;  %v11575_v35 = vpop.f32.mrb[42].mxu0 }
 0x382   : > { %v4886_v0 = vpop.f32.mrb[43].mxu0 }
 0x383   : > { %v4920_v58 = vpack.c.bf16 %v11575_v35, %v4886_v0 }
 0x385   : > { %4929 = vst [vmem:[#allocation4 + $0xa8] sm:$0xff] %v4920_v58  ;;  %v11578_v27 = vpop.f32.mrb[44].mxu0 }
 0x386   : > { %v4896_v7 = vpop.f32.mrb[45].mxu0 }
 0x387   : > { %v4921_v60 = vpack.c.bf16 %v11578_v27, %v4896_v7 }
 0x389   : > { %4930 = vst [vmem:[#allocation4 + $0xb0] sm:$0xff] %v4921_v60  ;;  %v11581_v26 = vpop.f32.mrb[46].mxu0 }
 0x38a   : > { %v4906_v51 = vpop.f32.mrb[47].mxu0 }
 0x38b   : > { %v4922_v20 = vpack.c.bf16 %v11581_v26, %v4906_v51 }
 0x38d   : > { %4931 = vst [vmem:[#allocation4 + $0xb8] sm:$0xff] %v4922_v20  ;;  %v11651_v45 = vpop.f32.mrb[48].mxu0 }
 0x38e   : > { %v5102_v5 = vpop.f32.mrb[49].mxu0 }
 0x38f   : > { %v5181_v55 = vpack.c.bf16 %v11651_v45, %v5102_v5 }
 0x391   : > { %5190 = vst [vmem:[#allocation4 + $0xc0] sm:$0xff] %v5181_v55  ;;  %v11654_v53 = vpop.f32.mrb[50].mxu0 }
 0x392   : > { %v5112_v29 = vpop.f32.mrb[51].mxu0 }
 0x393   : > { %v5182_v25 = vpack.c.bf16 %v11654_v53, %v5112_v29 }
 0x395   : > { %5191 = vst [vmem:[#allocation4 + $0xc8] sm:$0xff] %v5182_v25  ;;  %v11657_v23 = vpop.f32.mrb[52].mxu0 }
 0x396   : > { %v5122_v12 = vpop.f32.mrb[53].mxu0 }
 0x397   : > { %v5183_v19 = vpack.c.bf16 %v11657_v23, %v5122_v12 }
 0x399   : > { %5192 = vst [vmem:[#allocation4 + $0xd0] sm:$0xff] %v5183_v19  ;;  %v11660_v34 = vpop.f32.mrb[54].mxu0 }
 0x39a   : > { %v5132_v18 = vpop.f32.mrb[55].mxu0 }
 0x39b   : > { %v5184_v17 = vpack.c.bf16 %v11660_v34, %v5132_v18 }
 0x39d   : > { %5193 = vst [vmem:[#allocation4 + $0xd8] sm:$0xff] %v5184_v17  ;;  %v11663_v39 = vpop.f32.mrb[56].mxu0 }
 0x39e   : > { %v5142_v57 = vpop.f32.mrb[57].mxu0 }
 0x39f   : > { %v5185_v14 = vpack.c.bf16 %v11663_v39, %v5142_v57 }
 0x3a1   : > { %5194 = vst [vmem:[#allocation4 + $0xe0] sm:$0xff] %v5185_v14  ;;  %v11666_v54 = vpop.f32.mrb[58].mxu0 }
 0x3a2   : > { %v5152_v49 = vpop.f32.mrb[59].mxu0 }
 0x3a3   : > { %v5186_v22 = vpack.c.bf16 %v11666_v54, %v5152_v49 }
 0x3a5   : > { %5195 = vst [vmem:[#allocation4 + $0xe8] sm:$0xff] %v5186_v22  ;;  %v11669_v56 = vpop.f32.mrb[60].mxu0 }
 0x3a6   : > { %v5162_v6 = vpop.f32.mrb[61].mxu0 }
 0x3a7   : > { %v5187_v15 = vpack.c.bf16 %v11669_v56, %v5162_v6 }
 0x3a9   : > { %5196 = vst [vmem:[#allocation4 + $0xf0] sm:$0xff] %v5187_v15  ;;  %v11672_v59 = vpop.f32.mrb[62].mxu0 }
 0x3aa   : > { %v5172_v1 = vpop.f32.mrb[63].mxu0 }
 0x3ab   : > { %v5188_v37 = vpack.c.bf16 %v11672_v59, %v5172_v1 }
 0x3ad   : > { %5197 = vst [vmem:[#allocation4 + $0xf8] sm:$0xff] %v5188_v37  ;;  %v11742_v16 = vpop.f32.mrb[64].mxu0 }
 0x3ae   : > { %v5368_v30 = vpop.f32.mrb[65].mxu0 }
 0x3af   : > { %v5447_v10 = vpack.c.bf16 %v11742_v16, %v5368_v30 }
 0x3b1   : > { %5456 = vst [vmem:[#allocation4 + $0x100] sm:$0xff] %v5447_v10  ;;  %v11745_v4 = vpop.f32.mrb[66].mxu0 }
 0x3b2   : > { %v5378_v61 = vpop.f32.mrb[67].mxu0 }
 0x3b3   : > { %v5448_v62 = vpack.c.bf16 %v11745_v4, %v5378_v61 }
 0x3b5   : > { %5457 = vst [vmem:[#allocation4 + $0x108] sm:$0xff] %v5448_v62  ;;  %v11748_v31 = vpop.f32.mrb[68].mxu0 }
 0x3b6   : > { %v5388_v32 = vpop.f32.mrb[69].mxu0 }
 0x3b7   : > { %v5449_v63 = vpack.c.bf16 %v11748_v31, %v5388_v32 }
 0x3b9   : > { %5458 = vst [vmem:[#allocation4 + $0x110] sm:$0xff] %v5449_v63  ;;  %v11751_v40 = vpop.f32.mrb[70].mxu0 }
 0x3ba   : > { %v5398_v33 = vpop.f32.mrb[71].mxu0 }
 0x3bb   : > { %v5450_v48 = vpack.c.bf16 %v11751_v40, %v5398_v33 }
 0x3bd   : > { %5459 = vst [vmem:[#allocation4 + $0x118] sm:$0xff] %v5450_v48  ;;  %v11754_v8 = vpop.f32.mrb[72].mxu0 }
 0x3be   : > { %v5408_v36 = vpop.f32.mrb[73].mxu0 }
 0x3bf   : > { %v5451_v44 = vpack.c.bf16 %v11754_v8, %v5408_v36 }
 0x3c1   : > { %5460 = vst [vmem:[#allocation4 + $0x120] sm:$0xff] %v5451_v44  ;;  %v11757_v2 = vpop.f32.mrb[74].mxu0 }
 0x3c2   : > { %v5418_v42 = vpop.f32.mrb[75].mxu0 }
 0x3c3   : > { %v5452_v50 = vpack.c.bf16 %v11757_v2, %v5418_v42 }
 0x3c5   : > { %5461 = vst [vmem:[#allocation4 + $0x128] sm:$0xff] %v5452_v50  ;;  %v11760_v46 = vpop.f32.mrb[76].mxu0 }
 0x3c6   : > { %v5428_v38 = vpop.f32.mrb[77].mxu0 }
 0x3c7   : > { %v5453_v11 = vpack.c.bf16 %v11760_v46, %v5428_v38 }
 0x3c9   : > { %5462 = vst [vmem:[#allocation4 + $0x130] sm:$0xff] %v5453_v11  ;;  %v11763_v41 = vpop.f32.mrb[78].mxu0 }
 0x3ca   : > { %v5438_v28 = vpop.f32.mrb[79].mxu0 }
 0x3cb   : > { %v5454_v47 = vpack.c.bf16 %v11763_v41, %v5438_v28 }
 0x3cd   : > { %5463 = vst [vmem:[#allocation4 + $0x138] sm:$0xff] %v5454_v47  ;;  %v11833_v3 = vpop.f32.mrb[80].mxu0 }
 0x3ce   : > { %v5634_v9 = vpop.f32.mrb[81].mxu0 }
 0x3cf   : > { %v5713_v13 = vpack.c.bf16 %v11833_v3, %v5634_v9 }
 0x3d1   : > { %5722 = vst [vmem:[#allocation4 + $0x140] sm:$0xff] %v5713_v13  ;;  %v11836_v43 = vpop.f32.mrb[82].mxu0 }
 0x3d2   : > { %v5644_v52 = vpop.f32.mrb[83].mxu0 }
 0x3d3   : > { %v5714_v21 = vpack.c.bf16 %v11836_v43, %v5644_v52 }
 0x3d5   : > { %5723 = vst [vmem:[#allocation4 + $0x148] sm:$0xff] %v5714_v21  ;;  %v11839_v24 = vpop.f32.mrb[84].mxu0 }
 0x3d6   : > { %v5654_v35 = vpop.f32.mrb[85].mxu0 }
 0x3d7   : > { %v5715_v0 = vpack.c.bf16 %v11839_v24, %v5654_v35 }
 0x3d9   : > { %5724 = vst [vmem:[#allocation4 + $0x150] sm:$0xff] %v5715_v0  ;;  %v11842_v58 = vpop.f32.mrb[86].mxu0  ;;  %v4206_v0 = vld [vmem:[%s16066_s4] sm:$0x1] }
 0x3da   : > { %v5664_v27 = vpop.f32.mrb[87].mxu0 }
 0x3db   : > { %v5716_v7 = vpack.c.bf16 %v11842_v58, %v5664_v27 }
 0x3dd   : > { %5725 = vst [vmem:[#allocation4 + $0x158] sm:$0xff] %v5716_v7  ;;  %v11845_v60 = vpop.f32.mrb[88].mxu0 }
 0x3de   : > { %v5674_v26 = vpop.f32.mrb[89].mxu0 }
 0x3df   : > { %v5717_v51 = vpack.c.bf16 %v11845_v60, %v5674_v26 }
 0x3e1   : > { %5726 = vst [vmem:[#allocation4 + $0x160] sm:$0xff] %v5717_v51  ;;  %v11848_v20 = vpop.f32.mrb[90].mxu0 }
 0x3e2   : > { %v5684_v45 = vpop.f32.mrb[91].mxu0 }
 0x3e3   : > { %v5718_v5 = vpack.c.bf16 %v11848_v20, %v5684_v45 }
 0x3e5   : > { %5727 = vst [vmem:[#allocation4 + $0x168] sm:$0xff] %v5718_v5  ;;  %v11851_v55 = vpop.f32.mrb[92].mxu0 }
 0x3e6   : > { %v5694_v53 = vpop.f32.mrb[93].mxu0 }
 0x3e7   : > { %v5719_v29 = vpack.c.bf16 %v11851_v55, %v5694_v53 }
 0x3e9   : > { %5728 = vst [vmem:[#allocation4 + $0x170] sm:$0xff] %v5719_v29  ;;  %v11854_v25 = vpop.f32.mrb[94].mxu0 }
 0x3ea   : > { %v5704_v23 = vpop.f32.mrb[95].mxu0 }
 0x3eb   : > { %v5720_v12 = vpack.c.bf16 %v11854_v25, %v5704_v23 }
 0x3ed   : > { %5729 = vst [vmem:[#allocation4 + $0x178] sm:$0xff] %v5720_v12  ;;  %v11924_v19 = vpop.f32.mrb[96].mxu0 }
 0x3ee   : > { %v5900_v34 = vpop.f32.mrb[97].mxu0 }
 0x3ef   : > { %v5979_v18 = vpack.c.bf16 %v11924_v19, %v5900_v34 }
 0x3f1   : > { %5988 = vst [vmem:[#allocation4 + $0x180] sm:$0xff] %v5979_v18  ;;  %v11927_v17 = vpop.f32.mrb[98].mxu0 }
 0x3f2   : > { %v5910_v39 = vpop.f32.mrb[99].mxu0 }
 0x3f3   : > { %v5980_v57 = vpack.c.bf16 %v11927_v17, %v5910_v39 }
 0x3f5   : > { %5989 = vst [vmem:[#allocation4 + $0x188] sm:$0xff] %v5980_v57  ;;  %v11930_v14 = vpop.f32.mrb[100].mxu0 }
 0x3f6   : > { %v5920_v54 = vpop.f32.mrb[101].mxu0 }
 0x3f7   : > { %v5981_v49 = vpack.c.bf16 %v11930_v14, %v5920_v54 }
 0x3f9   : > { %5990 = vst [vmem:[#allocation4 + $0x190] sm:$0xff] %v5981_v49  ;;  %v11933_v22 = vpop.f32.mrb[102].mxu0 }
 0x3fa   : > { %v5930_v56 = vpop.f32.mrb[103].mxu0 }
 0x3fb   : > { %v5982_v6 = vpack.c.bf16 %v11933_v22, %v5930_v56 }
 0x3fd   : > { %5991 = vst [vmem:[#allocation4 + $0x198] sm:$0xff] %v5982_v6  ;;  %v11936_v15 = vpop.f32.mrb[104].mxu0 }
 0x3fe   : > { %v5940_v59 = vpop.f32.mrb[105].mxu0 }
 0x3ff   : > { %v5983_v1 = vpack.c.bf16 %v11936_v15, %v5940_v59 }
 0x401   : > { %5992 = vst [vmem:[#allocation4 + $0x1a0] sm:$0xff] %v5983_v1  ;;  %v11939_v37 = vpop.f32.mrb[106].mxu0 }
 0x402   : > { %v5950_v16 = vpop.f32.mrb[107].mxu0 }
 0x403   : > { %v5984_v30 = vpack.c.bf16 %v11939_v37, %v5950_v16 }
 0x405   : > { %5993 = vst [vmem:[#allocation4 + $0x1a8] sm:$0xff] %v5984_v30  ;;  %v11942_v10 = vpop.f32.mrb[108].mxu0 }
 0x406   : > { %v5960_v4 = vpop.f32.mrb[109].mxu0 }
 0x407   : > { %v5985_v61 = vpack.c.bf16 %v11942_v10, %v5960_v4 }
 0x409   : > { %5994 = vst [vmem:[#allocation4 + $0x1b0] sm:$0xff] %v5985_v61  ;;  %v11945_v62 = vpop.f32.mrb[110].mxu0 }
 0x40a   : > { %v5970_v31 = vpop.f32.mrb[111].mxu0 }
 0x40b   : > { %v5986_v32 = vpack.c.bf16 %v11945_v62, %v5970_v31 }
 0x40d   : > { %5995 = vst [vmem:[#allocation4 + $0x1b8] sm:$0xff] %v5986_v32  ;;  %v12015_v63 = vpop.f32.mrb[112].mxu0 }
 0x40e   : > { %v6166_v40 = vpop.f32.mrb[113].mxu0 }
 0x40f   : > { %v6245_v33 = vpack.c.bf16 %v12015_v63, %v6166_v40 }
 0x411   : > { %6254 = vst [vmem:[#allocation4 + $0x1c0] sm:$0xff] %v6245_v33  ;;  %v12018_v48 = vpop.f32.mrb[114].mxu0 }
 0x412   : > { %v6176_v8 = vpop.f32.mrb[115].mxu0 }
 0x413   : > { %v6246_v36 = vpack.c.bf16 %v12018_v48, %v6176_v8 }
 0x415   : > { %6255 = vst [vmem:[#allocation4 + $0x1c8] sm:$0xff] %v6246_v36  ;;  %v12021_v44 = vpop.f32.mrb[116].mxu0 }
 0x416   : > { %v6186_v2 = vpop.f32.mrb[117].mxu0 }
 0x417   : > { %v6247_v42 = vpack.c.bf16 %v12021_v44, %v6186_v2 }
 0x419   : > { %6256 = vst [vmem:[#allocation4 + $0x1d0] sm:$0xff] %v6247_v42  ;;  %v12024_v50 = vpop.f32.mrb[118].mxu0 }
 0x41a   : > { %v6196_v46 = vpop.f32.mrb[119].mxu0 }
 0x41b   : > { %v6248_v38 = vpack.c.bf16 %v12024_v50, %v6196_v46 }
 0x41d   : > { %6257 = vst [vmem:[#allocation4 + $0x1d8] sm:$0xff] %v6248_v38  ;;  %v12027_v11 = vpop.f32.mrb[120].mxu0 }
 0x41e   : > { %v6206_v41 = vpop.f32.mrb[121].mxu0 }
 0x41f   : > { %v6249_v28 = vpack.c.bf16 %v12027_v11, %v6206_v41 }
 0x421   : > { %6258 = vst [vmem:[#allocation4 + $0x1e0] sm:$0xff] %v6249_v28  ;;  %v12030_v47 = vpop.f32.mrb[122].mxu0 }
 0x422   : > { %v6216_v3 = vpop.f32.mrb[123].mxu0 }
 0x423   : > { %v6250_v9 = vpack.c.bf16 %v12030_v47, %v6216_v3 }
 0x425   : > { %6259 = vst [vmem:[#allocation4 + $0x1e8] sm:$0xff] %v6250_v9  ;;  %v12033_v13 = vpop.f32.mrb[124].mxu0 }
 0x426   : > { %v6226_v43 = vpop.f32.mrb[125].mxu0 }
 0x427   : > { %v6251_v52 = vpack.c.bf16 %v12033_v13, %v6226_v43 }
 0x429   : > { %6260 = vst [vmem:[#allocation4 + $0x1f0] sm:$0xff] %v6251_v52  ;;  %v12036_v21 = vpop.f32.mrb[126].mxu0 }
 0x42a   : > { %v6236_v24 = vpop.f32.mrb[127].mxu0 }
 0x42b   : > { %v6252_v35 = vpack.c.bf16 %v12036_v21, %v6236_v24 }
 0x42d   : > { %6261 = vst [vmem:[#allocation4 + $0x1f8] sm:$0xff] %v6252_v35  ;;  %v12106_v58 = vpop.f32.mrb[128].mxu0  ;;  %v6594_v27 = vpop.f32.mrb[0].mxu1 }
 0x42e   : > { %v13267_v7 = vadd.f32 %v6594_v27, %v4206_v0  ;;  %v6432_v60 = vpop.f32.mrb[129].mxu0  ;;  %v12162_v26 = vpop.f32.mrb[1].mxu1 }
 0x42f   : > { %v6511_v51 = vpack.c.bf16 %v12106_v58, %v6432_v60 }
 0x430   : > { %6599 = vst [vmem:[#allocation5] sm:$0x1] %v13267_v7 }
 0x431   : > { %6520 = vst [vmem:[#allocation4 + $0x200] sm:$0xff] %v6511_v51  ;;  %v12109_v20 = vpop.f32.mrb[130].mxu0 }
 0x432   : > { %v6442_v45 = vpop.f32.mrb[131].mxu0 }
 0x433   : > { %v6512_v5 = vpack.c.bf16 %v12109_v20, %v6442_v45 }
 0x435   : > { %6521 = vst [vmem:[#allocation4 + $0x208] sm:$0xff] %v6512_v5  ;;  %v12112_v55 = vpop.f32.mrb[132].mxu0 }
 0x436   : > { %v6452_v53 = vpop.f32.mrb[133].mxu0 }
 0x437   : > { %v6513_v29 = vpack.c.bf16 %v12112_v55, %v6452_v53 }
 0x439   : > { %6522 = vst [vmem:[#allocation4 + $0x210] sm:$0xff] %v6513_v29  ;;  %v12115_v25 = vpop.f32.mrb[134].mxu0 }
 0x43a   : > { %v6462_v23 = vpop.f32.mrb[135].mxu0 }
 0x43b   : > { %v6514_v12 = vpack.c.bf16 %v12115_v25, %v6462_v23 }
 0x43d   : > { %6523 = vst [vmem:[#allocation4 + $0x218] sm:$0xff] %v6514_v12  ;;  %v12118_v19 = vpop.f32.mrb[136].mxu0 }
 0x43e   : > { %v6472_v34 = vpop.f32.mrb[137].mxu0 }
 0x43f   : > { %v6515_v18 = vpack.c.bf16 %v12118_v19, %v6472_v34 }
 0x441   : > { %6524 = vst [vmem:[#allocation4 + $0x220] sm:$0xff] %v6515_v18  ;;  %v12121_v17 = vpop.f32.mrb[138].mxu0 }
 0x442   : > { %v6482_v39 = vpop.f32.mrb[139].mxu0 }
 0x443   : > { %v6516_v57 = vpack.c.bf16 %v12121_v17, %v6482_v39 }
 0x445   : > { %6525 = vst [vmem:[#allocation4 + $0x228] sm:$0xff] %v6516_v57  ;;  %v12124_v14 = vpop.f32.mrb[140].mxu0 }
 0x446   : > { %v6492_v54 = vpop.f32.mrb[141].mxu0 }
 0x447   : > { %v6517_v49 = vpack.c.bf16 %v12124_v14, %v6492_v54 }
 0x449   : > { %6526 = vst [vmem:[#allocation4 + $0x230] sm:$0xff] %v6517_v49  ;;  %v12127_v22 = vpop.f32.mrb[142].mxu0 }
 0x44a   : > { %v6502_v56 = vpop.f32.mrb[143].mxu0 }
 0x44b   : > { %v6518_v6 = vpack.c.bf16 %v12127_v22, %v6502_v56 }
 0x44d   : > { %6527 = vst [vmem:[#allocation4 + $0x238] sm:$0xff] %v6518_v6 }
 0x44e PF: > { %v6626_v15 = vld [vmem:[#allocation4 + $0x40] sm:$0xff]  ;;  %v6627_v1 = vld [vmem:[#allocation4 + $0x48] sm:$0xff]  ;;  %s9769_s9 = smul.u32 120, %s13730_s21  ;;  %v6628_v16 = vld [vmem:[#allocation4 + $0x50] sm:$0xff]  ;;  %vm6634_vm0 = vsmask.f32 7424 }
 0x44f   : > { %v7396_v59 = vld [vmem:[#allocation4 + $0x100] sm:$0xff]  ;;  %12163 = vmatprep.subr.bf16.mxu1 %v6626_v15  ;;  %v7397_v37 = vld [vmem:[#allocation4 + $0x108] sm:$0xff]  ;;  %v7398_v30 = vld [vmem:[#allocation4 + $0x110] sm:$0xff]  ;;  %vm7028_vm2 = vcmask 1046528  }
 0x450   : > { %12323 = vmatprep.subr.bf16.mxu0 %v7396_v59  ;;  %12164 = vmatpush3.bf16.msra.mxu1 %v6626_v15  ;;  %s15517_s11 = scalar_lea.vmem [#allocation2], %s9769_s9  ;;  %v6629_v33 = vld [vmem:[#allocation4 + $0x58] sm:$0xff]  ;;  %v6630_v50 = vld [vmem:[#allocation4 + $0x60] sm:$0xff]  ;;  %v6631_v41 = vld [vmem:[#allocation4 + $0x68] sm:$0xff] }
 0x451   : > { %12324 = vmatpush3.bf16.msra.mxu0 %v7396_v59  ;;  %12165 = vmatprep.subr.bf16.mxu1 %v6627_v1  ;;  %v15520_v10 = vld [vmem:[%s15517_s11] sm:$0xff]  ;;  %v15523_v4 = vld [vmem:[%s15517_s11 + $0x8] sm:$0xff]  ;;  %v15529_v32 = vld [vmem:[%s15517_s11 + $0x10] sm:$0xff] }
 0x452   : > { %12325 = vmatprep.subr.bf16.mxu0 %v7397_v37  ;;  %v6636_v61 = vshrl.u32 %v15520_v10, 16  ;;  %v6638_v62 = vshll.u32 %v15520_v10, 16  ;;  %v6643_v31 = vshll.u32 %v15523_v4, 16  ;;  %v7405_v63 = vshrl.u32 %v15523_v4, 16  ;;  %v7399_v48 = vld [vmem:[#allocation4 + $0x118] sm:$0xff]  ;;  %v7400_v46 = vld [vmem:[#allocation4 + $0x120] sm:$0xff] }
 0x453   : > { %v7412_v40 = vshll.u32 %v15529_v32, 16  ;;  %v7401_v28 = vld [vmem:[#allocation4 + $0x128] sm:$0xff]  ;;  %v6632_v3 = vld [vmem:[#allocation4 + $0x70] sm:$0xff]  ;;  %v7416_v43 = vshrl.u32 %v15529_v32, 16  ;;  %v6633_v21 = vld [vmem:[#allocation4 + $0x78] sm:$0xff] }
 0x454   : > { %12166 = vmatpush3.bf16.msra.mxu1 %v6627_v1  ;;  %v6640_v8 = vrot.slane %v6638_v62, 1  ;;  %v6645_v36 = vrot.slane %v6643_v31, 1  ;;  %v15536_v47 = vld [vmem:[%s15517_s11 + $0x18] sm:$0xff]  ;;  %v7402_v9 = vld [vmem:[#allocation4 + $0x130] sm:$0xff]  ;;  %v7403_v24 = vld [vmem:[#allocation4 + $0x138] sm:$0xff] }
 0x455   : > { %12326 = vmatpush3.bf16.msra.mxu0 %v7397_v37  ;;  %12167 = vmatprep.subr.bf16.mxu1 %v6628_v16  ;;  %v7414_v44 = vrot.slane %v7412_v40, 1  ;;  %v15539_v13 = vld [vmem:[%s15517_s11 + $0x20] sm:$0xff]  ;;  %v7420_v52 = vshll.u32 %v15536_v47, 16  ;;  %v7424_v35 = vshrl.u32 %v15536_v47, 16  ;;  %v15546_v7 = vld [vmem:[%s15517_s11 + $0x28] sm:$0xff]  ;;  %v7671_v60 = vld [vmem:[#allocation4 + $0x140] sm:$0xff] }
 0x456   : > { %12327 = vmatprep.subr.bf16.mxu0 %v7398_v30  ;;  %v6641_v2 = vor.u32 %v6640_v8, %v6636_v61  ;;  %v7410_v42 = vor.u32 %v7405_v63, %v6645_v36  ;;  %v7428_v0 = vshll.u32 %v15539_v13, 16  ;;  %v6616_v20 = vld [vmem:[#allocation4] sm:$0xff]  ;;  %v7432_v55 = vshrl.u32 %v15539_v13, 16  ;;  %v7672_v29 = vld [vmem:[#allocation4 + $0x148] sm:$0xff]  ;;  %v7673_v39 = vld [vmem:[#allocation4 + $0x150] sm:$0xff] }
 0x457   : > { %v7418_v58 = vor.u32 %v7416_v43, %v7414_v44  ;;  %v7422_v27 = vrot.slane %v7420_v52, 1  ;;  %v15549_v45 = vld [vmem:[%s15517_s11 + $0x30] sm:$0xff]  ;;  %v7436_v53 = vshll.u32 %v15546_v7, 16  ;;  %v7440_v23 = vshrl.u32 %v15546_v7, 16  ;;  %v15564_v18 = vld [vmem:[%s15517_s11 + $0x38] sm:$0xff]  ;;  %v15568_v54 = vld [vmem:[%s15517_s11 + $0x40] sm:$0xff] }
 0x458   : > { %12168 = vmatpush3.bf16.msra.mxu1 %v6628_v16  ;;  %v6646_v38 = vsel %vm6634_vm0, %v6641_v2, %v6645_v36  ;;  %v7415_v11 = vsel %vm6634_vm0, %v7410_v42, %v7414_v44  ;;  %v7430_v51 = vrot.slane %v7428_v0, 1  ;;  %v7444_v12 = vshll.u32 %v15549_v45, 16  ;;  %v6617_v17 = vld [vmem:[#allocation4 + $0x8] sm:$0xff]  ;;  %v7674_v1 = vld [vmem:[#allocation4 + $0x158] sm:$0xff]  ;;  %v6618_v16 = vld [vmem:[#allocation4 + $0x10] sm:$0xff] }
 0x459   : > { %12328 = vmatpush3.bf16.msra.mxu0 %v7398_v30  ;;  %12169 = vmatprep.subr.bf16.mxu1 %v6629_v33  ;;  %v7426_v26 = vor.u32 %v7424_v35, %v7422_v27  ;;  %v15552_v5 = vsel %vm6634_vm0, %v7418_v58, %v7422_v27  ;;  %v7438_v34 = vrot.slane %v7436_v53, 1  ;;  %v7452_v49 = vshll.u32 %v15564_v18, 16  ;;  %v15584_v61 = vld [vmem:[%s15517_s11 + $0x48] sm:$0xff]  ;;  %v7675_v40 = vld [vmem:[#allocation4 + $0x160] sm:$0xff]  ;;  %v6621_v52 = vld [vmem:[#allocation4 + $0x28] sm:$0xff] }
 0x45a   : > { %12329 = vmatprep.subr.bf16.mxu0 %v7399_v48  ;;  %12179 = vmatprep.mubr.bf16.mxu1 %v6646_v38  ;;  %v7434_v19 = vor.u32 %v7432_v55, %v7430_v51  ;;  %v7446_v14 = vrot.slane %v7444_v12, 1  ;;  %v7448_v56 = vshrl.u32 %v15549_v45, 16  ;;  %v7456_v6 = vshrl.u32 %v15564_v18, 16  ;;  %v6619_v63 = vld [vmem:[#allocation4 + $0x18] sm:$0xff]  ;;  %v6620_v38 = vld [vmem:[#allocation4 + $0x20] sm:$0xff] }
 0x45b   : > { %12339 = vmatprep.mubr.bf16.mxu0 %v7415_v11  ;;  %v15557_v25 = vsel %vm6634_vm0, %v7426_v26, %v7430_v51  ;;  %v7442_v57 = vor.u32 %v7440_v23, %v7438_v34  ;;  %v7460_v15 = vshll.u32 %v15568_v54, 16  ;;  %v7454_v37 = vrot.slane %v7452_v49, 1  ;;  %v6622_v26 = vld [vmem:[#allocation4 + $0x30] sm:$0xff]  ;;  %v7678_v51 = vld [vmem:[#allocation4 + $0x178] sm:$0xff] }
 0x45c   : > { %12170 = vmatpush3.bf16.msra.mxu1 %v6629_v33  ;;  %v15572_v22 = vsel %vm6634_vm0, %v7434_v19, %v7438_v34  ;;  %v7450_v30 = vor.u32 %v7448_v56, %v7446_v14  ;;  %v15588_v33 = vld [vmem:[%s15517_s11 + $0x50] sm:$0xff]  ;;  %v7464_v36 = vshrl.u32 %v15568_v54, 16  ;;  %v7472_v2 = vshrl.u32 %v15584_v61, 16  ;;  %v15628_v23 = vld [vmem:[%s15517_s11 + $0x68] sm:$0x1] }
 0x45d   : > { %12330 = vmatpush3.bf16.msra.mxu0 %v7399_v48  ;;  %12171 = vmatprep.subr.bf16.mxu1 %v6630_v50  ;;  %v15578_v59 = vsel %vm6634_vm0, %v7442_v57, %v7446_v14  ;;  %v7458_v62 = vor.u32 %v7456_v6, %v7454_v37  ;;  %v7462_v31 = vrot.slane %v7460_v15, 1  ;;  %v7468_v48 = vshll.u32 %v15584_v61, 16  ;;  %v6623_v12 = vld [vmem:[#allocation4 + $0x38] sm:$0xff]  ;;  %v7884_v19 = vld [vmem:[#allocation4 + $0x180] sm:$0xff] }
 0x45e   : > { %12331 = vmatprep.subr.bf16.mxu0 %v7400_v46  ;;  %v15592_v8 = vsel %vm6634_vm0, %v7450_v30, %v7454_v37  ;;  %v7476_v42 = vshll.u32 %v15588_v33, 16  ;;  %v7480_v35 = vshrl.u32 %v15588_v33, 16  ;;  %v7500_v57 = vshll.u32 %v15628_v23, 16  ;;  %v7669_v49 = vld [vmem:[%s15517_s11 + $0x8] sm:$0xfe]  ;;  %v7007_v56 = vld [vmem:[#allocation4 + $0x80] sm:$0xff] }
 0x45f   : > { %v15596_v44 = vsel %vm6634_vm0, %v7458_v62, %v7462_v31  ;;  %v7692_v37 = vrot.slane %v7669_v49, 1 }
 0x460   : > { %12172 = vmatpush3.bf16.msra.mxu1 %v6630_v50  ;;  %v7470_v50 = vrot.slane %v7468_v48, 1 }
 0x461   : > { %12332 = vmatpush3.bf16.msra.mxu0 %v7400_v46  ;;  %12173 = vmatprep.subr.bf16.mxu1 %v6631_v41  ;;  %v7676_v46 = vld [vmem:[#allocation4 + $0x168] sm:$0xff] }
 0x462   : > { %12333 = vmatprep.subr.bf16.mxu0 %v7401_v28 }
 0x464   : > { %12174 = vmatpush3.bf16.msra.mxu1 %v6631_v41  ;;  %v15605_v41 = vld [vmem:[%s15517_s11 + $0x58] sm:$0xff] }
 0x465   : > { %12334 = vmatpush3.bf16.msra.mxu0 %v7401_v28  ;;  %12175 = vmatprep.subr.bf16.mxu1 %v6632_v3  ;;  %v7474_v28 = vor.u32 %v7472_v2, %v7470_v50  ;;  %v7484_v43 = vshll.u32 %v15605_v41, 16  ;;  %v7488_v58 = vshrl.u32 %v15605_v41, 16 }
 0x466   : > { %12335 = vmatprep.subr.bf16.mxu0 %v7402_v9 }
 0x468   : > { %12176 = vmatpush3.bf16.msra.mxu1 %v6632_v3  ;;  %v7478_v3 = vrot.slane %v7476_v42, 1  ;;  %v7008_v42 = vld [vmem:[#allocation4 + $0x88] sm:$0xff] }
 0x469   : > { %12336 = vmatpush3.bf16.msra.mxu0 %v7402_v9  ;;  %12177 = vmatprep.subr.bf16.mxu1 %v6633_v21  ;;  %v15608_v9 = vld [vmem:[%s15517_s11 + $0x60] sm:$0xff] }
 0x46a   : > { %12337 = vmatprep.subr.bf16.mxu0 %v7403_v24  ;;  %v15616_v0 = vsel %vm6634_vm0, %v7474_v28, %v7478_v3  ;;  %v7492_v27 = vshll.u32 %v15608_v9, 16  ;;  %v7887_v28 = vld [vmem:[#allocation4 + $0x198] sm:$0xff]  ;;  %v15712_v49 = vrot.slane %v15608_v9, 1 }
 0x46c   : > { %12178 = vmatpush3.bf16.msra.mxu1 %v6633_v21  ;;  %v7677_v21 = vld [vmem:[#allocation4 + $0x170] sm:$0xff]  ;;  %v7494_v53 = vrot.slane %v7492_v27, 1 }
 0x46d   : > { %12338 = vmatpush3.bf16.msra.mxu0 %v7403_v24  ;;  %12203 = vmatprep.subr.bf16.mxu1 %v6616_v20 }
 0x46e   : > { %12363 = vmatprep.subr.bf16.mxu0 %v7671_v60 }
 0x46f   : > { %12180 = vmatmul.mubr.bf16.vlgmr.msra.gmra.mrb[0].mxu1 %v7415_v11  ;;  %v7466_v11 = vor.u32 %v7464_v36, %v7462_v31  ;;  %v7885_v36 = vld [vmem:[#allocation4 + $0x188] sm:$0xff] }
 0x470   : > { %12340 = vmatmul.mubr.bf16.vlgmr.msra.gmra.mrb[0].mxu0 %v15552_v5  ;;  %12183 = vmatprep.mubr.bf16.mxu1 %v15552_v5 }
 0x471   : > { %12364 = vmatpush3.bf16.msra.mxu0 %v7671_v60  ;;  %12343 = vmatprep.mubr.bf16.mxu0 %v15557_v25  ;;  %v15612_v24 = vsel %vm6634_vm0, %v7466_v11, %v7470_v50  ;;  %v7486_v60 = vrot.slane %v7484_v43, 1  ;;  %v7886_v50 = vld [vmem:[#allocation4 + $0x190] sm:$0xff]  ;;  %v7703_v43 = vrot.slane %v15564_v18, 1 }
 0x472   : > { %12365 = vmatprep.subr.bf16.mxu0 %v7672_v29  ;;  %12204 = vmatpush3.bf16.msra.mxu1 %v6616_v20  ;;  %v7482_v20 = vor.u32 %v7480_v35, %v7478_v3  ;;  %v7009_v3 = vld [vmem:[#allocation4 + $0x90] sm:$0xff]  ;;  %v7888_v35 = vld [vmem:[#allocation4 + $0x1a0] sm:$0xff] }
 0x473   : > { %12205 = vmatprep.subr.bf16.mxu1 %v6617_v17  ;;  %v7490_v55 = vor.u32 %v7488_v58, %v7486_v60 }
 0x474   : > { %v15631_v34 = vsel %vm6634_vm0, %v7482_v20, %v7486_v60  ;;  %v7889_v60 = vld [vmem:[#allocation4 + $0x1a8] sm:$0xff]  ;;  %v7709_v20 = vrot.slane %v15588_v33, 1 }
 0x475   : > { %12366 = vmatpush3.bf16.msra.mxu0 %v7672_v29  ;;  %v15625_v29 = vld [vmem:[%s15517_s11 + $0x60] sm:$0x1]  ;;  %v15637_v14 = vsel %vm6634_vm0, %v7490_v55, %v7494_v53 }
 0x476   : > { %12367 = vmatprep.subr.bf16.mxu0 %v7673_v39  ;;  %12206 = vmatpush3.bf16.msra.mxu1 %v6617_v17  ;;  %v6731_v17 = vshll.u32 %v15625_v29, 16 }
 0x477   : > { %12184 = vmatmul.mubr.bf16.gmra.mrb[4].mxu1 %v15557_v25  ;;  %12207 = vmatprep.subr.bf16.mxu1 %v6618_v16 }
 0x478   : > { %12344 = vmatmul.mubr.bf16.gmra.mrb[4].mxu0 %v15572_v22  ;;  %12187 = vmatprep.mubr.bf16.mxu1 %v15572_v22  ;;  %v6733_v6 = vrot.slane %v6731_v17, 1  ;;  %v7013_v17 = vld [vmem:[#allocation4 + $0xb0] sm:$0xff] }
 0x479   : > { %12368 = vmatpush3.bf16.msra.mxu0 %v7673_v39  ;;  %12347 = vmatprep.mubr.bf16.mxu0 %v15578_v59  ;;  %v7496_v39 = vshrl.u32 %v15608_v9, 16 }
 0x47a   : > { %12369 = vmatprep.subr.bf16.mxu0 %v7674_v1  ;;  %12208 = vmatpush3.bf16.msra.mxu1 %v6618_v16  ;;  %v15647_v16 = vrot.slane %v15529_v32, 1  ;;  %v6734_v30 = vsel %vm6634_vm0, %v7490_v55, %v6733_v6  ;;  %v7012_v55 = vld [vmem:[#allocation4 + $0xa8] sm:$0xff]  ;;  %v8059_v6 = vld [vmem:[#allocation4 + $0x1c0] sm:$0xff] }
 0x47b   : > { %12209 = vmatprep.subr.bf16.mxu1 %v6619_v63  ;;  %v15644_v15 = vor.u32 %v7496_v39, %v7494_v53  ;;  %v7890_v53 = vld [vmem:[#allocation4 + $0x1b0] sm:$0xff]  ;;  %v7891_v39 = vld [vmem:[#allocation4 + $0x1b8] sm:$0xff] }
 0x47c   : > { %v7694_v31 = vsel %vm7028_vm2, %v7692_v37, %v15647_v16 }
 0x47d   : > { %12370 = vmatpush3.bf16.msra.mxu0 %v7674_v1  ;;  %v7502_v1 = vrot.slane %v7500_v57, 1  ;;  %v15709_v57 = vrot.slane %v15605_v41, 1 }
 0x47e   : > { %12371 = vmatprep.subr.bf16.mxu0 %v7675_v40  ;;  %12210 = vmatpush3.bf16.msra.mxu1 %v6619_v63  ;;  %v15656_v63 = vrot.slane %v15536_v47, 1 }
 0x47f   : > { %12188 = vmatmul.mubr.bf16.gmra.mrb[8].mxu1 %v15578_v59  ;;  %12211 = vmatprep.subr.bf16.mxu1 %v6620_v38  ;;  %v7503_v62 = vsel %vm6634_vm0, %v15644_v15, %v7502_v1  ;;  %v15716_v1 = vsel %vm7028_vm2, %v7709_v20, %v15709_v57  ;;  %v15721_v37 = vsel %vm7028_vm2, %v15709_v57, %v15712_v49 }
 0x480   : > { %12348 = vmatmul.mubr.bf16.gmra.mrb[8].mxu0 %v15592_v8  ;;  %12191 = vmatprep.mubr.bf16.mxu1 %v15592_v8  ;;  %v15662_v48 = vsel %vm7028_vm2, %v15647_v16, %v15656_v63 }
 0x481   : > { %12351 = vmatprep.mubr.bf16.mxu0 %v15596_v44  ;;  %12372 = vmatpush3.bf16.msra.mxu0 %v7675_v40  ;;  %v7697_v40 = vrot.slane %v15539_v13, 1 }
 0x482   : > { %12373 = vmatprep.subr.bf16.mxu0 %v7676_v46  ;;  %12212 = vmatpush3.bf16.msra.mxu1 %v6620_v38 }
 0x483   : > { %12213 = vmatprep.subr.bf16.mxu1 %v6621_v52  ;;  %v15666_v2 = vsel %vm7028_vm2, %v15656_v63, %v7697_v40 }
 0x485   : > { %12374 = vmatpush3.bf16.msra.mxu0 %v7676_v46  ;;  %v7701_v46 = vrot.slane %v15549_v45, 1 }
 0x486   : > { %12375 = vmatprep.subr.bf16.mxu0 %v7677_v21  ;;  %12214 = vmatpush3.bf16.msra.mxu1 %v6621_v52  ;;  %v7705_v52 = vrot.slane %v15568_v54, 1 }
 0x487   : > { %12192 = vmatmul.mubr.bf16.gmra.mrb[12].mxu1 %v15596_v44  ;;  %12215 = vmatprep.subr.bf16.mxu1 %v6622_v26  ;;  %v15687_v58 = vsel %vm7028_vm2, %v7701_v46, %v7703_v43 }
 0x488   : > { %12352 = vmatmul.mubr.bf16.gmra.mrb[12].mxu0 %v15612_v24  ;;  %12195 = vmatprep.mubr.bf16.mxu1 %v15612_v24  ;;  %v15690_v27 = vsel %vm7028_vm2, %v7703_v43, %v7705_v52  ;;  %v8063_v43 = vld [vmem:[#allocation4 + $0x1e0] sm:$0xff] }
 0x489   : > { %12355 = vmatprep.mubr.bf16.mxu0 %v15616_v0  ;;  %12376 = vmatpush3.bf16.msra.mxu0 %v7677_v21  ;;  %v7010_v21 = vld [vmem:[#allocation4 + $0x98] sm:$0xff] }
 0x48a   : > { %12377 = vmatprep.subr.bf16.mxu0 %v7678_v51  ;;  %12216 = vmatpush3.bf16.msra.mxu1 %v6622_v26  ;;  %v7011_v26 = vld [vmem:[#allocation4 + $0xa0] sm:$0xff] }
 0x48b   : > { %12217 = vmatprep.subr.bf16.mxu1 %v6623_v12 }
 0x48d   : > { %12378 = vmatpush3.bf16.msra.mxu0 %v7678_v51  ;;  %v7707_v51 = vrot.slane %v15584_v61, 1 }
 0x48e   : > { %12403 = vmatprep.subr.bf16.mxu0 %v7884_v19  ;;  %12218 = vmatpush3.bf16.msra.mxu1 %v6623_v12 }
 0x48f   : > { %12196 = vmatmul.mubr.bf16.gmra.mrb[16].mxu1 %v15616_v0  ;;  %12243 = vmatprep.subr.bf16.mxu1 %v7007_v56  ;;  %v15699_v12 = vsel %vm7028_vm2, %v7705_v52, %v7707_v51  ;;  %v8064_v52 = vld [vmem:[#allocation4 + $0x1e8] sm:$0xff] }
 0x490   : > { %12356 = vmatmul.mubr.bf16.gmra.mrb[16].mxu0 %v15631_v34  ;;  %12199 = vmatprep.mubr.bf16.mxu1 %v15631_v34 }
 0x491   : > { %12359 = vmatprep.mubr.bf16.mxu0 %v15637_v14 }
 0x497   : > { %12200 = vmatmul.mubr.bf16.gmra.mrb[20].mxu1 %v6734_v30  ;;  %v7005_v30 = vld [vmem:[%s15517_s11] sm:$0xfe] }
 0x498   : > { %12360 = vmatmul.mubr.bf16.gmra.mrb[20].mxu0 %v7503_v62  ;;  %12219 = vmatprep.mubr.bf16.mxu1 %v15520_v10  ;;  %v7699_v10 = vrot.slane %v15546_v7, 1  ;;  %v7221_v62 = vld [vmem:[#allocation4 + $0xc0] sm:$0xff] }
 0x499   : > { %12379 = vmatprep.mubr.bf16.mxu0 %v7694_v31  ;;  %v7715_v31 = vrot.slane %v15628_v23, 1  ;;  %v8060_v23 = vld [vmem:[#allocation4 + $0x1c8] sm:$0xff] }
 0x49a   : > { %v15675_v38 = vsel %vm7028_vm2, %v7697_v40, %v7699_v10  ;;  %v15678_v11 = vsel %vm7028_vm2, %v7699_v10, %v7701_v46  ;;  %v7029_v40 = vrot.slane %v7005_v30, 1  ;;  %v7222_v46 = vld [vmem:[#allocation4 + $0xc8] sm:$0xff] }
 0x49b   : > { %v7716_v10 = vsel %vm7028_vm2, %v15712_v49, %v7715_v31 }
 0x49f   : > { %12220 = vmatmul.mubr.bf16.vlgmr.msra.gmra.mrb[0].mxu1 %v15523_v4 }
 0x4a0   : > { %12380 = vmatmul.mubr.bf16.vlgmr.msra.gmra.mrb[0].mxu0 %v15662_v48  ;;  %12223 = vmatprep.mubr.bf16.mxu1 %v15529_v32 }
 0x4a1   : > { %12404 = vmatpush3.bf16.msra.mxu0 %v7884_v19  ;;  %12383 = vmatprep.mubr.bf16.mxu0 %v15666_v2  ;;  %v15702_v19 = vsel %vm7028_vm2, %v7707_v51, %v7709_v20  ;;  %v8066_v51 = vld [vmem:[#allocation4 + $0x1f8] sm:$0xff] }
 0x4a2   : > { %12405 = vmatprep.subr.bf16.mxu0 %v7885_v36  ;;  %12244 = vmatpush3.bf16.msra.mxu1 %v7007_v56  ;;  %v7014_v56 = vld [vmem:[#allocation4 + $0xb8] sm:$0xff] }
 0x4a3   : > { %12245 = vmatprep.subr.bf16.mxu1 %v7008_v42  ;;  %v7228_v20 = vld [vmem:[#allocation4 + $0xf8] sm:$0xff] }
 0x4a5   : > { %12406 = vmatpush3.bf16.msra.mxu0 %v7885_v36  ;;  %v7030_v36 = vrot.slane %v15523_v4, 1 }
 0x4a6   : > { %12407 = vmatprep.subr.bf16.mxu0 %v7886_v50  ;;  %12246 = vmatpush3.bf16.msra.mxu1 %v7008_v42 }
 0x4a7   : > { %12224 = vmatmul.mubr.bf16.gmra.mrb[4].mxu1 %v15536_v47  ;;  %12247 = vmatprep.subr.bf16.mxu1 %v7009_v3  ;;  %v7031_v42 = vsel %vm7028_vm2, %v7029_v40, %v7030_v36 }
 0x4a8   : > { %12384 = vmatmul.mubr.bf16.gmra.mrb[4].mxu0 %v15675_v38  ;;  %12227 = vmatprep.mubr.bf16.mxu1 %v15539_v13 }
 0x4a9   : > { %12408 = vmatpush3.bf16.msra.mxu0 %v7886_v50  ;;  %12387 = vmatprep.mubr.bf16.mxu0 %v15678_v11  ;;  %v7033_v50 = vsel %vm7028_vm2, %v7030_v36, %v15647_v16  ;;  %v7223_v16 = vld [vmem:[#allocation4 + $0xd0] sm:$0xff] }
 0x4aa   : > { %12409 = vmatprep.subr.bf16.mxu0 %v7887_v28  ;;  %12248 = vmatpush3.bf16.msra.mxu1 %v7009_v3  ;;  %v8062_v3 = vld [vmem:[#allocation4 + $0x1d8] sm:$0xff] }
 0x4ab   : > { %12249 = vmatprep.subr.bf16.mxu1 %v7010_v21 }
 0x4ad   : > { %12410 = vmatpush3.bf16.msra.mxu0 %v7887_v28  ;;  %v8061_v28 = vld [vmem:[#allocation4 + $0x1d0] sm:$0xff] }
 0x4ae   : > { %12411 = vmatprep.subr.bf16.mxu0 %v7888_v35  ;;  %12250 = vmatpush3.bf16.msra.mxu1 %v7010_v21  ;;  %v7225_v21 = vld [vmem:[#allocation4 + $0xe0] sm:$0xff] }
 0x4af   : > { %12228 = vmatmul.mubr.bf16.gmra.mrb[8].mxu1 %v15546_v7  ;;  %12251 = vmatprep.subr.bf16.mxu1 %v7011_v26 }
 0x4b0   : > { %12388 = vmatmul.mubr.bf16.gmra.mrb[8].mxu0 %v15687_v58  ;;  %12231 = vmatprep.mubr.bf16.mxu1 %v15549_v45 }
 0x4b1   : > { %12391 = vmatprep.mubr.bf16.mxu0 %v15690_v27  ;;  %12412 = vmatpush3.bf16.msra.mxu0 %v7888_v35  ;;  %v7226_v35 = vld [vmem:[#allocation4 + $0xe8] sm:$0xff] }
 0x4b2   : > { %12413 = vmatprep.subr.bf16.mxu0 %v7889_v60  ;;  %12252 = vmatpush3.bf16.msra.mxu1 %v7011_v26  ;;  %v7227_v26 = vld [vmem:[#allocation4 + $0xf0] sm:$0xff] }
 0x4b3   : > { %12253 = vmatprep.subr.bf16.mxu1 %v7012_v55 }
 0x4b5   : > { %12414 = vmatpush3.bf16.msra.mxu0 %v7889_v60  ;;  %v8065_v60 = vld [vmem:[#allocation4 + $0x1f0] sm:$0xff] }
 0x4b6   : > { %12415 = vmatprep.subr.bf16.mxu0 %v7890_v53  ;;  %12254 = vmatpush3.bf16.msra.mxu1 %v7012_v55  ;;  %v8334_v55 = vld [vmem:[#allocation4 + $0x200] sm:$0xff] }
 0x4b7   : > { %12232 = vmatmul.mubr.bf16.gmra.mrb[12].mxu1 %v15564_v18  ;;  %12255 = vmatprep.subr.bf16.mxu1 %v7013_v17 }
 0x4b8   : > { %12392 = vmatmul.mubr.bf16.gmra.mrb[12].mxu0 %v15699_v12  ;;  %12235 = vmatprep.mubr.bf16.mxu1 %v15568_v54 }
 0x4b9   : > { %12395 = vmatprep.mubr.bf16.mxu0 %v15702_v19  ;;  %12416 = vmatpush3.bf16.msra.mxu0 %v7890_v53  ;;  %v7052_v53 = vrot.slane %v15625_v29, 1  ;;  %v8336_v29 = vld [vmem:[#allocation4 + $0x210] sm:$0xff] }
 0x4ba   : > { %12417 = vmatprep.subr.bf16.mxu0 %v7891_v39  ;;  %12256 = vmatpush3.bf16.msra.mxu1 %v7013_v17 }
 0x4bb   : > { %12257 = vmatprep.subr.bf16.mxu1 %v7014_v56  ;;  %v7053_v17 = vsel %vm7028_vm2, %v15709_v57, %v7052_v53  ;;  %v8337_v57 = vld [vmem:[#allocation4 + $0x218] sm:$0xff] }
 0x4bd   : > { %12418 = vmatpush3.bf16.msra.mxu0 %v7891_v39  ;;  %v15760_v39 = vld [vmem:[%s15517_s11 + $0x68] sm:$0xff] }
 0x4be   : > { %12443 = vmatprep.subr.bf16.mxu0 %v8059_v6  ;;  %12258 = vmatpush3.bf16.msra.mxu1 %v7014_v56  ;;  %v8335_v56 = vld [vmem:[#allocation4 + $0x208] sm:$0xff] }
 0x4bf   : > { %12236 = vmatmul.mubr.bf16.gmra.mrb[16].mxu1 %v15584_v61  ;;  %12283 = vmatprep.subr.bf16.mxu1 %v7221_v62 }
 0x4c0   : > { %12396 = vmatmul.mubr.bf16.gmra.mrb[16].mxu0 %v15716_v1  ;;  %12239 = vmatprep.mubr.bf16.mxu1 %v15588_v33 }
 0x4c1   : > { %12399 = vmatprep.mubr.bf16.mxu0 %v15721_v37 }
 0x4c7   : > { %12240 = vmatmul.mubr.bf16.gmra.mrb[20].mxu1 %v15605_v41 }
 0x4c8   : > { %12400 = vmatmul.mubr.bf16.gmra.mrb[20].mxu0 %v7716_v10  ;;  %12259 = vmatprep.mubr.bf16.mxu1 %v7031_v42 }
 0x4c9   : > { %12419 = vmatprep.mubr.bf16.mxu0 %v15529_v32 }
 0x4cf   : > { %12260 = vmatmul.mubr.bf16.vlgmr.msra.gmra.mrb[0].mxu1 %v7033_v50 }
 0x4d0   : > { %12420 = vmatmul.mubr.bf16.vlgmr.msra.gmra.mrb[0].mxu0 %v15536_v47  ;;  %12263 = vmatprep.mubr.bf16.mxu1 %v15662_v48  ;;  %v7224_v48 = vld [vmem:[#allocation4 + $0xd8] sm:$0xff] }
 0x4d1   : > { %12444 = vmatpush3.bf16.msra.mxu0 %v8059_v6  ;;  %12423 = vmatprep.mubr.bf16.mxu0 %v15539_v13 }
 0x4d2   : > { %12445 = vmatprep.subr.bf16.mxu0 %v8060_v23  ;;  %12284 = vmatpush3.bf16.msra.mxu1 %v7221_v62 }
 0x4d3   : > { %12285 = vmatprep.subr.bf16.mxu1 %v7222_v46 }
 0x4d5   : > { %12446 = vmatpush3.bf16.msra.mxu0 %v8060_v23 }
 0x4d6   : > { %12447 = vmatprep.subr.bf16.mxu0 %v8061_v28  ;;  %12286 = vmatpush3.bf16.msra.mxu1 %v7222_v46 }
 0x4d7   : > { %12264 = vmatmul.mubr.bf16.gmra.mrb[4].mxu1 %v15666_v2  ;;  %12287 = vmatprep.subr.bf16.mxu1 %v7223_v16 }
 0x4d8   : > { %12424 = vmatmul.mubr.bf16.gmra.mrb[4].mxu0 %v15546_v7  ;;  %12267 = vmatprep.mubr.bf16.mxu1 %v15675_v38 }
 0x4d9   : > { %12448 = vmatpush3.bf16.msra.mxu0 %v8061_v28  ;;  %12427 = vmatprep.mubr.bf16.mxu0 %v15549_v45 }
 0x4da   : > { %12449 = vmatprep.subr.bf16.mxu0 %v8062_v3  ;;  %12288 = vmatpush3.bf16.msra.mxu1 %v7223_v16 }
 0x4db   : > { %12289 = vmatprep.subr.bf16.mxu1 %v7224_v48 }
 0x4dd   : > { %12450 = vmatpush3.bf16.msra.mxu0 %v8062_v3 }
 0x4de   : > { %12451 = vmatprep.subr.bf16.mxu0 %v8063_v43  ;;  %12290 = vmatpush3.bf16.msra.mxu1 %v7224_v48 }
 0x4df   : > { %12268 = vmatmul.mubr.bf16.gmra.mrb[8].mxu1 %v15678_v11  ;;  %12291 = vmatprep.subr.bf16.mxu1 %v7225_v21 }
 0x4e0   : > { %12428 = vmatmul.mubr.bf16.gmra.mrb[8].mxu0 %v15564_v18  ;;  %12271 = vmatprep.mubr.bf16.mxu1 %v15687_v58 }
 0x4e1   : > { %12431 = vmatprep.mubr.bf16.mxu0 %v15568_v54  ;;  %12452 = vmatpush3.bf16.msra.mxu0 %v8063_v43 }
 0x4e2   : > { %12453 = vmatprep.subr.bf16.mxu0 %v8064_v52  ;;  %12292 = vmatpush3.bf16.msra.mxu1 %v7225_v21 }
 0x4e3   : > { %12293 = vmatprep.subr.bf16.mxu1 %v7226_v35 }
 0x4e5   : > { %12454 = vmatpush3.bf16.msra.mxu0 %v8064_v52 }
 0x4e6   : > { %12455 = vmatprep.subr.bf16.mxu0 %v8065_v60  ;;  %12294 = vmatpush3.bf16.msra.mxu1 %v7226_v35 }
 0x4e7   : > { %12272 = vmatmul.mubr.bf16.gmra.mrb[12].mxu1 %v15690_v27  ;;  %12295 = vmatprep.subr.bf16.mxu1 %v7227_v26 }
 0x4e8   : > { %12432 = vmatmul.mubr.bf16.gmra.mrb[12].mxu0 %v15584_v61  ;;  %12275 = vmatprep.mubr.bf16.mxu1 %v15699_v12 }
 0x4e9   : > { %12435 = vmatprep.mubr.bf16.mxu0 %v15588_v33  ;;  %12456 = vmatpush3.bf16.msra.mxu0 %v8065_v60 }
 0x4ea   : > { %12457 = vmatprep.subr.bf16.mxu0 %v8066_v51  ;;  %12296 = vmatpush3.bf16.msra.mxu1 %v7227_v26 }
 0x4eb   : > { %12297 = vmatprep.subr.bf16.mxu1 %v7228_v20 }
 0x4ed   : > { %12458 = vmatpush3.bf16.msra.mxu0 %v8066_v51 }
 0x4ee   : > { %12483 = vmatprep.subr.bf16.mxu0 %v8334_v55  ;;  %12298 = vmatpush3.bf16.msra.mxu1 %v7228_v20  ;;  %v8623_v20 = vlaneseq }
 0x4ef   : > { %12276 = vmatmul.mubr.bf16.gmra.mrb[16].mxu1 %v15702_v19  ;;  %13284 = vmatprep.subr.bf16.mxu1 %v8334_v55 }
 0x4f0   : > { %12436 = vmatmul.mubr.bf16.gmra.mrb[16].mxu0 %v15605_v41  ;;  %12279 = vmatprep.mubr.bf16.mxu1 %v15716_v1 }
 0x4f1   : > { %12439 = vmatprep.mubr.bf16.mxu0 %v15608_v9 }
 0x4f7   : > { %12280 = vmatmul.mubr.bf16.gmra.mrb[20].mxu1 %v7053_v17 }
 0x4f8   : > { %12440 = vmatmul.mubr.bf16.gmra.mrb[20].mxu0 %v15760_v39  ;;  %12299 = vmatprep.mubr.bf16.mxu1 %v15523_v4  ;;  %v8338_v4 = vld [vmem:[#allocation4 + $0x220] sm:$0xff] }
 0x4f9   : > { %12459 = vmatprep.mubr.bf16.mxu0 %v15552_v5  ;;  %v8057_v5 = vld [vmem:[%s15517_s11 + $0x70] sm:$0x1] }
 0x4ff   : > { %12300 = vmatmul.mubr.bf16.vlgmr.msra.gmra.mrb[0].mxu1 %v15529_v32  ;;  %v8339_v32 = vld [vmem:[#allocation4 + $0x228] sm:$0xff] }
 0x500   : > { %12460 = vmatmul.mubr.bf16.vlgmr.msra.gmra.mrb[0].mxu0 %v15557_v25  ;;  %12303 = vmatprep.mubr.bf16.mxu1 %v15536_v47  ;;  %v8340_v47 = vld [vmem:[#allocation4 + $0x230] sm:$0xff]  ;;  %v8159_v25 = vshrl.u32 %v15760_v39, 16 }
 0x501   : > { %12484 = vmatpush3.bf16.msra.mxu0 %v8334_v55  ;;  %12463 = vmatprep.mubr.bf16.mxu0 %v15572_v22  ;;  %v8332_v22 = vld [vmem:[%s15517_s11 + $0x10] sm:$0xfe] }
 0x502   : > { %12485 = vmatprep.subr.bf16.mxu0 %v8335_v56  ;;  %13292 = vmatpush3.bf16.msra.mxu1 %v8334_v55 }
 0x503   : > { %13285 = vmatprep.subr.bf16.mxu1 %v8335_v56 }
 0x505   : > { %12486 = vmatpush3.bf16.msra.mxu0 %v8335_v56 }
 0x506   : > { %12487 = vmatprep.subr.bf16.mxu0 %v8336_v29  ;;  %13293 = vmatpush3.bf16.msra.mxu1 %v8335_v56 }
 0x507   : > { %12304 = vmatmul.mubr.bf16.gmra.mrb[4].mxu1 %v15539_v13  ;;  %13286 = vmatprep.subr.bf16.mxu1 %v8336_v29  ;;  %v8155_v13 = vshll.u32 %v15760_v39, 16 }
 0x508   : > { %12464 = vmatmul.mubr.bf16.gmra.mrb[4].mxu0 %v15578_v59  ;;  %12307 = vmatprep.mubr.bf16.mxu1 %v15546_v7  ;;  %v8341_v7 = vld [vmem:[#allocation4 + $0x238] sm:$0xff] }
 0x509   : > { %12488 = vmatpush3.bf16.msra.mxu0 %v8336_v29  ;;  %12467 = vmatprep.mubr.bf16.mxu0 %v15592_v8  ;;  %v8355_v8 = vrot.slane %v8332_v22, 1 }
 0x50a   : > { %12489 = vmatprep.subr.bf16.mxu0 %v8337_v57  ;;  %13294 = vmatpush3.bf16.msra.mxu1 %v8336_v29  ;;  %v15837_v29 = vshrl.u32 %v8623_v20, 7 }
 0x50b   : > { %13287 = vmatprep.subr.bf16.mxu1 %v8337_v57 }
 0x50d   : > { %12490 = vmatpush3.bf16.msra.mxu0 %v8337_v57 }
 0x50e   : > { %12491 = vmatprep.subr.bf16.mxu0 %v8338_v4  ;;  %13295 = vmatpush3.bf16.msra.mxu1 %v8337_v57 }
 0x50f   : > { %12308 = vmatmul.mubr.bf16.gmra.mrb[8].mxu1 %v15549_v45  ;;  %13288 = vmatprep.subr.bf16.mxu1 %v8338_v4  ;;  %v8157_v45 = vrot.slane %v8155_v13, 1 }
 0x510   : > { %12468 = vmatmul.mubr.bf16.gmra.mrb[8].mxu0 %v15596_v44  ;;  %12311 = vmatprep.mubr.bf16.mxu1 %v15564_v18  ;;  %v8163_v18 = vshll.u32 %v8057_v5, 16 }
 0x511   : > { %12471 = vmatprep.mubr.bf16.mxu0 %v15612_v24  ;;  %12492 = vmatpush3.bf16.msra.mxu0 %v8338_v4  ;;  %v8161_v59 = vor.u32 %v8159_v25, %v8157_v45  ;;  %v8357_v24 = vsel %vm7028_vm2, %v8355_v8, %v15656_v63  ;;  %v8625_v25 = vadd.s32 8, %v15837_v29 }
 0x512   : > { %12493 = vmatprep.subr.bf16.mxu0 %v8339_v32  ;;  %13296 = vmatpush3.bf16.msra.mxu1 %v8338_v4 }
 0x513   : > { %13289 = vmatprep.subr.bf16.mxu1 %v8339_v32 }
 0x515   : > { %12494 = vmatpush3.bf16.msra.mxu0 %v8339_v32 }
 0x516   : > { %12495 = vmatprep.subr.bf16.mxu0 %v8340_v47  ;;  %13297 = vmatpush3.bf16.msra.mxu1 %v8339_v32 }
 0x517   : > { %12312 = vmatmul.mubr.bf16.gmra.mrb[12].mxu1 %v15568_v54  ;;  %13290 = vmatprep.subr.bf16.mxu1 %v8340_v47  ;;  %v8158_v54 = vsel %vm6634_vm0, %v15644_v15, %v8157_v45 }
 0x518   : > { %12472 = vmatmul.mubr.bf16.gmra.mrb[12].mxu0 %v15616_v0  ;;  %12315 = vmatprep.mubr.bf16.mxu1 %v15584_v61  ;;  %v8165_v61 = vrot.slane %v8163_v18, 1  ;;  %v15847_v18 = vld [vmem:[#allocation5] ss:$0 sm:$0xff] }
 0x519   : > { %12475 = vmatprep.mubr.bf16.mxu0 %v15631_v34  ;;  %12496 = vmatpush3.bf16.msra.mxu0 %v8340_v47 }
 0x51a   : > { %12497 = vmatprep.subr.bf16.mxu0 %v8341_v7  ;;  %13298 = vmatpush3.bf16.msra.mxu1 %v8340_v47  ;;  %v8166_v44 = vsel %vm6634_vm0, %v8161_v59, %v8165_v61 }
 0x51b   : > { %13291 = vmatprep.subr.bf16.mxu1 %v8341_v7 }
 0x51d   : > { %12498 = vmatpush3.bf16.msra.mxu0 %v8341_v7 }
 0x51e   : > { %13299 = vmatpush3.bf16.msra.mxu1 %v8341_v7 }
 0x51f   : > { %12316 = vmatmul.mubr.bf16.gmra.mrb[16].mxu1 %v15588_v33  ;;  %v8376_v33 = vrot.slane %v15760_v39, 1 }
 0x520   : > { %12476 = vmatmul.mubr.bf16.gmra.mrb[16].mxu0 %v15637_v14  ;;  %12319 = vmatprep.mubr.bf16.mxu1 %v15605_v41 }
 0x521   : > { %12479 = vmatprep.mubr.bf16.mxu0 %v8158_v54  ;;  %v8377_v41 = vsel %vm7028_vm2, %v15712_v49, %v8376_v33 }
 0x527   : > { %12320 = vmatmul.mubr.bf16.gmra.mrb[20].mxu1 %v15608_v9  ;;  %v8378_v9 = vrot.slane %v8057_v5, 1  ;;  %v8627_v5 = vadd.s32 24, %v15837_v29 }
 0x528   : > { %12480 = vmatmul.mubr.bf16.gmra.mrb[20].mxu0 %v8166_v44  ;;  %12511 = vmatprep.mubr.bf16.mxu1 %v15699_v12 }
 0x529   : > { %12499 = vmatprep.mubr.bf16.mxu0 %v8357_v24  ;;  %v8379_v0 = vsel %vm7028_vm2, %v8376_v33, %v8378_v9  ;;  %v8673_v24 = vand.u32 15, %v8627_v5  ;;  %v8659_v33 = vand.u32 15, %v8625_v25 }
 0x52b   : > { %vm15877_vm3 = vcmp.lt.s32.totalorder %v8659_v33, 12  ;;  %vm15884_vm4 = vcmp.lt.s32.totalorder %v8673_v24, 12 }
 0x52f   : > { %12512 = vmatmul.mubr.bf16.vlgmr.msra.gmra.mrb[24].mxu1 %v15702_v19 }
 0x530   : > { %12500 = vmatmul.mubr.bf16.vlgmr.msra.gmra.mrb[0].mxu0 %v15666_v2  ;;  %12515 = vmatprep.mubr.bf16.mxu1 %v15716_v1 }
 0x531   : > { %12503 = vmatprep.mubr.bf16.mxu0 %v15675_v38 }
 0x537   : > { %12516 = vmatmul.mubr.bf16.gmra.mrb[28].mxu1 %v15721_v37 }
 0x538   : > { %12504 = vmatmul.mubr.bf16.gmra.mrb[4].mxu0 %v15678_v11  ;;  %12519 = vmatprep.mubr.bf16.mxu1 %v8377_v41 }
 0x539   : > { %12507 = vmatprep.mubr.bf16.mxu0 %v15687_v58 }
 0x53f   : > { %12520 = vmatmul.mubr.bf16.gmra.mrb[32].mxu1 %v8379_v0 }
 0x540   : > { %12508 = vmatmul.mubr.bf16.gmra.mrb[8].mxu0 %v15690_v27 }
 0x5d2   : > { %v12301_v34 = vpop.f32.mrb[0].mxu1 }
 0x5d3   : > { %v7263_v14 = vpop.f32.mrb[1].mxu1 }
 0x5d4   : > { %v15807_v15 = vpop.f32.mrb[2].mxu1 }
 0x5d5   : > { %v15809_v63 = vpop.f32.mrb[3].mxu1 }
 0x5da   : > { %v15811_v2 = vpop.f32.mrb[4].mxu1 }
 0x5db   : > { %v15813_v38 = vpop.f32.mrb[5].mxu1 }
 0x5dc   : > { %v15815_v11 = vpop.f32.mrb[6].mxu1 }
 0x5dd   : > { %v15817_v58 = vpop.f32.mrb[7].mxu1 }
 0x5e2   : > { %v15819_v12 = vpop.f32.mrb[8].mxu1 }
 0x5e3   : > { %v15821_v19 = vpop.f32.mrb[9].mxu1 }
 0x5e4   : > { %v15823_v27 = vpop.f32.mrb[10].mxu1 }
 0x5e5   : > { %v15825_v49 = vpop.f32.mrb[11].mxu1 }
 0x5ea   : > { %v12313_v6 = vpop.f32.mrb[12].mxu1 }
 0x5eb   : > { %v12473_v1 = vpop.f32.mrb[12].mxu0  ;;  %v7311_v30 = vpop.f32.mrb[13].mxu1 }
 0x5ec   : > { %v13312_v37 = vadd.f32 %v12473_v1, %v12313_v6  ;;  %v8261_v62 = vpop.f32.mrb[13].mxu0  ;;  %v12314_v40 = vpop.f32.mrb[14].mxu1  ;;  %v15850_v1 = vadd.s32 56, %v15837_v29 }
 0x5ed   : > { %v13314_v31 = vadd.f32 %v8261_v62, %v7311_v30  ;;  %v12474_v36 = vpop.f32.mrb[14].mxu0  ;;  %v7314_v42 = vpop.f32.mrb[15].mxu1  ;;  %v15853_v30 = vadd.s32 40, %v15837_v29 }
 0x5ee   : > { %v13316_v10 = vadd.f32 %v12474_v36, %v12314_v40  ;;  %v8264_v50 = vpop.f32.mrb[15].mxu0  ;;  %v8701_v5 = vand.u32 15, %v15850_v1 }
 0x5ef   : > { %v13318_v23 = vadd.f32 %v8264_v50, %v7314_v42 }
 0x5f0   : > { %vm15934_vm5 = vcmp.lt.s32.totalorder %v8701_v5, 12 }
 0x5f2   : > { %v12317_v46 = vpop.f32.mrb[16].mxu1 }
 0x5f3   : > { %v12477_v28 = vpop.f32.mrb[16].mxu0  ;;  %v7327_v16 = vpop.f32.mrb[17].mxu1 }
 0x5f4   : > { %v15827_v3 = vadd.f32 %v12477_v28, %v12317_v46  ;;  %v8277_v48 = vpop.f32.mrb[17].mxu0  ;;  %v12318_v52 = vpop.f32.mrb[18].mxu1 }
 0x5f5   : > { %v15829_v43 = vadd.f32 %v8277_v48, %v7327_v16  ;;  %v12478_v21 = vpop.f32.mrb[18].mxu0  ;;  %v7330_v60 = vpop.f32.mrb[19].mxu1 }
 0x5f6   : > { %v15831_v35 = vadd.f32 %v12478_v21, %v12318_v52  ;;  %v8280_v26 = vpop.f32.mrb[19].mxu0 }
 0x5f7   : > { %v15833_v51 = vadd.f32 %v8280_v26, %v7330_v60 }
 0x5fa   : > { %v12321_v55 = vpop.f32.mrb[20].mxu1 }
 0x5fb   : > { %v12481_v53 = vpop.f32.mrb[20].mxu0  ;;  %v7343_v39 = vpop.f32.mrb[21].mxu1 }
 0x5fc   : > { %v15835_v17 = vadd.f32 %v12481_v53, %v12321_v55  ;;  %v8293_v56 = vpop.f32.mrb[21].mxu0  ;;  %v12322_v4 = vpop.f32.mrb[22].mxu1 }
 0x5fd   : > { %v15839_v57 = vadd.f32 %v8293_v56, %v7343_v39  ;;  %v12482_v32 = vpop.f32.mrb[22].mxu0  ;;  %v7346_v13 = vpop.f32.mrb[23].mxu1 }
 0x5fe   : > { %v15841_v47 = vadd.f32 %v12482_v32, %v12322_v4  ;;  %v8296_v7 = vpop.f32.mrb[23].mxu0 }
 0x5ff   : > { %v15843_v45 = vadd.f32 %v8296_v7, %v7346_v13 }
 0x602   : > { %v12513_v22 = vpop.f32.mrb[24].mxu1 }
 0x603   : > { %v12501_v54 = vpop.f32.mrb[0].mxu0  ;;  %v13313_v61 = vadd.f32 %v13312_v37, %v12513_v22  ;;  %v8474_v44 = vpop.f32.mrb[25].mxu1 }
 0x604   : > { %v13300_v59 = vadd.f32 %v12501_v54, %v12301_v34  ;;  %v8426_v8 = vpop.f32.mrb[1].mxu0  ;;  %v13315_v9 = vadd.f32 %v13314_v31, %v8474_v44  ;;  %v12514_v6 = vpop.f32.mrb[26].mxu1 }
 0x605   : > { %v13301_v41 = vadd.f32 %v8426_v8, %v7263_v14  ;;  %v12502_v0 = vpop.f32.mrb[2].mxu0  ;;  %v8565_v40 = vadd.f32 %v13313_v61, %v15847_v18  ;;  %v13317_v37 = vadd.f32 %v13316_v10, %v12514_v6  ;;  %v8477_v14 = vpop.f32.mrb[27].mxu1  ;;  %v8687_v8 = vand.u32 15, %v15853_v30 }
 0x606   : > { %v8553_v62 = vadd.f32 %v13300_v59, %v15847_v18  ;;  %v13302_v34 = vadd.f32 %v12502_v0, %v15807_v15  ;;  %v8429_v36 = vpop.f32.mrb[3].mxu0  ;;  %v8563_v42 = vadd.f32 %v13315_v9, %v15847_v18  ;;  %v13319_v46 = vadd.f32 %v13318_v23, %v8477_v14 }
 0x607   : > { %v8551_v31 = vadd.f32 %v13301_v41, %v15847_v18  ;;  %v13303_v50 = vadd.f32 %v8429_v36, %v15809_v63  ;;  %v15861_v16 = vmax.f32 %v8565_v40, 0.0  ;;  %v15865_v15 = vadd.f32 %v13317_v37, %v15847_v18 }
 0x608   : > { %v8577_v28 = vmax.f32 %v8553_v62, 0.0  ;;  %v8554_v48 = vadd.f32 %v13302_v34, %v15847_v18  ;;  %v15867_v52 = vmax.f32 %v8563_v42, 0.0  ;;  %v15871_v60 = vadd.f32 %v13319_v46, %v15847_v18 }
 0x609   : > { %v8575_v10 = vmax.f32 %v8551_v31, 0.0  ;;  %v8552_v21 = vadd.f32 %v13303_v50, %v15847_v18  ;;  %8613 = vst [vmem:[%s13833_s13 + $0x70] sm:$0xff] %v15861_v16  ;;  %v8590_v23 = vmax.f32 %v15865_v15, 0.0  ;;  %vm15942_vm6 = vcmp.lt.s32.totalorder %v8687_v8, 12 }
 0x60a   : > { %8601 = vst [vmem:[%s13833_s13 + $0x10] sm:$0xff] %v8577_v28  ;;  %v8578_v63 = vmax.f32 %v8554_v48, 0.0  ;;  %8611 = vst [vmem:[%s13833_s13 + $0x60] sm:$0xff] %v15867_v52  ;;  %v8588_v53 = vmax.f32 %v15871_v60, 0.0  ;;  %v12517_v56 = vpop.f32.mrb[28].mxu1  ;;  %v9067_v25 = vmul.f32 %v8577_v28, %v8577_v28  ;;  %v9079_v60 = vmul.f32 %v15861_v16, %v15861_v16 }
 0x60b   : > { %8599 = vst [vmem:[%s13833_s13] sm:$0xff] %v8575_v10  ;;  %v8576_v55 = vmax.f32 %v8552_v21, 0.0  ;;  %v12505_v39 = vpop.f32.mrb[4].mxu0  ;;  %8614 = vst [vmem:[%s13833_s13 + $0x78] sm:$0xff] %v8590_v23  ;;  %v13321_v32 = vadd.f32 %v15827_v3, %v12517_v56  ;;  %v8490_v7 = vpop.f32.mrb[29].mxu1  ;;  %v9065_v54 = vmul.f32 %v8575_v10, %v8575_v10  ;;  %v8647_v15 = vadd.s32 184, %v15837_v29 }
 0x60c   : > { %8602 = vst [vmem:[%s13833_s13 + $0x18] sm:$0xff] %v8578_v63  ;;  %v13304_v4 = vadd.f32 %v12505_v39, %v15811_v2  ;;  %v8442_v13 = vpop.f32.mrb[5].mxu0  ;;  %8612 = vst [vmem:[%s13833_s13 + $0x68] sm:$0xff] %v8588_v53  ;;  %v12518_v61 = vpop.f32.mrb[30].mxu1  ;;  %v9011_v2 = vsel %vm15884_vm4, %v8578_v63, 0.0  ;;  %v13323_v6 = vadd.f32 %v15829_v43, %v8490_v7 }
 0x60d   : > { %8600 = vst [vmem:[%s13833_s13 + $0x8] sm:$0xff] %v8576_v55  ;;  %v9009_v22 = vsel %vm15877_vm3, %v8576_v55, 0.0  ;;  %v12506_v59 = vpop.f32.mrb[6].mxu0  ;;  %v8493_v41 = vpop.f32.mrb[31].mxu1  ;;  %v8569_v9 = vadd.f32 %v13321_v32, %v15847_v18  ;;  %v13305_v0 = vadd.f32 %v8442_v13, %v15813_v38  ;;  %v13325_v34 = vadd.f32 %v15831_v35, %v12518_v61 }
 0x60e   : > { %v9033_v3 = vadd.f32 %v9009_v22, %v8575_v10  ;;  %v9066_v44 = vmul.f32 %v9009_v22, %v9009_v22  ;;  %v8557_v24 = vadd.f32 %v13304_v4, %v15847_v18  ;;  %v8445_v33 = vpop.f32.mrb[7].mxu0  ;;  %v13306_v1 = vadd.f32 %v12506_v59, %v15815_v11 }
 0x60f   : > { %v15913_v37 = vmax.f32 %v8569_v9, 0.0  ;;  %v8555_v36 = vadd.f32 %v13305_v0, %v15847_v18  ;;  %v8567_v14 = vadd.f32 %v13323_v6, %v15847_v18  ;;  %v9068_v38 = vmul.f32 %v9011_v2, %v9011_v2 }
 0x610   : > { %v9034_v30 = vadd.f32 %v9033_v3, %v8577_v28  ;;  %v9089_v62 = vadd.f32 %v9066_v44, %v9065_v54  ;;  %v15910_v40 = vmax.f32 %v8557_v24, 0.0  ;;  %v8558_v31 = vadd.f32 %v13306_v1, %v15847_v18 }
 0x611   : > { %v15921_v43 = vadd.f32 %v13325_v34, %v15847_v18  ;;  %8617 = vst [vmem:[%s13833_s13 + $0x90] sm:$0xff] %v15913_v37  ;;  %v8579_v35 = vmax.f32 %v8555_v36, 0.0  ;;  %v15925_v50 = vmax.f32 %v8567_v14, 0.0  ;;  %v13307_v63 = vadd.f32 %v8445_v33, %v15817_v58 }
 0x612   : > { %v9090_v42 = vadd.f32 %v9089_v62, %v9067_v25  ;;  %8605 = vst [vmem:[%s13833_s13 + $0x30] sm:$0xff] %v15910_v40  ;;  %v9035_v11 = vadd.f32 %v9034_v30, %v9011_v2  ;;  %v8582_v46 = vmax.f32 %v8558_v31, 0.0  ;;  %v12521_v48 = vpop.f32.mrb[32].mxu1  ;;  %v13327_v26 = vadd.f32 %v15833_v51, %v8493_v41 }
 0x613   : > { %v12509_v28 = vpop.f32.mrb[8].mxu0  ;;  %v8594_v21 = vmax.f32 %v15921_v43, 0.0  ;;  %v8506_v55 = vpop.f32.mrb[33].mxu1  ;;  %8603 = vst [vmem:[%s13833_s13 + $0x20] sm:$0xff] %v8579_v35  ;;  %v9069_v56 = vmul.f32 %v8579_v35, %v8579_v35  ;;  %8615 = vst [vmem:[%s13833_s13 + $0x80] sm:$0xff] %v15925_v50  ;;  %v8556_v58 = vadd.f32 %v13307_v63, %v15847_v18  ;;  %v13329_v59 = vadd.f32 %v15835_v17, %v12521_v48 }
 0x614   : > { %v9091_v10 = vadd.f32 %v9090_v42, %v9068_v38  ;;  %v8458_v20 = vpop.f32.mrb[9].mxu0  ;;  %v9036_v39 = vadd.f32 %v9035_v11, %v8579_v35  ;;  %8606 = vst [vmem:[%s13833_s13 + $0x38] sm:$0xff] %v8582_v46  ;;  %v12522_v32 = vpop.f32.mrb[34].mxu1  ;;  %v15947_v7 = vadd.f32 %v13327_v26, %v15847_v18  ;;  %v13308_v22 = vadd.f32 %v12509_v28, %v15819_v12 }
 0x615   : > { %v12510_v4 = vpop.f32.mrb[10].mxu0  ;;  %8618 = vst [vmem:[%s13833_s13 + $0x98] sm:$0xff] %v8594_v21  ;;  %v8509_v54 = vpop.f32.mrb[35].mxu1  ;;  %v8635_v61 = vadd.s32 88, %v15837_v29  ;;  %v8580_v2 = vmax.f32 %v8556_v58, 0.0  ;;  %v13309_v3 = vadd.f32 %v8458_v20, %v15821_v19  ;;  %v13331_v44 = vadd.f32 %v15839_v57, %v8506_v55 }
 0x616   : > { %v8461_v25 = vpop.f32.mrb[11].mxu0  ;;  %v9092_v5 = vadd.f32 %v9091_v10, %v9069_v56  ;;  %v8592_v8 = vmax.f32 %v15947_v7, 0.0  ;;  %v8561_v24 = vadd.f32 %v13308_v22, %v15847_v18  ;;  %v8573_v33 = vadd.f32 %v13329_v59, %v15847_v18 }
 0x617   : > { %v13310_v41 = vadd.f32 %v12510_v4, %v15823_v27  ;;  %v13333_v9 = vadd.f32 %v15841_v47, %v12522_v32  ;;  %8604 = vst [vmem:[%s13833_s13 + $0x28] sm:$0xff] %v8580_v2  ;;  %v9013_v12 = vsel %vm15942_vm6, %v8580_v2, 0.0  ;;  %v8559_v19 = vadd.f32 %v13309_v3, %v15847_v18 }
 0x618   : > { %8616 = vst [vmem:[%s13833_s13 + $0x88] sm:$0xff] %v8592_v8  ;;  %v8571_v17 = vadd.f32 %v13331_v44, %v15847_v18  ;;  %v8633_v57 = vadd.s32 72, %v15837_v29  ;;  %v9015_v27 = vsel %vm15934_vm5, %v8582_v46, 0.0  ;;  %v9037_v47 = vadd.f32 %v9036_v39, %v9013_v12 }
 0x619   : > { %v9070_v0 = vmul.f32 %v9013_v12, %v9013_v12  ;;  %v8585_v6 = vmax.f32 %v8561_v24, 0.0  ;;  %v15970_v1 = vmax.f32 %v8573_v33, 0.0  ;;  %v8583_v30 = vmax.f32 %v8559_v19, 0.0 }
 0x61a   : > { %v15972_v62 = vmax.f32 %v8571_v17, 0.0  ;;  %v8562_v34 = vadd.f32 %v13310_v41, %v15847_v18  ;;  %v9071_v36 = vmul.f32 %v15910_v40, %v15910_v40  ;;  %v9038_v14 = vadd.f32 %v9037_v47, %v15910_v40 }
 0x61b   : > { %v9093_v31 = vadd.f32 %v9092_v5, %v9070_v0  ;;  %8609 = vst [vmem:[%s13833_s13 + $0x50] sm:$0xff] %v8585_v6  ;;  %v15980_v38 = vadd.f32 %v13333_v9, %v15847_v18  ;;  %v9072_v42 = vmul.f32 %v9015_v27, %v9015_v27  ;;  %8621 = vst [vmem:[%s13833_s13 + $0xb0] sm:$0xff] %v15970_v1  ;;  %v8715_v46 = vand.u32 15, %v8633_v57 }
 0x61c   : > { %8607 = vst [vmem:[%s13833_s13 + $0x40] sm:$0xff] %v8583_v30  ;;  %v9073_v11 = vmul.f32 %v8583_v30, %v8583_v30  ;;  %8619 = vst [vmem:[%s13833_s13 + $0xa0] sm:$0xff] %v15972_v62  ;;  %v8586_v35 = vmax.f32 %v8562_v34, 0.0  ;;  %v9039_v48 = vadd.f32 %v9038_v14, %v9015_v27  ;;  %v13311_v40 = vadd.f32 %v8461_v25, %v15825_v49 }
 0x61d   : > { %v9094_v28 = vadd.f32 %v9093_v31, %v9071_v36  ;;  %v8598_v10 = vmax.f32 %v15980_v38, 0.0  ;;  %v13335_v63 = vadd.f32 %v15843_v45, %v8509_v54  ;;  %v8637_v26 = vadd.s32 104, %v15837_v29 }
 0x61e   : > { %8610 = vst [vmem:[%s13833_s13 + $0x58] sm:$0xff] %v8586_v35  ;;  %v9040_v20 = vadd.f32 %v9039_v48, %v8583_v30  ;;  %v8729_v39 = vand.u32 15, %v8635_v61  ;;  %v8560_v56 = vadd.f32 %v13311_v40, %v15847_v18  ;;  %vm8945_vm7 = vcmp.lt.s32.totalorder %v8715_v46, 12 }
 0x61f   : > { %v9095_v55 = vadd.f32 %v9094_v28, %v9072_v42  ;;  %8622 = vst [vmem:[%s13833_s13 + $0xb8] sm:$0xff] %v8598_v10  ;;  %v15997_v4 = vadd.f32 %v13335_v63, %v15847_v18  ;;  %v8639_v49 = vadd.s32 120, %v15837_v29  ;;  %v8743_v58 = vand.u32 15, %v8637_v26 }
 0x620   : > { %v8584_v13 = vmax.f32 %v8560_v56, 0.0  ;;  %vm8947_vm8 = vcmp.lt.s32.totalorder %v8729_v39, 12  ;;  %v8641_v22 = vadd.s32 136, %v15837_v29  ;;  %v9075_v18 = vmul.f32 %v8585_v6, %v8585_v6 }
 0x621   : > { %v9096_v32 = vadd.f32 %v9095_v55, %v9073_v11  ;;  %v8596_v45 = vmax.f32 %v15997_v4, 0.0  ;;  %v8757_v5 = vand.u32 15, %v8639_v49  ;;  %v9019_v59 = vsel %vm8947_vm8, %v8586_v35, 0.0 }
 0x622   : > { %8608 = vst [vmem:[%s13833_s13 + $0x48] sm:$0xff] %v8584_v13  ;;  %v9017_v51 = vsel %vm8945_vm7, %v8584_v13, 0.0  ;;  %vm8949_vm9 = vcmp.lt.s32.totalorder %v8743_v58, 12  ;;  %v9076_v3 = vmul.f32 %v9019_v59, %v9019_v59  ;;  %v8643_v41 = vadd.s32 152, %v15837_v29 }
 0x623   : > { %8620 = vst [vmem:[%s13833_s13 + $0xa8] sm:$0xff] %v8596_v45  ;;  %v9041_v25 = vadd.f32 %v9040_v20, %v9017_v51  ;;  %v9074_v54 = vmul.f32 %v9017_v51, %v9017_v51  ;;  %v9021_v33 = vsel %vm8949_vm9, %v8588_v53, 0.0  ;;  %v8771_v9 = vand.u32 15, %v8641_v22 }
 0x624   : > { %v9077_v12 = vmul.f32 %v15867_v52, %v15867_v52  ;;  %vm8951_vm10 = vcmp.lt.s32.totalorder %v8757_v5, 12  ;;  %v9078_v57 = vmul.f32 %v9021_v33, %v9021_v33  ;;  %v8645_v34 = vadd.s32 168, %v15837_v29 }
 0x625   : > { %v9042_v61 = vadd.f32 %v9041_v25, %v8585_v6  ;;  %v9097_v2 = vadd.f32 %v9096_v32, %v9074_v54  ;;  %v9023_v0 = vsel %vm8951_vm10, %v8590_v23, 0.0  ;;  %v8785_v6 = vand.u32 15, %v8643_v41 }
 0x626   : > { %vm8953_vm11 = vcmp.lt.s32.totalorder %v8771_v9, 12  ;;  %v9080_v36 = vmul.f32 %v9023_v0, %v9023_v0  ;;  %v9081_v23 = vmul.f32 %v15925_v50, %v15925_v50  ;;  %v8799_v42 = vand.u32 15, %v8645_v34 }
 0x627   : > { %v9043_v44 = vadd.f32 %v9042_v61, %v9019_v59  ;;  %v9098_v24 = vadd.f32 %v9097_v2, %v9075_v18  ;;  %vm8955_vm12 = vcmp.lt.s32.totalorder %v8785_v6, 12  ;;  %v9025_v31 = vsel %vm8953_vm11, %v8592_v8, 0.0 }
 0x628   : > { %v9027_v48 = vsel %vm8955_vm12, %v8594_v21, 0.0  ;;  %v8813_v40 = vand.u32 15, %v8647_v15  ;;  %v9083_v7 = vmul.f32 %v15913_v37, %v15913_v37  ;;  %vm8957_vm13 = vcmp.lt.s32.totalorder %v8799_v42, 12 }
 0x629   : > { %v9044_v19 = vadd.f32 %v9043_v44, %v15867_v52  ;;  %v9099_v17 = vadd.f32 %v9098_v24, %v9076_v3  ;;  %v9084_v63 = vmul.f32 %v9027_v48, %v9027_v48  ;;  %v9029_v55 = vsel %vm8957_vm13, %v8596_v45, 0.0  ;;  %v9064_v44 = vld [vmem:[%s16068_s6 + $0x1] sm:$0x1] }
 0x62a   : > { %vm8959_vm14 = vcmp.lt.s32.totalorder %v8813_v40, 12  ;;  %v9086_v56 = vmul.f32 %v9029_v55, %v9029_v55 }
 0x62b   : > { %v9045_v27 = vadd.f32 %v9044_v19, %v9021_v33  ;;  %v9100_v47 = vadd.f32 %v9099_v17, %v9077_v12  ;;  %v9031_v32 = vsel %vm8959_vm14, %v8598_v10, 0.0  ;;  %v9032_v10 = vld [vmem:[%s16068_s6] sm:$0x1] }
 0x62c   : > { %v9088_v45 = vmul.f32 %v9031_v32, %v9031_v32 }
 0x62d   : > { %v9046_v53 = vadd.f32 %v9045_v27, %v15861_v16  ;;  %v9101_v30 = vadd.f32 %v9100_v47, %v9078_v57  ;;  %v9082_v16 = vmul.f32 %v9025_v31, %v9025_v31 }
 0x62f   : > { %v9102_v14 = vadd.f32 %v9101_v30, %v9079_v60  ;;  %v9047_v52 = vadd.f32 %v9046_v53, %v9023_v0 }
 0x631   : > { %v9048_v11 = vadd.f32 %v9047_v52, %v15925_v50  ;;  %v9103_v35 = vadd.f32 %v9102_v14, %v9080_v36  ;;  %v9085_v50 = vmul.f32 %v15972_v62, %v15972_v62 }
 0x633   : > { %v9049_v46 = vadd.f32 %v9048_v11, %v9025_v31  ;;  %v9104_v28 = vadd.f32 %v9103_v35, %v9081_v23 }
 0x635   : > { %v9050_v29 = vadd.f32 %v9049_v46, %v15913_v37  ;;  %v9105_v8 = vadd.f32 %v9104_v28, %v9082_v16  ;;  %v9087_v37 = vmul.f32 %v15970_v1, %v15970_v1 }
 0x637   : > { %v9051_v26 = vadd.f32 %v9050_v29, %v9027_v48  ;;  %v9106_v20 = vadd.f32 %v9105_v8, %v9083_v7 }
 0x639   : > { %v9052_v39 = vadd.f32 %v9051_v26, %v15972_v62  ;;  %v9107_v43 = vadd.f32 %v9106_v20, %v9084_v63 }
 0x63b   : > { %v9053_v21 = vadd.f32 %v9052_v39, %v9029_v55  ;;  %v9108_v4 = vadd.f32 %v9107_v43, %v9085_v50 }
 0x63d   : > { %v9054_v49 = vadd.f32 %v9053_v21, %v15970_v1  ;;  %v9109_v13 = vadd.f32 %v9108_v4, %v9086_v56 }
 0x63f   : > { %v9055_v58 = vadd.f32 %v9054_v49, %v9031_v32  ;;  %v9110_v51 = vadd.f32 %v9109_v13, %v9087_v37 }
 0x641   : > { %v9056_v25 = vrot.slane %v9055_v58, 4  ;;  %v9111_v54 = vadd.f32 %v9110_v51, %v9088_v45 }
 0x643   : > { %v9057_v5 = vadd.f32 %v9056_v25, %v9055_v58  ;;  %v9112_v62 = vrot.slane %v9111_v54, 4 }
 0x645   : > { %v9058_v22 = vrot.slane %v9057_v5, 2  ;;  %v9113_v59 = vadd.f32 %v9112_v62, %v9111_v54 }
 0x647   : > { %v9059_v18 = vadd.f32 %v9058_v22, %v9057_v5  ;;  %v9114_v61 = vrot.slane %v9113_v59, 2 }
 0x649   : > { %v9060_v2 = vrot.slane %v9059_v18, 1  ;;  %v9115_v38 = vadd.f32 %v9114_v61, %v9113_v59 }
 0x64b   : > { %v9061_v3 = vadd.f32 %v9060_v2, %v9059_v18  ;;  %v9116_v1 = vrot.slane %v9115_v38, 1 }
 0x64d   : > { %v9062_v24 = vadd.f32 %v9061_v3, %v9032_v10  ;;  %v9117_v33 = vadd.f32 %v9116_v1, %v9115_v38 }
 0x64f   : > { %9063 = vst [vmem:[%s16068_s6] sm:$0x1] %v9062_v24  ;;  %v9118_v41 = vadd.f32 %v9117_v33, %v9064_v44 }
 0x651   : > { %9119 = vst [vmem:[%s16068_s6 + $0x1] sm:$0x1] %v9118_v41 }
 0x652 PF: > { %s17_s25 = sadd.s32 1, %s13746_s25   ;;  %s16156_s21 = smov %s13738_s23 }
 0x653   : > { %p14_p12 = scmp.ge.s32.totalorder %s17_s25, 6   ;;  %s16157_s22 = smov %s13742_s24 }
 0x654   : > { %s16158_s23 = smov %s16161_s26  ;;  %s16159_s24 = smov %s16165_s27 }
 0x655   :  { %16 = sbr.rel (!%p14_p12) target bundleno = 3 (0x3), region = 128 }

</bundles_post_ra>
